<compile_context>
chip_gen: v7x
topology: tpu7x:2x2x1
jax: 0.10.0
libtpu: 0.0.40
codegen_flags: <defaults>
</compile_context>

<pallas_src>
import functools

import jax
import jax.numpy as jnp
import numpy as np
from jax.experimental import pallas as pl
from jax.experimental.pallas import tpu as pltpu

SPATIAL_MERGE = 2
MERGE = SPATIAL_MERGE ** 2  # 4
LN_EPS = 1e-6


def _patch_merger_kernel(x_ref, w1_ref, b1_ref, w2_ref, b2_ref, o_ref,
                         xn_ref, acc_ref, *, context_dim):
    """Grid: (groups//tg, hidden//th).  j (axis 1) streams the hidden dim.

    x_ref  : (tg, hidden)      input rows (4 merged tokens per row), input dtype
    w1_ref : (hidden, th)      column block of W1' (LN affine folded), bf16
    b1_ref : (1, th)           block of b1', f32
    w2_ref : (th, dim)         row block of W2, bf16
    b2_ref : (1, dim)          f32
    o_ref  : (tg, dim)         output block (written at last j)
    xn_ref : (tg, hidden) bf16 scratch: LayerNorm-normalized activations
    acc_ref: (tg, dim)    f32  scratch: y2 accumulator over j
    """
    j = pl.program_id(1)
    nj = pl.num_programs(1)

    # ---- once per token-group tile: LayerNorm (per C-wide chunk) ----
    @pl.when(j == 0)
    def _():
        x = x_ref[...].astype(jnp.float32)                     # (tg, 4C)
        chunks = []
        for m in range(MERGE):                                 # lane-aligned slices
            xm = x[:, m * context_dim:(m + 1) * context_dim]   # (tg, C)
            mu = jnp.mean(xm, axis=-1, keepdims=True)
            xc = xm - mu
            var = jnp.mean(xc * xc, axis=-1, keepdims=True)
            chunks.append(xc * jax.lax.rsqrt(var + LN_EPS))
        xn = jnp.concatenate(chunks, axis=-1)                  # (tg, 4C), no relayout
        xn_ref[...] = xn.astype(xn_ref.dtype)                  # bf16 for the MXU
        acc_ref[...] = jnp.zeros_like(acc_ref)

    # ---- streamed MLP block: y1_blk = GELU(xn @ W1'[:, blk] + b1'[blk]) ----
    y1 = jnp.dot(xn_ref[...], w1_ref[...],
                 preferred_element_type=jnp.float32) + b1_ref[...]   # (tg, th) f32
    # exact (erf) GELU, matching torch nn.GELU() default
    y1 = 0.5 * y1 * (1.0 + jax.lax.erf(y1 * np.float32(1.0 / np.sqrt(2.0))))

    # ---- accumulate second matmul over the hidden axis ----
    acc_ref[...] += jnp.dot(y1.astype(w2_ref.dtype), w2_ref[...],
                            preferred_element_type=jnp.float32)

    @pl.when(j == nj - 1)
    def _():
        o_ref[...] = (acc_ref[...] + b2_ref[...]).astype(o_ref.dtype)


def patch_merger(x, ln_w, ln_b, w1, b1, w2, b2, *, tg=256, th=256):
    """x: (seq, context_dim); returns (seq // 4, dim)."""
    seq, context_dim = x.shape
    assert seq % MERGE == 0
    hidden = MERGE * context_dim
    assert w1.shape == (hidden, hidden)
    dim = w2.shape[1]
    groups = seq // MERGE

    tg = min(tg, groups)
    th = min(th, hidden)
    assert groups % tg == 0, "tg must divide the merged-token count"
    assert hidden % th == 0, "th must divide hidden"
    assert tg % 8 == 0 and th % 128 == 0

    # Free metadata reshape: identical to torch's contiguous .view(-1, hidden).
    xg = x.reshape(groups, hidden)

    # Fold the LayerNorm affine into the first Linear; cast weights to bf16.
    lnw_t = jnp.tile(ln_w.astype(jnp.float32), MERGE)            # (hidden,)
    lnb_t = jnp.tile(ln_b.astype(jnp.float32), MERGE)
    w1f = (w1.astype(jnp.float32) * lnw_t[:, None]).astype(jnp.bfloat16)
    b1f = (lnb_t @ w1.astype(jnp.float32)
           + b1.astype(jnp.float32)).reshape(1, hidden)
    w2b = w2.astype(jnp.bfloat16)
    b2f = b2.astype(jnp.float32).reshape(1, dim)

    kernel = functools.partial(_patch_merger_kernel, context_dim=context_dim)

    grid = (groups // tg, hidden // th)   # reduction (hidden) axis last
    return pl.pallas_call(
        kernel,
        out_shape=jax.ShapeDtypeStruct((groups, dim), x.dtype),
        grid_spec=pltpu.PrefetchScalarGridSpec(
            num_scalar_prefetch=0,
            grid=grid,
            in_specs=[
                pl.BlockSpec((tg, hidden), lambda i, j: (i, 0)),   # x rows (resident over j)
                pl.BlockSpec((hidden, th), lambda i, j: (0, j)),   # W1' column block
                pl.BlockSpec((1, th),      lambda i, j: (0, j)),   # b1' block
                pl.BlockSpec((th, dim),    lambda i, j: (j, 0)),   # W2 row block
                pl.BlockSpec((1, dim),     lambda i, j: (0, 0)),   # b2
            ],
            out_specs=pl.BlockSpec((tg, dim), lambda i, j: (i, 0)),
            scratch_shapes=[
                pltpu.VMEM((tg, hidden), jnp.bfloat16),   # normalized activations
                pltpu.VMEM((tg, dim), jnp.float32),       # y2 accumulator
            ],
        ),
        compiler_params=pltpu.CompilerParams(
            dimension_semantics=("parallel", "arbitrary"),
            vmem_limit_bytes=48 * 1024 * 1024,
        ),
    )(xg, w1f, b1f, w2b, b2f)


def patch_merger_ref(x, ln_w, ln_b, w1, b1, w2, b2):
    """Pure-JAX f32 reference mirroring the PyTorch forward."""
    xf = x.astype(jnp.float32)
    mu = jnp.mean(xf, axis=-1, keepdims=True)
    var = jnp.mean((xf - mu) ** 2, axis=-1, keepdims=True)
    xn = (xf - mu) * jax.lax.rsqrt(var + LN_EPS) * ln_w + ln_b
    h = xn.reshape(-1, MERGE * x.shape[-1])
    y1 = h @ w1 + b1
    y1 = 0.5 * y1 * (1.0 + jax.lax.erf(y1 / np.sqrt(2.0)))
    return (y1 @ w2 + b2).astype(x.dtype)


if __name__ == "__main__":
    # Small but MXU/lane-friendly shapes consistent with the module:
    # context_dim=128 -> hidden=512, dim=256, seq=2048 tokens -> 512 merged rows.
    context_dim = 128
    dim = 256
    hidden = MERGE * context_dim          # 512
    seq = 2048                            # 512 merged rows -> 2 parallel grid steps

    key = jax.random.PRNGKey(0)
    kx, k1, k2, k3, k4, k5, k6 = jax.random.split(key, 7)

    x = jax.random.normal(kx, (seq, context_dim), dtype=jnp.float32)
    ln_w = jax.random.normal(k1, (context_dim,), dtype=jnp.float32) * 0.1 + 1.0
    ln_b = jax.random.normal(k2, (context_dim,), dtype=jnp.float32) * 0.1
    w1 = jax.random.normal(k3, (hidden, hidden), dtype=jnp.float32) / np.sqrt(hidden)
    b1 = jax.random.normal(k4, (hidden,), dtype=jnp.float32) * 0.05
    w2 = jax.random.normal(k5, (hidden, dim), dtype=jnp.float32) / np.sqrt(hidden)
    b2 = jax.random.normal(k6, (dim,), dtype=jnp.float32) * 0.05

    out = patch_merger(x, ln_w, ln_b, w1, b1, w2, b2, tg=256, th=256)
    out = jax.block_until_ready(out)

    ref = patch_merger_ref(x, ln_w, ln_b, w1, b1, w2, b2)
    assert out.shape == (seq // MERGE, dim), out.shape
    # bf16 MXU inputs vs. the pure-f32 reference -> loosened tolerances.
    np.testing.assert_allclose(np.asarray(out), np.asarray(ref),
                               rtol=2e-2, atol=2e-2)

    print("KERNEL_OK")
</pallas_src>

<mosaic_0001>
module attributes {stable_mosaic.version = 11 : i64} {
  func.func @_patch_merger_kernel(%arg0: i32, %arg1: i32, %arg2: memref<256x512xf32, #tpu.memory_space<vmem>>, %arg3: memref<512x256xbf16, #tpu.memory_space<vmem>>, %arg4: memref<1x256xf32, #tpu.memory_space<vmem>>, %arg5: memref<256x256xbf16, #tpu.memory_space<vmem>>, %arg6: memref<1x256xf32, #tpu.memory_space<vmem>>, %arg7: memref<256x256xf32, #tpu.memory_space<vmem>>, %arg8: memref<256x512xbf16, #tpu.memory_space<vmem>>, %arg9: memref<256x256xf32, #tpu.memory_space<vmem>>) attributes {dimension_semantics = [#tpu.dimension_semantics<parallel>, #tpu.dimension_semantics<arbitrary>], iteration_bounds = array<i64: 2, 2>, scalar_prefetch = 0 : i64, scratch_operands = 2 : i64, tpu.core_type = #tpu.core_type<tc>, window_params = [{transform_indices = @transform_0, window_bounds = array<i64: 256, 512>}, {transform_indices = @transform_1, window_bounds = array<i64: 512, 256>}, {transform_indices = @transform_2, window_bounds = array<i64: 1, 256>}, {transform_indices = @transform_3, window_bounds = array<i64: 256, 256>}, {pipeline_mode = #tpu.pipeline_mode<synchronous>, transform_indices = @transform_4, window_bounds = array<i64: 1, 256>}, {transform_indices = @transform_5, window_bounds = array<i64: 256, 256>}]} {
    %c0_i32 = arith.constant 0 : i32
    %0 = arith.cmpi eq, %arg1, %c0_i32 : i32
    %1 = arith.extui %0 : i1 to i32
    %c0_i32_0 = arith.constant 0 : i32
    %2 = arith.cmpi ne, %1, %c0_i32_0 : i32
    scf.if %2 {
      %c0_17 = arith.constant 0 : index
      %c0_18 = arith.constant 0 : index
      %26 = vector.load %arg2[%c0_17, %c0_18] : memref<256x512xf32, #tpu.memory_space<vmem>>, vector<256x512xf32>
      %27 = vector.extract_strided_slice %26 {offsets = [0, 0], sizes = [256, 128], strides = [1, 1]} : vector<256x512xf32> to vector<256x128xf32>
      %cst_19 = arith.constant dense<0.000000e+00> : vector<256xf32>
      %28 = vector.multi_reduction <add>, %27, %cst_19 [1] : vector<256x128xf32> to vector<256xf32>
      %29 = vector.shape_cast %28 : vector<256xf32> to vector<256x1xf32>
      %cst_20 = arith.constant 1.280000e+02 : f32
      %30 = vector.broadcast %cst_20 : f32 to vector<256x1xf32>
      %31 = arith.divf %29, %30 : vector<256x1xf32>
      %32 = vector.broadcast %31 : vector<256x1xf32> to vector<256x128xf32>
      %33 = arith.subf %27, %32 : vector<256x128xf32>
      %34 = arith.mulf %33, %33 : vector<256x128xf32>
      %cst_21 = arith.constant dense<0.000000e+00> : vector<256xf32>
      %35 = vector.multi_reduction <add>, %34, %cst_21 [1] : vector<256x128xf32> to vector<256xf32>
      %36 = vector.shape_cast %35 : vector<256xf32> to vector<256x1xf32>
      %cst_22 = arith.constant 1.280000e+02 : f32
      %37 = vector.broadcast %cst_22 : f32 to vector<256x1xf32>
      %38 = arith.divf %36, %37 : vector<256x1xf32>
      %cst_23 = arith.constant 9.99999997E-7 : f32
      %39 = vector.broadcast %cst_23 : f32 to vector<256x1xf32>
      %40 = arith.addf %38, %39 : vector<256x1xf32>
      %41 = math.rsqrt %40 : vector<256x1xf32>
      %42 = vector.broadcast %41 : vector<256x1xf32> to vector<256x128xf32>
      %43 = arith.mulf %33, %42 : vector<256x128xf32>
      %44 = vector.extract_strided_slice %26 {offsets = [0, 128], sizes = [256, 128], strides = [1, 1]} : vector<256x512xf32> to vector<256x128xf32>
      %cst_24 = arith.constant dense<0.000000e+00> : vector<256xf32>
      %45 = vector.multi_reduction <add>, %44, %cst_24 [1] : vector<256x128xf32> to vector<256xf32>
      %46 = vector.shape_cast %45 : vector<256xf32> to vector<256x1xf32>
      %cst_25 = arith.constant 1.280000e+02 : f32
      %47 = vector.broadcast %cst_25 : f32 to vector<256x1xf32>
      %48 = arith.divf %46, %47 : vector<256x1xf32>
      %49 = vector.broadcast %48 : vector<256x1xf32> to vector<256x128xf32>
      %50 = arith.subf %44, %49 : vector<256x128xf32>
      %51 = arith.mulf %50, %50 : vector<256x128xf32>
      %cst_26 = arith.constant dense<0.000000e+00> : vector<256xf32>
      %52 = vector.multi_reduction <add>, %51, %cst_26 [1] : vector<256x128xf32> to vector<256xf32>
      %53 = vector.shape_cast %52 : vector<256xf32> to vector<256x1xf32>
      %cst_27 = arith.constant 1.280000e+02 : f32
      %54 = vector.broadcast %cst_27 : f32 to vector<256x1xf32>
      %55 = arith.divf %53, %54 : vector<256x1xf32>
      %cst_28 = arith.constant 9.99999997E-7 : f32
      %56 = vector.broadcast %cst_28 : f32 to vector<256x1xf32>
      %57 = arith.addf %55, %56 : vector<256x1xf32>
      %58 = math.rsqrt %57 : vector<256x1xf32>
      %59 = vector.broadcast %58 : vector<256x1xf32> to vector<256x128xf32>
      %60 = arith.mulf %50, %59 : vector<256x128xf32>
      %61 = vector.extract_strided_slice %26 {offsets = [0, 256], sizes = [256, 128], strides = [1, 1]} : vector<256x512xf32> to vector<256x128xf32>
      %cst_29 = arith.constant dense<0.000000e+00> : vector<256xf32>
      %62 = vector.multi_reduction <add>, %61, %cst_29 [1] : vector<256x128xf32> to vector<256xf32>
      %63 = vector.shape_cast %62 : vector<256xf32> to vector<256x1xf32>
      %cst_30 = arith.constant 1.280000e+02 : f32
      %64 = vector.broadcast %cst_30 : f32 to vector<256x1xf32>
      %65 = arith.divf %63, %64 : vector<256x1xf32>
      %66 = vector.broadcast %65 : vector<256x1xf32> to vector<256x128xf32>
      %67 = arith.subf %61, %66 : vector<256x128xf32>
      %68 = arith.mulf %67, %67 : vector<256x128xf32>
      %cst_31 = arith.constant dense<0.000000e+00> : vector<256xf32>
      %69 = vector.multi_reduction <add>, %68, %cst_31 [1] : vector<256x128xf32> to vector<256xf32>
      %70 = vector.shape_cast %69 : vector<256xf32> to vector<256x1xf32>
      %cst_32 = arith.constant 1.280000e+02 : f32
      %71 = vector.broadcast %cst_32 : f32 to vector<256x1xf32>
      %72 = arith.divf %70, %71 : vector<256x1xf32>
      %cst_33 = arith.constant 9.99999997E-7 : f32
      %73 = vector.broadcast %cst_33 : f32 to vector<256x1xf32>
      %74 = arith.addf %72, %73 : vector<256x1xf32>
      %75 = math.rsqrt %74 : vector<256x1xf32>
      %76 = vector.broadcast %75 : vector<256x1xf32> to vector<256x128xf32>
      %77 = arith.mulf %67, %76 : vector<256x128xf32>
      %78 = vector.extract_strided_slice %26 {offsets = [0, 384], sizes = [256, 128], strides = [1, 1]} : vector<256x512xf32> to vector<256x128xf32>
      %cst_34 = arith.constant dense<0.000000e+00> : vector<256xf32>
      %79 = vector.multi_reduction <add>, %78, %cst_34 [1] : vector<256x128xf32> to vector<256xf32>
      %80 = vector.shape_cast %79 : vector<256xf32> to vector<256x1xf32>
      %cst_35 = arith.constant 1.280000e+02 : f32
      %81 = vector.broadcast %cst_35 : f32 to vector<256x1xf32>
      %82 = arith.divf %80, %81 : vector<256x1xf32>
      %83 = vector.broadcast %82 : vector<256x1xf32> to vector<256x128xf32>
      %84 = arith.subf %78, %83 : vector<256x128xf32>
      %85 = arith.mulf %84, %84 : vector<256x128xf32>
      %cst_36 = arith.constant dense<0.000000e+00> : vector<256xf32>
      %86 = vector.multi_reduction <add>, %85, %cst_36 [1] : vector<256x128xf32> to vector<256xf32>
      %87 = vector.shape_cast %86 : vector<256xf32> to vector<256x1xf32>
      %cst_37 = arith.constant 1.280000e+02 : f32
      %88 = vector.broadcast %cst_37 : f32 to vector<256x1xf32>
      %89 = arith.divf %87, %88 : vector<256x1xf32>
      %cst_38 = arith.constant 9.99999997E-7 : f32
      %90 = vector.broadcast %cst_38 : f32 to vector<256x1xf32>
      %91 = arith.addf %89, %90 : vector<256x1xf32>
      %92 = math.rsqrt %91 : vector<256x1xf32>
      %93 = vector.broadcast %92 : vector<256x1xf32> to vector<256x128xf32>
      %94 = arith.mulf %84, %93 : vector<256x128xf32>
      %95 = tpu.concatenate %43, %60, %77, %94 in 1 : vector<256x128xf32>, vector<256x128xf32>, vector<256x128xf32>, vector<256x128xf32> -> vector<256x512xf32>
      %96 = arith.truncf %95 : vector<256x512xf32> to vector<256x512xbf16>
      %c0_39 = arith.constant 0 : index
      %c0_40 = arith.constant 0 : index
      %97 = vector.load %arg8[%c0_39, %c0_40] : memref<256x512xbf16, #tpu.memory_space<vmem>>, vector<256x512xbf16>
      tpu.vector_store %arg8[%c0_39, %c0_40], %96 {strides = array<i32>} : memref<256x512xbf16, #tpu.memory_space<vmem>>, vector<256x512xbf16>,
      %cst_41 = arith.constant 0.000000e+00 : f32
      %98 = vector.broadcast %cst_41 : f32 to vector<256x256xf32>
      %c0_42 = arith.constant 0 : index
      %c0_43 = arith.constant 0 : index
      %99 = vector.load %arg9[%c0_42, %c0_43] : memref<256x256xf32, #tpu.memory_space<vmem>>, vector<256x256xf32>
      tpu.vector_store %arg9[%c0_42, %c0_43], %98 {strides = array<i32>} : memref<256x256xf32, #tpu.memory_space<vmem>>, vector<256x256xf32>,
    } else {
    }
    %c0 = arith.constant 0 : index
    %c0_1 = arith.constant 0 : index
    %3 = vector.load %arg8[%c0, %c0_1] : memref<256x512xbf16, #tpu.memory_space<vmem>>, vector<256x512xbf16>
    %c0_2 = arith.constant 0 : index
    %c0_3 = arith.constant 0 : index
    %4 = vector.load %arg3[%c0_2, %c0_3] : memref<512x256xbf16, #tpu.memory_space<vmem>>, vector<512x256xbf16>
    %cst = arith.constant dense<0.000000e+00> : vector<256x256xf32>
    %5 = tpu.matmul %3, %4, %cst {dimension_numbers = #tpu.dot_dimension_numbers<[1], [0], [0], [1], [0, 0, 1, 1], [], []>} : vector<256x512xbf16>, vector<512x256xbf16>, vector<256x256xf32> -> vector<256x256xf32>
    %c0_4 = arith.constant 0 : index
    %c0_5 = arith.constant 0 : index
    %6 = vector.load %arg4[%c0_4, %c0_5] : memref<1x256xf32, #tpu.memory_space<vmem>>, vector<1x256xf32>
    %7 = vector.broadcast %6 : vector<1x256xf32> to vector<256x256xf32>
    %8 = arith.addf %5, %7 : vector<256x256xf32>
    %cst_6 = arith.constant 5.000000e-01 : f32
    %9 = vector.broadcast %cst_6 : f32 to vector<256x256xf32>
    %10 = arith.mulf %9, %8 : vector<256x256xf32>
    %cst_7 = arith.constant 0.707106769 : f32
    %11 = vector.broadcast %cst_7 : f32 to vector<256x256xf32>
    %12 = arith.mulf %8, %11 : vector<256x256xf32>
    %13 = math.erf %12 : vector<256x256xf32>
    %cst_8 = arith.constant 1.000000e+00 : f32
    %14 = vector.broadcast %cst_8 : f32 to vector<256x256xf32>
    %15 = arith.addf %14, %13 : vector<256x256xf32>
    %16 = arith.mulf %10, %15 : vector<256x256xf32>
    %c0_9 = arith.constant 0 : index
    %c0_10 = arith.constant 0 : index
    %17 = vector.load %arg9[%c0_9, %c0_10] : memref<256x256xf32, #tpu.memory_space<vmem>>, vector<256x256xf32>
    %18 = arith.truncf %16 : vector<256x256xf32> to vector<256x256xbf16>
    %c0_11 = arith.constant 0 : index
    %c0_12 = arith.constant 0 : index
    %19 = vector.load %arg5[%c0_11, %c0_12] : memref<256x256xbf16, #tpu.memory_space<vmem>>, vector<256x256xbf16>
    %cst_13 = arith.constant dense<0.000000e+00> : vector<256x256xf32>
    %20 = tpu.matmul %18, %19, %cst_13 {dimension_numbers = #tpu.dot_dimension_numbers<[1], [0], [0], [1], [0, 0, 1, 1], [], []>} : vector<256x256xbf16>, vector<256x256xbf16>, vector<256x256xf32> -> vector<256x256xf32>
    %21 = arith.addf %17, %20 : vector<256x256xf32>
    %c0_14 = arith.constant 0 : index
    %c0_15 = arith.constant 0 : index
    %22 = vector.load %arg9[%c0_14, %c0_15] : memref<256x256xf32, #tpu.memory_space<vmem>>, vector<256x256xf32>
    tpu.vector_store %arg9[%c0_14, %c0_15], %21 {strides = array<i32>} : memref<256x256xf32, #tpu.memory_space<vmem>>, vector<256x256xf32>,
    %c1_i32 = arith.constant 1 : i32
    %23 = arith.cmpi eq, %arg1, %c1_i32 : i32
    %24 = arith.extui %23 : i1 to i32
    %c0_i32_16 = arith.constant 0 : i32
    %25 = arith.cmpi ne, %24, %c0_i32_16 : i32
    scf.if %25 {
      %c0_17 = arith.constant 0 : index
      %c0_18 = arith.constant 0 : index
      %26 = vector.load %arg9[%c0_17, %c0_18] : memref<256x256xf32, #tpu.memory_space<vmem>>, vector<256x256xf32>
      %c0_19 = arith.constant 0 : index
      %c0_20 = arith.constant 0 : index
      %27 = vector.load %arg6[%c0_19, %c0_20] : memref<1x256xf32, #tpu.memory_space<vmem>>, vector<1x256xf32>
      %28 = vector.broadcast %27 : vector<1x256xf32> to vector<256x256xf32>
      %29 = arith.addf %26, %28 : vector<256x256xf32>
      %c0_21 = arith.constant 0 : index
      %c0_22 = arith.constant 0 : index
      %30 = vector.load %arg7[%c0_21, %c0_22] : memref<256x256xf32, #tpu.memory_space<vmem>>, vector<256x256xf32>
      tpu.vector_store %arg7[%c0_21, %c0_22], %29 {strides = array<i32>} : memref<256x256xf32, #tpu.memory_space<vmem>>, vector<256x256xf32>,
    } else {
    }
    return
  }
  func.func @transform_0(%arg0: i32, %arg1: i32) -> (i32, i32) {
    %c0_i32 = arith.constant 0 : i32
    %c0_i32_0 = arith.constant 0 : i32
    return %arg0, %c0_i32 : i32, i32
  }
  func.func @transform_1(%arg0: i32, %arg1: i32) -> (i32, i32) {
    %c0_i32 = arith.constant 0 : i32
    %c0_i32_0 = arith.constant 0 : i32
    return %c0_i32, %arg1 : i32, i32
  }
  func.func @transform_2(%arg0: i32, %arg1: i32) -> (i32, i32) {
    %c0_i32 = arith.constant 0 : i32
    %c0_i32_0 = arith.constant 0 : i32
    return %c0_i32, %arg1 : i32, i32
  }
  func.func @transform_3(%arg0: i32, %arg1: i32) -> (i32, i32) {
    %c0_i32 = arith.constant 0 : i32
    %c0_i32_0 = arith.constant 0 : i32
    return %arg1, %c0_i32 : i32, i32
  }
  func.func @transform_4(%arg0: i32, %arg1: i32) -> (i32, i32) {
    %c0_i32 = arith.constant 0 : i32
    %c0_i32_0 = arith.constant 0 : i32
    %c0_i32_1 = arith.constant 0 : i32
    return %c0_i32, %c0_i32_0 : i32, i32
  }
  func.func @transform_5(%arg0: i32, %arg1: i32) -> (i32, i32) {
    %c0_i32 = arith.constant 0 : i32
    %c0_i32_0 = arith.constant 0 : i32
    return %arg0, %c0_i32 : i32, i32
  }
}

</mosaic_0001>

<bundles_post_ra>
// kernel: tpu_custom_call.1
= control target key start
LH: loop header
LB: loop body
LE: loop exit
PB: predicated region body
PF: predicated region fallthrough
CT: control target
= control target key end

     0   :  { %s7756_s0 = inlined_call_operand.hbm [shape: f32[512,512], index: 0, kind: input, shape index: {}]   ;;  %s7757_s1 = inlined_call_operand.hbm [shape: bf16[512,512], index: 1, kind: input, shape index: {}]   ;;  %s7758_s2 = inlined_call_operand.vmem [shape: f32[1,512], index: 2, kind: input, shape index: {}]   ;;  %s7759_s3 = inlined_call_operand.hbm [shape: bf16[512,256], index: 3, kind: input, shape index: {}]   ;;  %s7760_s4 = inlined_call_operand.vmem [shape: f32[1,256], index: 4, kind: input, shape index: {}]   ;;  %s7761_s5 = inlined_call_operand.hbm [shape: f32[512,256], index: 5, kind: output, shape index: {}]  }
   0x1   :  { %7825 = sst [smem:[#allocation42_spill]] %s7756_s0 }
   0x2   :  { %7826 = sst [smem:[#allocation43_spill]] %s7757_s1 }
   0x3   :  { %7827 = sst [smem:[#allocation44_spill]] %s7760_s4 }
   0x4   :  { %7828 = sst [smem:[#allocation45_spill]] %s7761_s5 }
   0x5   :  { %10 = vsyncpa [#allocation5], 0 }
   0x6   :  { %12 = vsyncpa [#allocation5 + $0x1], 0 }
   0x7   :  { %13 = vsyncpa [#allocation8], 0 }
   0x8   :  { %15 = vsyncpa [#allocation8 + $0x1], 0 }
   0x9   :  { %16 = vsyncpa [#allocation6], 0 }
   0xa   :  { %18 = vsyncpa [#allocation6 + $0x1], 0  ;;  %s5424_s18 = smov 0   ;;  %s5426_s19 = smov 0  }
   0xb   :  { %s5428_s20 = smov 0   ;;  %s5430_s21 = smov 0  }
   0xc   :  { %s5432_s22 = smov 0   ;;  %s5434_s23 = smov 0  }
   0xd   :  { %s5436_s24 = smov 0   ;;  %s5438_s25 = smov 0  }
   0xe   :  { %s5440_s26 = smov 0   ;;  %s5442_s27 = smov 0  }
   0xf   :  { %s5444_s28 = smov 0  }
  0x10 LB: > { %7829 = sst [smem:[#allocation14_spill]] %s5360_s23  ;;  %s33_s29 = sadd.s32 1, %s5372_s26  ;;  %s5380_s28 = sphi %s5444_s28, %s24_s28   ;;  %s5376_s27 = sphi %s5442_s27, %s7973_s27   ;;  %s5372_s26 = sphi %s5440_s26, %s7972_s26   ;;  %s5368_s25 = sphi %s5438_s25, %s7963_s25   ;;  %s5364_s24 = sphi %s5436_s24, %s7971_s24   ;;  %s5360_s23 = sphi %s5434_s23, %s7962_s23   ;;  %s5356_s22 = sphi %s5432_s22, %s7970_s22   ;;  %s5352_s21 = sphi %s5430_s21, %s7969_s21   ;;  %s5348_s20 = sphi %s5428_s20, %s7968_s20   ;;  %s5344_s19 = sphi %s5426_s19, %s7967_s19   ;;  %s5340_s18 = sphi %s5424_s18, %s7966_s18  }
  0x11   : > { %7830 = sst [smem:[#allocation15_spill]] %s5368_s25  ;;  %p7764_p0 = scmp.eq.s32.totalorder %s5380_s28, 0 }
  0x12   : > { %7831 = sst [smem:[#allocation16_spill]] %s5376_s27  ;;  %p5481_p1 = scmp.ge.s32.totalorder %s33_s29, 2 }
  0x13   : > { %s69_s6 = sadd.s32 1, %s5348_s20  ;;  %p76_p2 = scmp.ne.s32.totalorder %s5348_s20, %s5344_s19 }
  0x14   : > { %s7975_s29 = smov (%p5481_p1, %s33_s29), 0  ;;  %p7763_p5 = scmp.lt.s32.totalorder %s5380_s28, 4 }
  0x15   : > { %7833 = sst [smem:[#allocation17_spill]] %s7975_s29  ;;  %p78_p4 = por %p76_p2, %p7764_p0 }
  0x16   : > { %s66_s7 = ssub.s32 %s5372_s26, %s7975_s29  ;;  %s230_s8 = sand.u32 1, %s5380_s28  }
  0x17   : > { %p67_p6 = scmp.eq.s32.totalorder %s66_s7, 0  ;;  %s7762_s9 = sand.u32 1, %s5348_s20  }
  0x18   : > { %s4232_s11 = sshll.u32 %s7762_s9, 9  ;;  %s4351_s12 = sshll.u32 %s5372_s26, 7 }
  0x19   : > { %s5502_s10 = scalar_select %p67_p6, %s5348_s20, %s69_s6  }
  0x1a   : > { %s7835_s1 = sld [smem:[#allocation43_spill]]  ;;  %s234_s16 = scalar_lea.vmem [#allocation7], %s4232_s11 }
  0x1b   : > { %7834 = sst [smem:[#allocation18_spill]] %s5502_s10  ;;  %s241_s17 = sshll.u32 %s234_s16, 4  ;;  %s5518_s17 = int_to_ptr.vmem [resolvable:$true] %s241_s17 }
  0x1c   : > { %p5514_p7 = pnand %p7763_p5, %p78_p4  ;;  %s5521_s6 = scalar_lea.sflag [#allocation8], %s230_s8 }
  0x1e   : > { %p7768_p10 = pneg %p5514_p7 }
  0x20   : > { %s5510_s15 = scalar_lea.hbm %s7835_s1, %s4351_s12  ;;  %s5169_s14 = scalar_lea.hbm %s7835_s1, 16384 }
  0x21   : > { %s5164_s12 = scalar_lea.hbm %s5510_s15, 8192  ;;  %p5170_p13 = scmp.lt.u32.totalorder %s5510_s15, %s7835_s1 }
  0x22   : > { %p5165_p9 = scmp.ne.s32.totalorder %s5510_s15, %s5164_s12  ;;  %p5171_p2 = scmp.lt.u32.totalorder %s5169_s14, %s5164_s12 }
  0x23   : > { %p5173_p6 = scmp.lt.u32.totalorder %s5164_s12, %s5510_s15 }
  0x24   : > { %p5167_p11 = pnand %p7768_p10, %p5165_p9  ;;  %p5172_p4 = por %p5171_p2, %p5170_p13 }
  0x26   : > { %p5168_p12 = pneg %p5167_p11  ;;  %p5174_p5 = por %p5173_p6, %p5172_p4 }
  0x28   : > { %p5175_p3 = pnand %p5174_p5, %p5168_p12 }
  0x2a   : > { %5178 = shalt.err (!%p5175_p3)
}
  0x2b   : > { %s5179_s8 = scalar_lea.vmem %s5518_s17, 8192  ;;  %s5382_s11 = smov [#allocation7]  }
  0x2c   : > { %p5180_p9 = scmp.ne.s32.totalorder %s5518_s17, %s5179_s8  ;;  %s5184_s13 = sshll.u32 %s5382_s11, 4  ;;  %s5185_s13 = int_to_ptr.vmem [resolvable:$false] %s5184_s13 }
  0x2d   : > { %s5186_s9 = scalar_lea.vmem %s5185_s13, 16384  ;;  %p5187_p8 = scmp.lt.s32.totalorder %s5518_s17, %s5185_s13 }
  0x2e   : > { %p5182_p11 = pnand %p5180_p9, %p7768_p10  ;;  %p5188_p13 = scmp.lt.s32.totalorder %s5186_s9, %s5179_s8 }
  0x30   : > { %p5183_p0 = pneg %p5182_p11  ;;  %p5189_p2 = por %p5188_p13, %p5187_p8 }
  0x32   : > { %p5190_p4 = pnand %p5189_p2, %p5183_p0 }
  0x34   : > { %5193 = shalt.err (!%p5190_p4)
}
  0x35   : > { %s5383_s12 = smov 256   ;;  %s7765_s14 = smov 128  }
  0x36   : > { %s7766_s16 = smov 8   ;;  %p279_p0 = scmp.lt.s32.totalorder %s5380_s28, 5 }
  0x37   : > { %4530 = dma.hbm_to_vmem [thread:$0]  (!%p5514_p7), %s5510_s15, 8192, %s5518_s17, %s5521_s6, %s5383_s12, %s7765_s14, %s7766_s16  }
  0x38   : > { %p7837_p3 = scmp.ge.s32.totalorder %s5380_s28, 1  ;;  %s5559_s11 = sadd.s32 4294967295, %s5380_s28  }
  0x39   : > { %s4225_s13 = sadd.s32 4294967294, %s5380_s28   ;;  %s36_s9 = sadd.s32 1, %s5376_s27 }
  0x3a   : > { %p5554_p5 = pnand %p7837_p3, %p279_p0  ;;  %s43_s1 = sadd.s32 1, %s5360_s23 }
  0x3b   : > { %s7977_s9 = smov (!%p5481_p1, %s36_s9), %s5376_s27  ;;  %p50_p8 = scmp.ne.s32.totalorder %s5360_s23, %s5356_s22 }
  0x3c   : > { %s7838_s8 = scalar_select %p5554_p5, 1, 0 }
  0x3d   : > { %p56_p12 = scmp.ne.s32.totalorder %s5356_s22, %s5352_s21  ;;  %p38_p6 = scmp.ge.s32.totalorder %s7977_s9, 2 }
  0x3e   : > { %p57_p9 = scmp.eq.s32.totalorder %s5559_s11, 0  ;;  %p7839_p11 = scmp.eq.s32.totalorder %s5380_s28, 0 }
  0x3f   : > { %p179_p2 = scmp.eq.s32.totalorder %s5559_s11, 3  ;;  %s7979_s9 = smov (%p38_p6, %s7977_s9), 0 }
  0x40   : > { %p5574_p13 = por %p7839_p11, %p50_p8  ;;  %7841 = sst [smem:[#allocation19_spill]] %s7979_s9 }
  0x41   : > { %p5584_p1 = por %p57_p9, %p56_p12  ;;  %p7843_p4 = scmp.ne.s32.totalorder %s5344_s19, %s5340_s18 }
  0x42   : > { %s40_s12 = ssub.s32 %s5376_s27, %s7979_s9  ;;  %p5597_p3 = por %p179_p2, %p50_p8 }
  0x43   : > { %s7842_s30 = scalar_select %p5584_p1, 1, 0 }
  0x44   : > { %p5591_p0 = por %p7843_p4, %p57_p9  ;;  %p41_p11 = scmp.eq.s32.totalorder %s40_s12, 0 }
  0x45   : > { %s7845_s14 = scalar_select %p5597_p3, 1, 0 }
  0x46   : > { %s7844_s17 = scalar_select %p5591_p0, 1, 0 }
  0x47   : > { %p185_p6 = scmp.eq.s32.totalorder %s4225_s13, 3  ;;  %s208_s16 = sand.u32 1, %s5360_s23  }
  0x48   : > { %s4350_s29 = sshll.u32 %s5376_s27, 14  ;;  %s4228_s18 = sshll.u32 %s208_s16, 10 }
  0x49   : > { %s5604_s10 = scalar_select %p41_p11, %s5360_s23, %s43_s1  }
  0x4a   : > { %p5609_p10 = por %p185_p6, %p56_p12  ;;  %s7848_s0 = sld [smem:[#allocation42_spill]] }
  0x4b   : > { %7846 = sst [smem:[#allocation20_spill]] %s5604_s10  ;;  %p7849_p8 = scmp.lt.s32.totalorder %s5380_s28, 4 }
  0x4c   : > { %s7847_s5 = scalar_select %p5609_p10, 1, 0 }
  0x4d   : > { %p5622_p9 = pnand %p7849_p8, %p5574_p13  ;;  %s212_s13 = scalar_lea.vmem [#allocation4], %s4228_s18 }
  0x4e   : > { %s220_s12 = sshll.u32 %s212_s13, 4  ;;  %s7851_s27 = sand.u32 1, %s5348_s20   ;;  %s5626_s12 = int_to_ptr.vmem [resolvable:$true] %s220_s12 }
  0x4f   : > { %s5630_s4 = sshll.u32 %s7851_s27, 8  ;;  %s5632_s25 = scalar_lea.sflag [#allocation5], %s208_s16 }
  0x50   : > { %s5616_s9 = scalar_lea.hbm %s7848_s0, %s4350_s29  ;;  %p5196_p2 = pneg %p5622_p9 }
  0x51   : > { %s5194_s29 = scalar_lea.hbm %s5616_s9, 16384  ;;  %s5199_s18 = scalar_lea.hbm %s7848_s0, 32768 }
  0x52   : > { %p5195_p12 = scmp.ne.s32.totalorder %s5616_s9, %s5194_s29  ;;  %p5200_p11 = scmp.lt.u32.totalorder %s5616_s9, %s7848_s0 }
  0x53   : > { %p5201_p6 = scmp.lt.u32.totalorder %s5199_s18, %s5194_s29  ;;  %p5203_p10 = scmp.lt.u32.totalorder %s5194_s29, %s5616_s9 }
  0x54   : > { %p5197_p13 = pnand %p5196_p2, %p5195_p12 }
  0x55   : > { %p5202_p8 = por %p5201_p6, %p5200_p11 }
  0x56   : > { %p5198_p4 = pneg %p5197_p13 }
  0x57   : > { %p5204_p3 = por %p5203_p10, %p5202_p8 }
  0x59   : > { %p5205_p0 = pnand %p5204_p3, %p5198_p4 }
  0x5b   : > { %5208 = shalt.err (!%p5205_p0)
}
  0x5c   : > { %s5209_s27 = scalar_lea.vmem %s5626_s12, 16384  ;;  %s5386_s10 = smov [#allocation4]  }
  0x5d   : > { %p5210_p12 = scmp.ne.s32.totalorder %s5626_s12, %s5209_s27  ;;  %s5214_s16 = sshll.u32 %s5386_s10, 4  ;;  %s5215_s16 = int_to_ptr.vmem [resolvable:$false] %s5214_s16 }
  0x5e   : > { %s5216_s23 = scalar_lea.vmem %s5215_s16, 32768  ;;  %p5217_p5 = scmp.lt.s32.totalorder %s5626_s12, %s5215_s16 }
  0x5f   : > { %p5212_p13 = pnand %p5210_p12, %p5196_p2  ;;  %p5218_p11 = scmp.lt.s32.totalorder %s5216_s23, %s5209_s27 }
  0x61   : > { %p5213_p1 = pneg %p5212_p13  ;;  %p5219_p6 = por %p5218_p11, %p5217_p5 }
  0x63   : > { %p5220_p10 = pnand %p5219_p6, %p5213_p1 }
  0x65   : > { %5223 = shalt.err (!%p5220_p10)
}
  0x66   : > { %s5387_s29 = smov 512   ;;  %s5388_s15 = smov 32  }
  0x67   : > { %4527 = dma.hbm_to_vmem [thread:$0]  (!%p5622_p9), %s5616_s9, 16384, %s5626_s12, %s5632_s25, %s5387_s29, %s5387_s29, %s5388_s15  }
  0x68   : > { %s4353_s18 = sshll.u32 %s5372_s26, 12  ;;  %s263_s27 = scalar_lea.vmem [#allocation9], %s5630_s4 }
  0x69   : > { %s5664_s16 = scalar_lea.hbm %s7759_s3, %s4353_s18  ;;  %s271_s23 = sshll.u32 %s263_s27, 4  ;;  %s5667_s23 = int_to_ptr.vmem [resolvable:$true] %s271_s23 }
  0x6a   : > { %s5224_s0 = scalar_lea.hbm %s5664_s16, 4096  ;;  %p7852_p1 = pneg %p5514_p7 }
  0x6b   : > { %p5225_p5 = scmp.ne.s32.totalorder %s5664_s16, %s5224_s0  ;;  %s5229_s12 = scalar_lea.hbm %s7759_s3, 8192 }
  0x6c   : > { %p5230_p9 = scmp.lt.u32.totalorder %s5664_s16, %s7759_s3  ;;  %p5231_p2 = scmp.lt.u32.totalorder %s5229_s12, %s5224_s0 }
  0x6d   : > { %p5227_p0 = pnand %p5225_p5, %p7852_p1  ;;  %p5233_p8 = scmp.lt.u32.totalorder %s5224_s0, %s5664_s16 }
  0x6e   : > { %p5232_p4 = por %p5231_p2, %p5230_p9 }
  0x6f   : > { %p5228_p3 = pneg %p5227_p0 }
  0x70   : > { %p5234_p12 = por %p5233_p8, %p5232_p4 }
  0x72   : > { %p5235_p13 = pnand %p5234_p12, %p5228_p3 }
  0x74   : > { %5238 = shalt.err (!%p5235_p13)
}
  0x75   : > { %s5239_s4 = scalar_lea.vmem %s5667_s23, 4096  ;;  %p7853_p6 = pmov %p7852_p1 }
  0x76   : > { %p5240_p11 = scmp.ne.s32.totalorder %s5667_s23, %s5239_s4  ;;  %s5389_s15 = smov [#allocation9]  }
  0x77   : > { %s5244_s18 = sshll.u32 %s5389_s15, 4  ;;  %s5245_s18 = int_to_ptr.vmem [resolvable:$false] %s5244_s18 }
  0x78   : > { %p5242_p10 = pnand %p5240_p11, %p7853_p6  ;;  %s5246_s13 = scalar_lea.vmem %s5245_s18, 8192 }
  0x79   : > { %p5247_p1 = scmp.lt.s32.totalorder %s5667_s23, %s5245_s18  ;;  %p5248_p0 = scmp.lt.s32.totalorder %s5246_s13, %s5239_s4 }
  0x7a   : > { %p5243_p5 = pneg %p5242_p10 }
  0x7b   : > { %p5249_p9 = por %p5248_p0, %p5247_p1 }
  0x7d   : > { %p5250_p2 = pnand %p5249_p9, %p5243_p5 }
  0x7f   : > { %5253 = shalt.err (!%p5250_p2)
}
  0x80   : > { %s7854_s0 = smov 8   ;;  %s7855_s10 = smov 128  }
  0x81   : > { %4533 = dma.hbm_to_vmem [thread:$0]  (!%p5514_p7), %s5664_s16, 4096, %s5667_s23, %s5521_s6, %s7855_s10, %s7855_s10, %s7854_s0  }
  0x82   : > { %p7856_p3 = scmp.ne.s32.totalorder %s7838_s8, 0 }
  0x84   : > { %283 = sbr.rel (%p7856_p3) target bundleno = 1850 (0x73a), region = 40 }
  0x8b   : > { %s5699_s27 = sand.u32 1, %s5356_s22   ;;  %p7857_p4 = scmp.ne.s32.totalorder %s7842_s30, 0 }
  0x8c   : > { %s4240_s9 = sshll.u32 %s5699_s27, 10  ;;  %s286_s1 = scalar_lea.sflag [#allocation5], %s5699_s27 }
  0x8d   : > { %s5703_s12 = scalar_lea.vmem [#allocation4], %s4240_s9 }
  0x8e   : > { %5327 = dma.done.wait (%p7857_p4), %s286_s1, 16384  }
  0x8f   : > { %5329 = vsyncadd (%p7857_p4), %s286_s1, 4294950912  ;;  %s294_s7 = sand.u32 1, %s5559_s11   ;;  %s296_s6 = sand.u32 1, %s5344_s19  }
  0x90   : > { %s4241_s8 = sshll.u32 %s296_s6, 9  ;;  %s295_s16 = scalar_lea.sflag [#allocation8], %s294_s7 }
  0x91   : > { %s5711_s23 = scalar_lea.vmem [#allocation7], %s4241_s8  ;;  %p7858_p7 = scmp.ne.s32.totalorder %s7844_s17, 0 }
  0x93   : > { %5331 = dma.done.wait (%p7858_p7), %s295_s16, 12288  }
  0x94   : > { %5333 = vsyncadd (%p7858_p7), %s295_s16, 4294955008  ;;  %s4242_s25 = sshll.u32 %s296_s6, 8  ;;  %s4243_s29 = sshll.u32 %s5699_s27, 9 }
  0x95   : > { %s4244_s30 = sshll.u32 %s5364_s24, 1  ;;  %s5725_s18 = scalar_lea.vmem [#allocation9], %s4242_s25 }
  0x96   : > { %p351_p8 = scmp.lt.s32.totalorder %s4244_s30, 3  ;;  %s5727_s13 = scalar_lea.vmem [#allocation10], %s4243_s29 }
  0x97   : > { %p4245_p12 = scmp.ne.s32.totalorder %s5364_s24, 0 }
  0x98   : > { %s7981_s30 = smov (!%p351_p8, %s4244_s30), 3 }
  0x99   : > { %s353_s15 = scalar_lea.vmem %s7758_s2, %s7981_s30  ;;  %360 = sbr.rel (%p4245_p12) target bundleno = 1107 (0x453), region = 56 }
  0xa0   : > { %v5731_v0 = vld [vmem:[%s5703_s12] sm:$0xff]  ;;  %v5859_v32 = vld [vmem:[%s5703_s12 + $0x8] sm:$0xff] }
  0xa1   : > { %v5734_v1 = vld [vmem:[%s5703_s12 + $0x40] sm:$0xff]  ;;  %489 = vadd.xlane.f32.xlu0 %v5731_v0  ;;  %v5862_v33 = vld [vmem:[%s5703_s12 + $0x28] sm:$0xff] }
  0xa2   : > { %493 = vadd.xlane.f32.xlu1 %v5734_v1  ;;  %v5739_v2 = vld [vmem:[%s5703_s12 + $0x20] sm:$0xff]  ;;  %v5867_v34 = vld [vmem:[%s5703_s12 + $0x48] sm:$0xff] }
  0xa3   : > { %v5742_v3 = vld [vmem:[%s5703_s12 + $0x60] sm:$0xff]  ;;  %v5870_v35 = vld [vmem:[%s5703_s12 + $0x68] sm:$0xff] }
  0xa4   : > { %v5747_v4 = vld [vmem:[%s5703_s12 + $0x80] sm:$0xff]  ;;  %v5875_v36 = vld [vmem:[%s5703_s12 + $0x88] sm:$0xff] }
  0xa5   : > { %491 = vadd.xlane.f32.xlu0 %v5739_v2  ;;  %v5750_v5 = vld [vmem:[%s5703_s12 + $0xa0] sm:$0xff]  ;;  %v5878_v37 = vld [vmem:[%s5703_s12 + $0xa8] sm:$0xff] }
  0xa6   : > { %495 = vadd.xlane.f32.xlu1 %v5742_v3  ;;  %v5755_v6 = vld [vmem:[%s5703_s12 + $0xc0] sm:$0xff]  ;;  %v5883_v38 = vld [vmem:[%s5703_s12 + $0xc8] sm:$0xff] }
  0xa7   : > { %v5758_v7 = vld [vmem:[%s5703_s12 + $0xe0] sm:$0xff]  ;;  %v5886_v39 = vld [vmem:[%s5703_s12 + $0xe8] sm:$0xff] }
  0xa8   : > { %v5763_v8 = vld [vmem:[%s5703_s12 + $0x100] sm:$0xff]  ;;  %v5891_v40 = vld [vmem:[%s5703_s12 + $0x108] sm:$0xff] }
  0xa9   : > { %497 = vadd.xlane.f32.xlu0 %v5747_v4  ;;  %v5766_v9 = vld [vmem:[%s5703_s12 + $0x120] sm:$0xff]  ;;  %v5894_v41 = vld [vmem:[%s5703_s12 + $0x128] sm:$0xff] }
  0xaa   : > { %499 = vadd.xlane.f32.xlu1 %v5750_v5  ;;  %v5771_v10 = vld [vmem:[%s5703_s12 + $0x140] sm:$0xff]  ;;  %v5899_v42 = vld [vmem:[%s5703_s12 + $0x148] sm:$0xff] }
  0xab   : > { %v5774_v11 = vld [vmem:[%s5703_s12 + $0x160] sm:$0xff]  ;;  %v5902_v43 = vld [vmem:[%s5703_s12 + $0x168] sm:$0xff] }
  0xac   : > { %v5779_v12 = vld [vmem:[%s5703_s12 + $0x180] sm:$0xff] }
  0xad   : > { %501 = vadd.xlane.f32.xlu0 %v5755_v6  ;;  %v5782_v13 = vld [vmem:[%s5703_s12 + $0x1a0] sm:$0xff] }
  0xae   : > { %503 = vadd.xlane.f32.xlu1 %v5758_v7  ;;  %v5787_v14 = vld [vmem:[%s5703_s12 + $0x1c0] sm:$0xff] }
  0xaf   : > { %v5790_v15 = vld [vmem:[%s5703_s12 + $0x1e0] sm:$0xff] }
  0xb0   : > { %v5795_v16 = vld [vmem:[%s5703_s12 + $0x200] sm:$0xff] }
  0xb1   : > { %505 = vadd.xlane.f32.xlu0 %v5763_v8  ;;  %v5798_v17 = vld [vmem:[%s5703_s12 + $0x220] sm:$0xff] }
  0xb2   : > { %507 = vadd.xlane.f32.xlu1 %v5766_v9  ;;  %v5803_v18 = vld [vmem:[%s5703_s12 + $0x240] sm:$0xff] }
  0xb3   : > { %v5806_v19 = vld [vmem:[%s5703_s12 + $0x260] sm:$0xff] }
  0xb4   : > { %v5811_v20 = vld [vmem:[%s5703_s12 + $0x280] sm:$0xff] }
  0xb5   : > { %509 = vadd.xlane.f32.xlu0 %v5771_v10  ;;  %v5814_v21 = vld [vmem:[%s5703_s12 + $0x2a0] sm:$0xff] }
  0xb6   : > { %511 = vadd.xlane.f32.xlu1 %v5774_v11  ;;  %v5819_v22 = vld [vmem:[%s5703_s12 + $0x2c0] sm:$0xff] }
  0xb7   : > { %v5822_v23 = vld [vmem:[%s5703_s12 + $0x2e0] sm:$0xff] }
  0xb8   : > { %v5827_v24 = vld [vmem:[%s5703_s12 + $0x300] sm:$0xff] }
  0xb9   : > { %513 = vadd.xlane.f32.xlu0 %v5779_v12  ;;  %v5830_v25 = vld [vmem:[%s5703_s12 + $0x320] sm:$0xff] }
  0xba   : > { %515 = vadd.xlane.f32.xlu1 %v5782_v13  ;;  %v5835_v26 = vld [vmem:[%s5703_s12 + $0x340] sm:$0xff] }
  0xbb   : > { %v5838_v27 = vld [vmem:[%s5703_s12 + $0x360] sm:$0xff] }
  0xbc   : > { %v5843_v28 = vld [vmem:[%s5703_s12 + $0x380] sm:$0xff] }
  0xbd   : > { %517 = vadd.xlane.f32.xlu0 %v5787_v14  ;;  %v5846_v29 = vld [vmem:[%s5703_s12 + $0x3a0] sm:$0xff] }
  0xbe   : > { %519 = vadd.xlane.f32.xlu1 %v5790_v15  ;;  %v5851_v30 = vld [vmem:[%s5703_s12 + $0x3c0] sm:$0xff] }
  0xbf   : > { %v5854_v31 = vld [vmem:[%s5703_s12 + $0x3e0] sm:$0xff] }
  0xc1   : > { %521 = vadd.xlane.f32.xlu0 %v5795_v16 }
  0xc2   : > { %523 = vadd.xlane.f32.xlu1 %v5798_v17 }
  0xc5   : > { %525 = vadd.xlane.f32.xlu0 %v5803_v18 }
  0xc6   : > { %527 = vadd.xlane.f32.xlu1 %v5806_v19 }
  0xc9   : > { %529 = vadd.xlane.f32.xlu0 %v5811_v20 }
  0xca   : > { %531 = vadd.xlane.f32.xlu1 %v5814_v21 }
  0xcd   : > { %533 = vadd.xlane.f32.xlu0 %v5819_v22 }
  0xce   : > { %535 = vadd.xlane.f32.xlu1 %v5822_v23 }
  0xd1   : > { %537 = vadd.xlane.f32.xlu0 %v5827_v24 }
  0xd2   : > { %539 = vadd.xlane.f32.xlu1 %v5830_v25 }
  0xd5   : > { %541 = vadd.xlane.f32.xlu0 %v5835_v26 }
  0xd6   : > { %543 = vadd.xlane.f32.xlu1 %v5838_v27 }
  0xd9   : > { %545 = vadd.xlane.f32.xlu0 %v5843_v28 }
  0xda   : > { %547 = vadd.xlane.f32.xlu1 %v5846_v29 }
  0xdd   : > { %549 = vadd.xlane.f32.xlu0 %v5851_v30 }
  0xde   : > { %551 = vadd.xlane.f32.xlu1 %v5854_v31 }
  0xe1   : > { %842 = vadd.xlane.f32.xlu0 %v5859_v32 }
  0xe2   : > { %844 = vadd.xlane.f32.xlu1 %v5862_v33 }
  0xe5   : > { %846 = vadd.xlane.f32.xlu0 %v5867_v34 }
  0xe6   : > { %848 = vadd.xlane.f32.xlu1 %v5870_v35 }
  0xe9   : > { %850 = vadd.xlane.f32.xlu0 %v5875_v36 }
  0xea   : > { %852 = vadd.xlane.f32.xlu1 %v5878_v37 }
  0xed   : > { %854 = vadd.xlane.f32.xlu0 %v5883_v38 }
  0xee   : > { %856 = vadd.xlane.f32.xlu1 %v5886_v39 }
  0xf1   : > { %858 = vadd.xlane.f32.xlu0 %v5891_v40 }
  0xf2   : > { %860 = vadd.xlane.f32.xlu1 %v5894_v41 }
  0xf5   : > { %862 = vadd.xlane.f32.xlu0 %v5899_v42 }
  0xf6   : > { %864 = vadd.xlane.f32.xlu1 %v5902_v43 }
 0x12e   : > { %v490_v44 = vpop.xlane.xlu0 %489 }
 0x12f   : > { %v494_v45 = vpop.xlane.xlu1 %493  ;;  %v554_v46 = vmul.f32 0.0078125, %v490_v44 }
 0x130   : > { %v556_v47 = vmul.f32 0.0078125, %v494_v45 }
 0x131   : > { %v5907_v48 = vsub.f32 %v5731_v0, %v554_v46 }
 0x132   : > { %v5910_v49 = vsub.f32 %v5734_v1, %v556_v47  ;;  %v492_v50 = vpop.xlane.xlu0 %491 }
 0x133   : > { %v496_v51 = vpop.xlane.xlu1 %495  ;;  %v555_v52 = vmul.f32 0.0078125, %v492_v50  ;;  %v618_v53 = vmul.f32 %v5907_v48, %v5907_v48 }
 0x134   : > { %v557_v54 = vmul.f32 0.0078125, %v496_v51  ;;  %v620_v55 = vmul.f32 %v5910_v49, %v5910_v49 }
 0x135   : > { %650 = vadd.xlane.f32.xlu0 %v618_v53  ;;  %v5917_v56 = vsub.f32 %v5739_v2, %v555_v52 }
 0x136   : > { %v5920_v57 = vsub.f32 %v5742_v3, %v557_v54  ;;  %v498_v58 = vpop.xlane.xlu0 %497 }
 0x137   : > { %v500_v59 = vpop.xlane.xlu1 %499  ;;  %v558_v60 = vmul.f32 0.0078125, %v498_v58  ;;  %v619_v61 = vmul.f32 %v5917_v56, %v5917_v56 }
 0x138   : > { %v559_v62 = vmul.f32 0.0078125, %v500_v59  ;;  %v621_v63 = vmul.f32 %v5920_v57, %v5920_v57 }
 0x139   : > { %654 = vadd.xlane.f32.xlu0 %v620_v55  ;;  %652 = vadd.xlane.f32.xlu1 %v619_v61  ;;  %v5927_v0 = vsub.f32 %v5747_v4, %v558_v60 }
 0x13a   : > { %v5930_v1 = vsub.f32 %v5750_v5, %v559_v62  ;;  %v502_v2 = vpop.xlane.xlu0 %501 }
 0x13b   : > { %v504_v3 = vpop.xlane.xlu1 %503  ;;  %v560_v44 = vmul.f32 0.0078125, %v502_v2  ;;  %v622_v45 = vmul.f32 %v5927_v0, %v5927_v0 }
 0x13c   : > { %v561_v46 = vmul.f32 0.0078125, %v504_v3  ;;  %v623_v47 = vmul.f32 %v5930_v1, %v5930_v1 }
 0x13d   : > { %656 = vadd.xlane.f32.xlu1 %v621_v63  ;;  %658 = vadd.xlane.f32.xlu0 %v622_v45  ;;  %v5937_v50 = vsub.f32 %v5755_v6, %v560_v44 }
 0x13e   : > { %v5940_v4 = vsub.f32 %v5758_v7, %v561_v46  ;;  %v506_v5 = vpop.xlane.xlu0 %505 }
 0x13f   : > { %v508_v51 = vpop.xlane.xlu1 %507  ;;  %v562_v52 = vmul.f32 0.0078125, %v506_v5  ;;  %v624_v53 = vmul.f32 %v5937_v50, %v5937_v50 }
 0x140   : > { %v563_v54 = vmul.f32 0.0078125, %v508_v51  ;;  %v625_v55 = vmul.f32 %v5940_v4, %v5940_v4 }
 0x141   : > { %660 = vadd.xlane.f32.xlu1 %v623_v47  ;;  %662 = vadd.xlane.f32.xlu0 %v624_v53  ;;  %v5947_v58 = vsub.f32 %v5763_v8, %v562_v52 }
 0x142   : > { %v5950_v6 = vsub.f32 %v5766_v9, %v563_v54  ;;  %v510_v7 = vpop.xlane.xlu0 %509 }
 0x143   : > { %v512_v59 = vpop.xlane.xlu1 %511  ;;  %v564_v60 = vmul.f32 0.0078125, %v510_v7  ;;  %v626_v61 = vmul.f32 %v5947_v58, %v5947_v58 }
 0x144   : > { %v565_v62 = vmul.f32 0.0078125, %v512_v59  ;;  %v627_v63 = vmul.f32 %v5950_v6, %v5950_v6 }
 0x145   : > { %664 = vadd.xlane.f32.xlu1 %v625_v55  ;;  %666 = vadd.xlane.f32.xlu0 %v626_v61  ;;  %v5957_v2 = vsub.f32 %v5771_v10, %v564_v60 }
 0x146   : > { %v5960_v8 = vsub.f32 %v5774_v11, %v565_v62  ;;  %v514_v9 = vpop.xlane.xlu0 %513 }
 0x147   : > { %v516_v3 = vpop.xlane.xlu1 %515  ;;  %v566_v44 = vmul.f32 0.0078125, %v514_v9  ;;  %v628_v45 = vmul.f32 %v5957_v2, %v5957_v2 }
 0x148   : > { %v567_v46 = vmul.f32 0.0078125, %v516_v3  ;;  %v629_v47 = vmul.f32 %v5960_v8, %v5960_v8 }
 0x149   : > { %668 = vadd.xlane.f32.xlu1 %v627_v63  ;;  %670 = vadd.xlane.f32.xlu0 %v628_v45  ;;  %v5967_v5 = vsub.f32 %v5779_v12, %v566_v44 }
 0x14a   : > { %v5970_v10 = vsub.f32 %v5782_v13, %v567_v46  ;;  %v518_v11 = vpop.xlane.xlu0 %517 }
 0x14b   : > { %v520_v51 = vpop.xlane.xlu1 %519  ;;  %v568_v52 = vmul.f32 0.0078125, %v518_v11  ;;  %v630_v53 = vmul.f32 %v5967_v5, %v5967_v5 }
 0x14c   : > { %v569_v54 = vmul.f32 0.0078125, %v520_v51  ;;  %v631_v55 = vmul.f32 %v5970_v10, %v5970_v10 }
 0x14d   : > { %672 = vadd.xlane.f32.xlu1 %v629_v47  ;;  %674 = vadd.xlane.f32.xlu0 %v630_v53  ;;  %v5977_v7 = vsub.f32 %v5787_v14, %v568_v52 }
 0x14e   : > { %v5980_v12 = vsub.f32 %v5790_v15, %v569_v54  ;;  %v522_v13 = vpop.xlane.xlu0 %521 }
 0x14f   : > { %v524_v59 = vpop.xlane.xlu1 %523  ;;  %v570_v60 = vmul.f32 0.0078125, %v522_v13  ;;  %v632_v61 = vmul.f32 %v5977_v7, %v5977_v7 }
 0x150   : > { %v571_v62 = vmul.f32 0.0078125, %v524_v59  ;;  %v633_v63 = vmul.f32 %v5980_v12, %v5980_v12 }
 0x151   : > { %676 = vadd.xlane.f32.xlu1 %v631_v55  ;;  %678 = vadd.xlane.f32.xlu0 %v632_v61  ;;  %v5987_v9 = vsub.f32 %v5795_v16, %v570_v60 }
 0x152   : > { %v5990_v14 = vsub.f32 %v5798_v17, %v571_v62  ;;  %v526_v15 = vpop.xlane.xlu0 %525 }
 0x153   : > { %v528_v3 = vpop.xlane.xlu1 %527  ;;  %v572_v44 = vmul.f32 0.0078125, %v526_v15  ;;  %v634_v45 = vmul.f32 %v5987_v9, %v5987_v9 }
 0x154   : > { %v573_v46 = vmul.f32 0.0078125, %v528_v3  ;;  %v635_v47 = vmul.f32 %v5990_v14, %v5990_v14 }
 0x155   : > { %680 = vadd.xlane.f32.xlu1 %v633_v63  ;;  %682 = vadd.xlane.f32.xlu0 %v634_v45  ;;  %v5997_v11 = vsub.f32 %v5803_v18, %v572_v44 }
 0x156   : > { %v6000_v16 = vsub.f32 %v5806_v19, %v573_v46  ;;  %v530_v17 = vpop.xlane.xlu0 %529 }
 0x157   : > { %v532_v51 = vpop.xlane.xlu1 %531  ;;  %v574_v52 = vmul.f32 0.0078125, %v530_v17  ;;  %v636_v53 = vmul.f32 %v5997_v11, %v5997_v11 }
 0x158   : > { %v575_v54 = vmul.f32 0.0078125, %v532_v51  ;;  %v637_v55 = vmul.f32 %v6000_v16, %v6000_v16 }
 0x159   : > { %684 = vadd.xlane.f32.xlu1 %v635_v47  ;;  %686 = vadd.xlane.f32.xlu0 %v636_v53  ;;  %v6007_v13 = vsub.f32 %v5811_v20, %v574_v52 }
 0x15a   : > { %v6010_v18 = vsub.f32 %v5814_v21, %v575_v54  ;;  %v534_v19 = vpop.xlane.xlu0 %533 }
 0x15b   : > { %v536_v59 = vpop.xlane.xlu1 %535  ;;  %v576_v60 = vmul.f32 0.0078125, %v534_v19  ;;  %v638_v61 = vmul.f32 %v6007_v13, %v6007_v13 }
 0x15c   : > { %v577_v62 = vmul.f32 0.0078125, %v536_v59  ;;  %v639_v63 = vmul.f32 %v6010_v18, %v6010_v18 }
 0x15d   : > { %688 = vadd.xlane.f32.xlu1 %v637_v55  ;;  %690 = vadd.xlane.f32.xlu0 %v638_v61  ;;  %v6017_v15 = vsub.f32 %v5819_v22, %v576_v60 }
 0x15e   : > { %v6020_v20 = vsub.f32 %v5822_v23, %v577_v62  ;;  %v538_v21 = vpop.xlane.xlu0 %537 }
 0x15f   : > { %v540_v3 = vpop.xlane.xlu1 %539  ;;  %v578_v44 = vmul.f32 0.0078125, %v538_v21  ;;  %v640_v45 = vmul.f32 %v6017_v15, %v6017_v15 }
 0x160   : > { %v579_v46 = vmul.f32 0.0078125, %v540_v3  ;;  %v641_v47 = vmul.f32 %v6020_v20, %v6020_v20 }
 0x161   : > { %692 = vadd.xlane.f32.xlu1 %v639_v63  ;;  %694 = vadd.xlane.f32.xlu0 %v640_v45  ;;  %v6027_v17 = vsub.f32 %v5827_v24, %v578_v44 }
 0x162   : > { %v6030_v22 = vsub.f32 %v5830_v25, %v579_v46  ;;  %v542_v23 = vpop.xlane.xlu0 %541 }
 0x163   : > { %v544_v51 = vpop.xlane.xlu1 %543  ;;  %v580_v52 = vmul.f32 0.0078125, %v542_v23  ;;  %v642_v53 = vmul.f32 %v6027_v17, %v6027_v17 }
 0x164   : > { %v581_v54 = vmul.f32 0.0078125, %v544_v51  ;;  %v643_v55 = vmul.f32 %v6030_v22, %v6030_v22 }
 0x165   : > { %696 = vadd.xlane.f32.xlu1 %v641_v47  ;;  %698 = vadd.xlane.f32.xlu0 %v642_v53  ;;  %v6037_v19 = vsub.f32 %v5835_v26, %v580_v52  ;;  %v6067_v52 = vld [vmem:[%s5703_s12 + $0x188] sm:$0xff] }
 0x166   : > { %v6040_v24 = vsub.f32 %v5838_v27, %v581_v54  ;;  %v546_v25 = vpop.xlane.xlu0 %545  ;;  %v6079_v53 = vld [vmem:[%s5703_s12 + $0x1e8] sm:$0xff] }
 0x167   : > { %v548_v59 = vpop.xlane.xlu1 %547  ;;  %v582_v60 = vmul.f32 0.0078125, %v546_v25  ;;  %v644_v61 = vmul.f32 %v6037_v19, %v6037_v19  ;;  %v6082_v54 = vld [vmem:[%s5703_s12 + $0x208] sm:$0xff] }
 0x168   : > { %v583_v62 = vmul.f32 0.0078125, %v548_v59  ;;  %v645_v63 = vmul.f32 %v6040_v24, %v6040_v24  ;;  %v6090_v25 = vld [vmem:[%s5703_s12 + $0x248] sm:$0xff] }
 0x169   : > { %700 = vadd.xlane.f32.xlu1 %v643_v55  ;;  %702 = vadd.xlane.f32.xlu0 %v644_v61  ;;  %v6047_v21 = vsub.f32 %v5843_v28, %v582_v60  ;;  %v6087_v55 = vld [vmem:[%s5703_s12 + $0x228] sm:$0xff]  ;;  %7861 = vst [vmem:[#allocation23_spill] sm:$0xff] %v6090_v25 }
 0x16a   : > { %v6050_v26 = vsub.f32 %v5846_v29, %v583_v62  ;;  %v550_v27 = vpop.xlane.xlu0 %549  ;;  %v6095_v59 = vld [vmem:[%s5703_s12 + $0x268] sm:$0xff] }
 0x16b   : > { %v552_v3 = vpop.xlane.xlu1 %551  ;;  %v584_v44 = vmul.f32 0.0078125, %v550_v27  ;;  %v646_v45 = vmul.f32 %v6047_v21, %v6047_v21  ;;  %7862 = vst [vmem:[#allocation24_spill] sm:$0xff] %v6095_v59  ;;  %v6098_v60 = vld [vmem:[%s5703_s12 + $0x288] sm:$0xff] }
 0x16c   : > { %v585_v46 = vmul.f32 0.0078125, %v552_v3  ;;  %v647_v28 = vmul.f32 %v6050_v26, %v6050_v26  ;;  %7863 = vst [vmem:[#allocation25_spill] sm:$0xff] %v6098_v60  ;;  %v6103_v62 = vld [vmem:[%s5703_s12 + $0x2a8] sm:$0xff] }
 0x16d   : > { %704 = vadd.xlane.f32.xlu1 %v645_v63  ;;  %706 = vadd.xlane.f32.xlu0 %v646_v45  ;;  %v6057_v47 = vsub.f32 %v5851_v30, %v584_v44  ;;  %v6071_v30 = vld [vmem:[%s5703_s12 + $0x1a8] sm:$0xff]  ;;  %7864 = vst [vmem:[#allocation26_spill] sm:$0xff] %v6103_v62 }
 0x16e   : > { %v6060_v29 = vsub.f32 %v5854_v31, %v585_v46  ;;  %v6074_v31 = vld [vmem:[%s5703_s12 + $0x1c8] sm:$0xff]  ;;  %v843_v61 = vpop.xlane.xlu0 %842 }
 0x16f   : > { %7859 = vst [vmem:[#allocation21_spill] sm:$0xff] %v6057_v47  ;;  %v648_v23 = vmul.f32 %v6057_v47, %v6057_v47  ;;  %v6106_v63 = vld [vmem:[%s5703_s12 + $0x2c8] sm:$0xff]  ;;  %v845_v27 = vpop.xlane.xlu1 %844 }
 0x170   : > { %7860 = vst [vmem:[#allocation22_spill] sm:$0xff] %v6060_v29  ;;  %v649_v51 = vmul.f32 %v6060_v29, %v6060_v29  ;;  %7865 = vst [vmem:[#allocation27_spill] sm:$0xff] %v6106_v63  ;;  %v6111_v3 = vld [vmem:[%s5703_s12 + $0x2e8] sm:$0xff] }
 0x171   : > { %708 = vadd.xlane.f32.xlu1 %v647_v28  ;;  %710 = vadd.xlane.f32.xlu0 %v648_v23  ;;  %7866 = vst [vmem:[#allocation28_spill] sm:$0xff] %v6111_v3  ;;  %v6114_v44 = vld [vmem:[%s5703_s12 + $0x308] sm:$0xff] }
 0x172   : > { %7867 = vst [vmem:[#allocation29_spill] sm:$0xff] %v6114_v44  ;;  %v847_v45 = vpop.xlane.xlu0 %846  ;;  %v6119_v46 = vld [vmem:[%s5703_s12 + $0x328] sm:$0xff] }
 0x173   : > { %7868 = vst [vmem:[#allocation30_spill] sm:$0xff] %v6119_v46  ;;  %v6122_v28 = vld [vmem:[%s5703_s12 + $0x348] sm:$0xff]  ;;  %v849_v23 = vpop.xlane.xlu1 %848 }
 0x174   : > { %7869 = vst [vmem:[#allocation31_spill] sm:$0xff] %v6122_v28  ;;  %v6138_v47 = vld [vmem:[%s5703_s12 + $0x3a8] sm:$0xff] }
 0x175   : > { %712 = vadd.xlane.f32.xlu1 %v649_v51  ;;  %866 = vadd.xlane.f32.xlu0 %v6067_v52 }
 0x176   : > { %v851_v51 = vpop.xlane.xlu0 %850 }
 0x179   : > { %868 = vadd.xlane.f32.xlu1 %v6071_v30  ;;  %870 = vadd.xlane.f32.xlu0 %v6074_v31 }
 0x17d   : > { %872 = vadd.xlane.f32.xlu1 %v6079_v53  ;;  %874 = vadd.xlane.f32.xlu0 %v6082_v54 }
 0x181   : > { %876 = vadd.xlane.f32.xlu1 %v6087_v55  ;;  %878 = vadd.xlane.f32.xlu0 %v6090_v25 }
 0x185   : > { %880 = vadd.xlane.f32.xlu1 %v6095_v59  ;;  %882 = vadd.xlane.f32.xlu0 %v6098_v60  ;;  %v6130_v60 = vld [vmem:[%s5703_s12 + $0x388] sm:$0xff]  ;;  %v908_v59 = vmul.f32 0.0078125, %v847_v45 }
 0x186   : > { %7871 = vst [vmem:[#allocation33_spill] sm:$0xff] %v6130_v60 }
 0x189   : > { %884 = vadd.xlane.f32.xlu1 %v6103_v62  ;;  %886 = vadd.xlane.f32.xlu0 %v6106_v63  ;;  %v906_v63 = vmul.f32 0.0078125, %v843_v61  ;;  %v6127_v62 = vld [vmem:[%s5703_s12 + $0x368] sm:$0xff]  ;;  %v855_v61 = vpop.xlane.xlu0 %854 }
 0x18a   : > { %7870 = vst [vmem:[#allocation32_spill] sm:$0xff] %v6127_v62 }
 0x18b   : > { %v6135_v29 = vsub.f32 %v5859_v32, %v906_v63  ;;  %v909_v32 = vmul.f32 0.0078125, %v849_v23  ;;  %v910_v63 = vmul.f32 0.0078125, %v851_v51  ;;  %v912_v23 = vmul.f32 0.0078125, %v855_v61 }
 0x18d   : > { %888 = vadd.xlane.f32.xlu1 %v6111_v3  ;;  %890 = vadd.xlane.f32.xlu0 %v6114_v44  ;;  %v907_v3 = vmul.f32 0.0078125, %v845_v27  ;;  %v853_v44 = vpop.xlane.xlu1 %852  ;;  %7872 = vst [vmem:[#allocation34_spill] sm:$0xff] %v6135_v29  ;;  %v6149_v27 = vsub.f32 %v5867_v34, %v908_v59  ;;  %v970_v45 = vmul.f32 %v6135_v29, %v6135_v29 }
 0x18e   : > { %v6163_v34 = vsub.f32 %v5875_v36, %v910_v63 }
 0x18f   : > { %v972_v59 = vmul.f32 %v6149_v27, %v6149_v27 }
 0x190   : > { %v974_v36 = vmul.f32 %v6163_v34, %v6163_v34 }
 0x191   : > { %892 = vadd.xlane.f32.xlu1 %v6119_v46  ;;  %894 = vadd.xlane.f32.xlu0 %v6122_v28  ;;  %v6141_v46 = vld [vmem:[%s5703_s12 + $0x3c8] sm:$0xff]  ;;  %v6144_v28 = vsub.f32 %v5862_v33, %v907_v3  ;;  %v911_v33 = vmul.f32 0.0078125, %v853_v44  ;;  %v859_v3 = vpop.xlane.xlu0 %858  ;;  %v6171_v44 = vsub.f32 %v5883_v38, %v912_v23 }
 0x192   : > { %7873 = vst [vmem:[#allocation35_spill] sm:$0xff] %v6141_v46 }
 0x193   : > { %7874 = vst [vmem:[#allocation36_spill] sm:$0xff] %v6144_v28  ;;  %v971_v25 = vmul.f32 %v6144_v28, %v6144_v28  ;;  %v6168_v51 = vsub.f32 %v5878_v37, %v911_v33  ;;  %v976_v38 = vmul.f32 %v6171_v44, %v6171_v44 }
 0x195   : > { %896 = vadd.xlane.f32.xlu1 %v6127_v62  ;;  %898 = vadd.xlane.f32.xlu0 %v6130_v60  ;;  %v6154_v60 = vld [vmem:[%s5703_s12 + $0x3e8] sm:$0xff]  ;;  %v857_v62 = vpop.xlane.xlu1 %856  ;;  %v975_v37 = vmul.f32 %v6168_v51, %v6168_v51 }
 0x196   : > { %v913_v29 = vmul.f32 0.0078125, %v857_v62 }
 0x198   : > { %v6178_v61 = vsub.f32 %v5886_v39, %v913_v29 }
 0x199   : > { %900 = vadd.xlane.f32.xlu1 %v6138_v47  ;;  %902 = vadd.xlane.f32.xlu0 %v6141_v46  ;;  %v6160_v46 = vsub.f32 %v5870_v35, %v909_v32  ;;  %v861_v28 = vpop.xlane.xlu1 %860  ;;  %v863_v32 = vpop.xlane.xlu0 %862 }
 0x19a   : > { %v915_v62 = vmul.f32 0.0078125, %v861_v28  ;;  %v916_v63 = vmul.f32 0.0078125, %v863_v32 }
 0x19b   : > { %v973_v35 = vmul.f32 %v6160_v46, %v6160_v46 }
 0x19c   : > { %v6190_v39 = vsub.f32 %v5894_v41, %v915_v62  ;;  %v6193_v29 = vsub.f32 %v5899_v42, %v916_v63 }
 0x19d   : > { %904 = vadd.xlane.f32.xlu1 %v6154_v60  ;;  %1002 = vadd.xlane.f32.xlu0 %v970_v45  ;;  %v914_v45 = vmul.f32 0.0078125, %v859_v3  ;;  %v865_v33 = vpop.xlane.xlu1 %864  ;;  %v977_v3 = vmul.f32 %v6178_v61, %v6178_v61 }
 0x19e   : > { %7875 = vst [vmem:[#allocation37_spill] sm:$0xff] %v6190_v39  ;;  %7876 = vst [vmem:[#allocation38_spill] sm:$0xff] %v6193_v29  ;;  %v979_v23 = vmul.f32 %v6190_v39, %v6190_v39 }
 0x1a1   : > { %1004 = vadd.xlane.f32.xlu1 %v971_v25  ;;  %1006 = vadd.xlane.f32.xlu0 %v972_v59  ;;  %v6183_v25 = vsub.f32 %v5891_v40, %v914_v45  ;;  %v917_v59 = vmul.f32 0.0078125, %v865_v33 }
 0x1a3   : > { %v978_v40 = vmul.f32 %v6183_v25, %v6183_v25  ;;  %v6198_v28 = vsub.f32 %v5902_v43, %v917_v59 }
 0x1a5   : > { %1008 = vadd.xlane.f32.xlu1 %v973_v35  ;;  %1010 = vadd.xlane.f32.xlu0 %v974_v36  ;;  %7877 = vst [vmem:[#allocation39_spill] sm:$0xff] %v6198_v28  ;;  %v980_v35 = vmul.f32 %v6193_v29, %v6193_v29  ;;  %v981_v41 = vmul.f32 %v6198_v28, %v6198_v28 }
 0x1a9   : > { %1012 = vadd.xlane.f32.xlu1 %v975_v37  ;;  %1014 = vadd.xlane.f32.xlu0 %v976_v38 }
 0x1ad   : > { %1016 = vadd.xlane.f32.xlu1 %v977_v3  ;;  %1018 = vadd.xlane.f32.xlu0 %v978_v40 }
 0x1b1   : > { %1020 = vadd.xlane.f32.xlu1 %v979_v23  ;;  %1022 = vadd.xlane.f32.xlu0 %v980_v35 }
 0x1b5   : > { %1024 = vadd.xlane.f32.xlu1 %v981_v41 }
 0x1c2   : > { %v651_v42 = vpop.xlane.xlu0 %650 }
 0x1c3   : > { %v714_v36 = vmul.f32 0.0078125, %v651_v42 }
 0x1c5   : > { %v746_v45 = vadd.f32 1e-06, %v714_v36 }
 0x1c6   : > { %v653_v32 = vpop.xlane.xlu1 %652  ;;  %v655_v37 = vpop.xlane.xlu0 %654 }
 0x1c7   : > { %v715_v38 = vmul.f32 0.0078125, %v653_v32  ;;  %v716_v43 = vmul.f32 0.0078125, %v655_v37  ;;  %4636 = vrsqrt.f32 %v746_v45 }
 0x1c9   : > { %v747_v62 = vadd.f32 1e-06, %v715_v38  ;;  %v748_v63 = vadd.f32 1e-06, %v716_v43 }
 0x1ca   : > { %v657_v33 = vpop.xlane.xlu1 %656  ;;  %v659_v3 = vpop.xlane.xlu0 %658 }
 0x1cb   : > { %4638 = vrsqrt.f32 %v747_v62  ;;  %v717_v40 = vmul.f32 0.0078125, %v657_v33  ;;  %v718_v59 = vmul.f32 0.0078125, %v659_v3 }
 0x1cc   : > { %4640 = vrsqrt.f32 %v748_v63 }
 0x1cd   : > { %v749_v23 = vadd.f32 1e-06, %v717_v40  ;;  %v750_v35 = vadd.f32 1e-06, %v718_v59 }
 0x1ce   : > { %v661_v28 = vpop.xlane.xlu1 %660  ;;  %v663_v41 = vpop.xlane.xlu0 %662 }
 0x1cf   : > { %4642 = vrsqrt.f32 %v749_v23  ;;  %v719_v42 = vmul.f32 0.0078125, %v661_v28  ;;  %v720_v36 = vmul.f32 0.0078125, %v663_v41 }
 0x1d0   : > { %4644 = vrsqrt.f32 %v750_v35 }
 0x1d1   : > { %v751_v29 = vadd.f32 1e-06, %v719_v42  ;;  %v752_v32 = vadd.f32 1e-06, %v720_v36  ;;  %v4637_v38 = vpop.eup %4636 }
 0x1d2   : > { %v665_v37 = vpop.xlane.xlu1 %664  ;;  %v667_v45 = vpop.xlane.xlu0 %666  ;;  %v810_v3 = vmul.f32 %v4637_v38, %v5907_v48 }
 0x1d3   : > { %4646 = vrsqrt.f32 %v751_v29  ;;  %v721_v43 = vmul.f32 0.0078125, %v665_v37  ;;  %v722_v39 = vmul.f32 0.0078125, %v667_v45 }
 0x1d4   : > { %4648 = vrsqrt.f32 %v752_v32 }
 0x1d5   : > { %v4639_v62 = vpop.eup %4638  ;;  %v753_v33 = vadd.f32 1e-06, %v721_v43  ;;  %v754_v63 = vadd.f32 1e-06, %v722_v39 }
 0x1d6   : > { %v811_v40 = vmul.f32 %v4639_v62, %v5917_v56  ;;  %v669_v59 = vpop.xlane.xlu1 %668  ;;  %v671_v28 = vpop.xlane.xlu0 %670 }
 0x1d7   : > { %v4641_v23 = vpop.eup %4640  ;;  %4650 = vrsqrt.f32 %v753_v33  ;;  %v723_v35 = vmul.f32 0.0078125, %v669_v59  ;;  %v724_v41 = vmul.f32 0.0078125, %v671_v28 }
 0x1d8   : > { %v1898_v42 = vpack.c.bf16 %v811_v40, %v810_v3  ;;  %4652 = vrsqrt.f32 %v754_v63  ;;  %v812_v32 = vmul.f32 %v4641_v23, %v5910_v49 }
 0x1d9   : > { %v4643_v36 = vpop.eup %4642  ;;  %v755_v29 = vadd.f32 1e-06, %v723_v35  ;;  %v756_v37 = vadd.f32 1e-06, %v724_v41 }
 0x1da   : > { %1962 = vst [vmem:[#allocation2] sm:$0xff] %v1898_v42  ;;  %v813_v39 = vmul.f32 %v4643_v36, %v5920_v57  ;;  %v673_v45 = vpop.xlane.xlu1 %672  ;;  %v675_v48 = vpop.xlane.xlu0 %674 }
 0x1db   : > { %v4645_v38 = vpop.eup %4644  ;;  %4654 = vrsqrt.f32 %v755_v29  ;;  %v725_v56 = vmul.f32 0.0078125, %v673_v45  ;;  %v726_v43 = vmul.f32 0.0078125, %v675_v48 }
 0x1dc   : > { %v1902_v62 = vpack.c.bf16 %v813_v39, %v812_v32  ;;  %4656 = vrsqrt.f32 %v756_v37  ;;  %v814_v63 = vmul.f32 %v4645_v38, %v5927_v0 }
 0x1dd   : > { %v4647_v33 = vpop.eup %4646  ;;  %v757_v59 = vadd.f32 1e-06, %v725_v56  ;;  %v758_v3 = vadd.f32 1e-06, %v726_v43 }
 0x1de   : > { %1966 = vst [vmem:[#allocation2 + $0x20] sm:$0xff] %v1902_v62  ;;  %v815_v40 = vmul.f32 %v4647_v33, %v5930_v1  ;;  %v677_v28 = vpop.xlane.xlu1 %676  ;;  %v679_v49 = vpop.xlane.xlu0 %678 }
 0x1df   : > { %v4649_v23 = vpop.eup %4648  ;;  %4658 = vrsqrt.f32 %v757_v59  ;;  %v727_v57 = vmul.f32 0.0078125, %v677_v28  ;;  %v728_v35 = vmul.f32 0.0078125, %v679_v49 }
 0x1e0   : > { %v1906_v41 = vpack.c.bf16 %v815_v40, %v814_v63  ;;  %4660 = vrsqrt.f32 %v758_v3  ;;  %v816_v37 = vmul.f32 %v4649_v23, %v5937_v50 }
 0x1e1   : > { %v4651_v42 = vpop.eup %4650  ;;  %v759_v36 = vadd.f32 1e-06, %v727_v57  ;;  %v760_v29 = vadd.f32 1e-06, %v728_v35 }
 0x1e2   : > { %1970 = vst [vmem:[#allocation2 + $0x40] sm:$0xff] %v1906_v41  ;;  %v817_v32 = vmul.f32 %v4651_v42, %v5940_v4  ;;  %v681_v39 = vpop.xlane.xlu1 %680  ;;  %v683_v0 = vpop.xlane.xlu0 %682 }
 0x1e3   : > { %v4653_v45 = vpop.eup %4652  ;;  %4662 = vrsqrt.f32 %v759_v36  ;;  %v729_v1 = vmul.f32 0.0078125, %v681_v39  ;;  %v730_v48 = vmul.f32 0.0078125, %v683_v0 }
 0x1e4   : > { %v1910_v38 = vpack.c.bf16 %v817_v32, %v816_v37  ;;  %4664 = vrsqrt.f32 %v760_v29  ;;  %v818_v33 = vmul.f32 %v4653_v45, %v5947_v58 }
 0x1e5   : > { %v4655_v56 = vpop.eup %4654  ;;  %v761_v43 = vadd.f32 1e-06, %v729_v1  ;;  %v762_v62 = vadd.f32 1e-06, %v730_v48 }
 0x1e6   : > { %1974 = vst [vmem:[#allocation2 + $0x60] sm:$0xff] %v1910_v38  ;;  %v819_v59 = vmul.f32 %v4655_v56, %v5950_v6  ;;  %v685_v3 = vpop.xlane.xlu1 %684  ;;  %v687_v50 = vpop.xlane.xlu0 %686 }
 0x1e7   : > { %v4657_v63 = vpop.eup %4656  ;;  %4666 = vrsqrt.f32 %v761_v43  ;;  %v731_v4 = vmul.f32 0.0078125, %v685_v3  ;;  %v732_v40 = vmul.f32 0.0078125, %v687_v50 }
 0x1e8   : > { %v1914_v28 = vpack.c.bf16 %v819_v59, %v818_v33  ;;  %4668 = vrsqrt.f32 %v762_v62  ;;  %v820_v35 = vmul.f32 %v4657_v63, %v5957_v2 }
 0x1e9   : > { %v4659_v49 = vpop.eup %4658  ;;  %v763_v23 = vadd.f32 1e-06, %v731_v4  ;;  %v764_v57 = vadd.f32 1e-06, %v732_v40 }
 0x1ea   : > { %1978 = vst [vmem:[#allocation2 + $0x80] sm:$0xff] %v1914_v28  ;;  %v821_v41 = vmul.f32 %v4659_v49, %v5960_v8  ;;  %v689_v42 = vpop.xlane.xlu1 %688  ;;  %v691_v58 = vpop.xlane.xlu0 %690 }
 0x1eb   : > { %v4661_v36 = vpop.eup %4660  ;;  %4670 = vrsqrt.f32 %v763_v23  ;;  %v733_v6 = vmul.f32 0.0078125, %v689_v42  ;;  %v734_v29 = vmul.f32 0.0078125, %v691_v58 }
 0x1ec   : > { %v1918_v37 = vpack.c.bf16 %v821_v41, %v820_v35  ;;  %4672 = vrsqrt.f32 %v764_v57  ;;  %v822_v45 = vmul.f32 %v4661_v36, %v5967_v5 }
 0x1ed   : > { %v4663_v32 = vpop.eup %4662  ;;  %v765_v39 = vadd.f32 1e-06, %v733_v6  ;;  %v766_v0 = vadd.f32 1e-06, %v734_v29 }
 0x1ee   : > { %1982 = vst [vmem:[#allocation2 + $0xa0] sm:$0xff] %v1918_v37  ;;  %v823_v1 = vmul.f32 %v4663_v32, %v5970_v10  ;;  %v693_v48 = vpop.xlane.xlu1 %692  ;;  %v695_v2 = vpop.xlane.xlu0 %694 }
 0x1ef   : > { %v4665_v38 = vpop.eup %4664  ;;  %4674 = vrsqrt.f32 %v765_v39  ;;  %v735_v8 = vmul.f32 0.0078125, %v693_v48  ;;  %v736_v56 = vmul.f32 0.0078125, %v695_v2 }
 0x1f0   : > { %v1922_v43 = vpack.c.bf16 %v823_v1, %v822_v45  ;;  %4676 = vrsqrt.f32 %v766_v0  ;;  %v824_v3 = vmul.f32 %v4665_v38, %v5977_v7 }
 0x1f1   : > { %v4667_v62 = vpop.eup %4666  ;;  %v767_v33 = vadd.f32 1e-06, %v735_v8  ;;  %v768_v59 = vadd.f32 1e-06, %v736_v56 }
 0x1f2   : > { %1986 = vst [vmem:[#allocation2 + $0xc0] sm:$0xff] %v1922_v43  ;;  %v825_v50 = vmul.f32 %v4667_v62, %v5980_v12  ;;  %v697_v63 = vpop.xlane.xlu1 %696  ;;  %v699_v5 = vpop.xlane.xlu0 %698 }
 0x1f3   : > { %v4669_v4 = vpop.eup %4668  ;;  %4678 = vrsqrt.f32 %v767_v33  ;;  %v737_v10 = vmul.f32 0.0078125, %v697_v63  ;;  %v738_v40 = vmul.f32 0.0078125, %v699_v5 }
 0x1f4   : > { %v1926_v28 = vpack.c.bf16 %v825_v50, %v824_v3  ;;  %4680 = vrsqrt.f32 %v768_v59  ;;  %v826_v35 = vmul.f32 %v4669_v4, %v5987_v9 }
 0x1f5   : > { %v4671_v49 = vpop.eup %4670  ;;  %v769_v23 = vadd.f32 1e-06, %v737_v10  ;;  %v770_v57 = vadd.f32 1e-06, %v738_v40 }
 0x1f6   : > { %1990 = vst [vmem:[#allocation2 + $0xe0] sm:$0xff] %v1926_v28  ;;  %v827_v41 = vmul.f32 %v4671_v49, %v5990_v14  ;;  %v701_v42 = vpop.xlane.xlu1 %700  ;;  %v703_v7 = vpop.xlane.xlu0 %702 }
 0x1f7   : > { %v4673_v58 = vpop.eup %4672  ;;  %4682 = vrsqrt.f32 %v769_v23  ;;  %v739_v12 = vmul.f32 0.0078125, %v701_v42  ;;  %v740_v36 = vmul.f32 0.0078125, %v703_v7 }
 0x1f8   : > { %v1930_v6 = vpack.c.bf16 %v827_v41, %v826_v35  ;;  %4684 = vrsqrt.f32 %v770_v57  ;;  %v828_v39 = vmul.f32 %v4673_v58, %v5997_v11 }
 0x1f9   : > { %v4675_v29 = vpop.eup %4674  ;;  %v771_v37 = vadd.f32 1e-06, %v739_v12  ;;  %v772_v32 = vadd.f32 1e-06, %v740_v36 }
 0x1fa   : > { %1994 = vst [vmem:[#allocation2 + $0x100] sm:$0xff] %v1930_v6  ;;  %v829_v0 = vmul.f32 %v4675_v29, %v6000_v16  ;;  %v705_v45 = vpop.xlane.xlu1 %704  ;;  %v707_v9 = vpop.xlane.xlu0 %706 }
 0x1fb   : > { %v4677_v1 = vpop.eup %4676  ;;  %4686 = vrsqrt.f32 %v771_v37  ;;  %v741_v14 = vmul.f32 0.0078125, %v705_v45  ;;  %v742_v48 = vmul.f32 0.0078125, %v707_v9 }
 0x1fc   : > { %v1934_v2 = vpack.c.bf16 %v829_v0, %v828_v39  ;;  %4688 = vrsqrt.f32 %v772_v32  ;;  %v830_v43 = vmul.f32 %v4677_v1, %v6007_v13 }
 0x1fd   : > { %v4679_v38 = vpop.eup %4678  ;;  %v773_v8 = vadd.f32 1e-06, %v741_v14  ;;  %v774_v56 = vadd.f32 1e-06, %v742_v48 }
 0x1fe   : > { %1998 = vst [vmem:[#allocation2 + $0x120] sm:$0xff] %v1934_v2  ;;  %v831_v62 = vmul.f32 %v4679_v38, %v6010_v18  ;;  %v709_v33 = vpop.xlane.xlu1 %708  ;;  %v711_v11 = vpop.xlane.xlu0 %710 }
 0x1ff   : > { %v4681_v59 = vpop.eup %4680  ;;  %4690 = vrsqrt.f32 %v773_v8  ;;  %v743_v16 = vmul.f32 0.0078125, %v709_v33  ;;  %v744_v3 = vmul.f32 0.0078125, %v711_v11 }
 0x200   : > { %v1938_v50 = vpack.c.bf16 %v831_v62, %v830_v43  ;;  %4692 = vrsqrt.f32 %v774_v56  ;;  %v832_v10 = vmul.f32 %v4681_v59, %v6017_v15 }
 0x201   : > { %v4683_v63 = vpop.eup %4682  ;;  %v775_v5 = vadd.f32 1e-06, %v743_v16  ;;  %v776_v4 = vadd.f32 1e-06, %v744_v3 }
 0x202   : > { %2002 = vst [vmem:[#allocation2 + $0x140] sm:$0xff] %v1938_v50  ;;  %v833_v40 = vmul.f32 %v4683_v63, %v6020_v20  ;;  %v713_v28 = vpop.xlane.xlu1 %712  ;;  %v867_v13 = vpop.xlane.xlu0 %866 }
 0x203   : > { %v4685_v49 = vpop.eup %4684  ;;  %4694 = vrsqrt.f32 %v775_v5  ;;  %v745_v18 = vmul.f32 0.0078125, %v713_v28  ;;  %v918_v23 = vmul.f32 0.0078125, %v867_v13  ;;  %v7880_v5 = vld [vmem:[#allocation22_spill] sm:$0xff] }
 0x204   : > { %v1942_v57 = vpack.c.bf16 %v833_v40, %v832_v10  ;;  %4696 = vrsqrt.f32 %v776_v4  ;;  %v834_v7 = vmul.f32 %v4685_v49, %v6027_v17 }
 0x205   : > { %v4687_v35 = vpop.eup %4686  ;;  %v777_v41 = vadd.f32 1e-06, %v745_v18  ;;  %v6231_v42 = vsub.f32 %v6067_v52, %v918_v23  ;;  %v7881_v23 = vld [vmem:[#allocation24_spill] sm:$0xff] }
 0x206   : > { %2006 = vst [vmem:[#allocation2 + $0x160] sm:$0xff] %v1942_v57  ;;  %v835_v15 = vmul.f32 %v4687_v35, %v6030_v22  ;;  %v869_v58 = vpop.xlane.xlu1 %868  ;;  %v871_v20 = vpop.xlane.xlu0 %870  ;;  %v7882_v35 = vld [vmem:[#allocation25_spill] sm:$0xff] }
 0x207   : > { %v4689_v12 = vpop.eup %4688  ;;  %4698 = vrsqrt.f32 %v777_v41  ;;  %v919_v36 = vmul.f32 0.0078125, %v869_v58  ;;  %v920_v6 = vmul.f32 0.0078125, %v871_v20  ;;  %v982_v37 = vmul.f32 %v6231_v42, %v6231_v42 }
 0x208   : > { %v1946_v29 = vpack.c.bf16 %v835_v15, %v834_v7  ;;  %v836_v17 = vmul.f32 %v4689_v12, %v6037_v19 }
 0x209   : > { %v4691_v32 = vpop.eup %4690  ;;  %v6238_v39 = vsub.f32 %v6071_v30, %v919_v36  ;;  %v6241_v52 = vsub.f32 %v6074_v31, %v920_v6  ;;  %1026 = vadd.xlane.f32.xlu0 %v982_v37  ;;  %v7883_v6 = vld [vmem:[#allocation26_spill] sm:$0xff]  ;;  %v7884_v37 = vld [vmem:[#allocation27_spill] sm:$0xff] }
 0x20a   : > { %2010 = vst [vmem:[#allocation2 + $0x180] sm:$0xff] %v1946_v29  ;;  %v837_v22 = vmul.f32 %v4691_v32, %v6040_v24  ;;  %v873_v0 = vpop.xlane.xlu1 %872  ;;  %v875_v45 = vpop.xlane.xlu0 %874 }
 0x20b   : > { %v4693_v9 = vpop.eup %4692  ;;  %v921_v1 = vmul.f32 0.0078125, %v873_v0  ;;  %v922_v14 = vmul.f32 0.0078125, %v875_v45  ;;  %v983_v48 = vmul.f32 %v6238_v39, %v6238_v39  ;;  %v984_v30 = vmul.f32 %v6241_v52, %v6241_v52 }
 0x20c   : > { %v1950_v2 = vpack.c.bf16 %v837_v22, %v836_v17  ;;  %v838_v24 = vmul.f32 %v4693_v9, %v6047_v21  ;;  %v7878_v21 = vld [vmem:[#allocation23_spill] sm:$0xff] }
 0x20d   : > { %v4695_v31 = vpop.eup %4694  ;;  %v6250_v38 = vsub.f32 %v6079_v53, %v921_v1  ;;  %v6253_v19 = vsub.f32 %v6082_v54, %v922_v14  ;;  %1028 = vadd.xlane.f32.xlu1 %v983_v48  ;;  %1030 = vadd.xlane.f32.xlu0 %v984_v30  ;;  %v7885_v14 = vld [vmem:[#allocation28_spill] sm:$0xff] }
 0x20e   : > { %2014 = vst [vmem:[#allocation2 + $0x1a0] sm:$0xff] %v1950_v2  ;;  %v839_v8 = vmul.f32 %v4695_v31, %v6050_v26  ;;  %v877_v56 = vpop.xlane.xlu1 %876  ;;  %v879_v43 = vpop.xlane.xlu0 %878  ;;  %v7879_v26 = vld [vmem:[#allocation21_spill] sm:$0xff] }
 0x20f   : > { %v4697_v62 = vpop.eup %4696  ;;  %v923_v33 = vmul.f32 0.0078125, %v877_v56  ;;  %v924_v11 = vmul.f32 0.0078125, %v879_v43  ;;  %v985_v59 = vmul.f32 %v6250_v38, %v6250_v38  ;;  %v986_v54 = vmul.f32 %v6253_v19, %v6253_v19  ;;  %v7886_v2 = vld [vmem:[#allocation29_spill] sm:$0xff] }
 0x210   : > { %v1954_v53 = vpack.c.bf16 %v839_v8, %v838_v24  ;;  %v840_v63 = vmul.f32 %v4697_v62, %v7879_v26 }
 0x211   : > { %v4699_v16 = vpop.eup %4698  ;;  %v6262_v3 = vsub.f32 %v6087_v55, %v923_v33  ;;  %v6265_v50 = vsub.f32 %v7878_v21, %v924_v11  ;;  %1032 = vadd.xlane.f32.xlu1 %v985_v59  ;;  %1034 = vadd.xlane.f32.xlu0 %v986_v54  ;;  %v7887_v33 = vld [vmem:[#allocation30_spill] sm:$0xff]  ;;  %v7888_v59 = vld [vmem:[#allocation31_spill] sm:$0xff] }
 0x212   : > { %2018 = vst [vmem:[#allocation2 + $0x1c0] sm:$0xff] %v1954_v53  ;;  %v841_v4 = vmul.f32 %v4699_v16, %v7880_v5  ;;  %v881_v10 = vpop.xlane.xlu1 %880  ;;  %v883_v40 = vpop.xlane.xlu0 %882 }
 0x213   : > { %v925_v28 = vmul.f32 0.0078125, %v881_v10  ;;  %v926_v13 = vmul.f32 0.0078125, %v883_v40  ;;  %v987_v49 = vmul.f32 %v6262_v3, %v6262_v3  ;;  %v988_v55 = vmul.f32 %v6265_v50, %v6265_v50  ;;  %v7890_v40 = vld [vmem:[#allocation33_spill] sm:$0xff] }
 0x214   : > { %v1958_v18 = vpack.c.bf16 %v841_v4, %v840_v63  ;;  %v7889_v4 = vld [vmem:[#allocation32_spill] sm:$0xff] }
 0x215   : > { %v6274_v57 = vsub.f32 %v7881_v23, %v925_v28  ;;  %v6277_v41 = vsub.f32 %v7882_v35, %v926_v13  ;;  %1036 = vadd.xlane.f32.xlu1 %v987_v49  ;;  %1038 = vadd.xlane.f32.xlu0 %v988_v55 }
 0x216   : > { %2022 = vst [vmem:[#allocation2 + $0x1e0] sm:$0xff] %v1958_v18  ;;  %v885_v7 = vpop.xlane.xlu1 %884  ;;  %v887_v15 = vpop.xlane.xlu0 %886 }
 0x217   : > { %v927_v58 = vmul.f32 0.0078125, %v885_v7  ;;  %v928_v20 = vmul.f32 0.0078125, %v887_v15  ;;  %v989_v12 = vmul.f32 %v6274_v57, %v6274_v57  ;;  %v990_v36 = vmul.f32 %v6277_v41, %v6277_v41  ;;  %v7891_v15 = vld [vmem:[#allocation35_spill] sm:$0xff] }
 0x219   : > { %v6284_v29 = vsub.f32 %v7883_v6, %v927_v58  ;;  %v6287_v32 = vsub.f32 %v7884_v37, %v928_v20  ;;  %1040 = vadd.xlane.f32.xlu1 %v989_v12  ;;  %1042 = vadd.xlane.f32.xlu0 %v990_v36 }
 0x21a   : > { %v889_v17 = vpop.xlane.xlu1 %888  ;;  %v891_v22 = vpop.xlane.xlu0 %890 }
 0x21b   : > { %v929_v0 = vmul.f32 0.0078125, %v889_v17  ;;  %v930_v45 = vmul.f32 0.0078125, %v891_v22  ;;  %v991_v9 = vmul.f32 %v6284_v29, %v6284_v29  ;;  %v992_v1 = vmul.f32 %v6287_v32, %v6287_v32 }
 0x21d   : > { %v6294_v48 = vsub.f32 %v7885_v14, %v929_v0  ;;  %v6297_v30 = vsub.f32 %v7886_v2, %v930_v45  ;;  %1044 = vadd.xlane.f32.xlu1 %v991_v9  ;;  %1046 = vadd.xlane.f32.xlu0 %v992_v1  ;;  %v6339_v2 = vld [vmem:[%s5703_s12 + $0x10] sm:$0xff] }
 0x21e   : > { %v893_v31 = vpop.xlane.xlu1 %892  ;;  %v895_v24 = vpop.xlane.xlu0 %894 }
 0x21f   : > { %v931_v8 = vmul.f32 0.0078125, %v893_v31  ;;  %v932_v56 = vmul.f32 0.0078125, %v895_v24  ;;  %v993_v43 = vmul.f32 %v6294_v48, %v6294_v48  ;;  %v994_v62 = vmul.f32 %v6297_v30, %v6297_v30 }
 0x221   : > { %v6304_v11 = vsub.f32 %v7887_v33, %v931_v8  ;;  %v6307_v53 = vsub.f32 %v7888_v59, %v932_v56  ;;  %1048 = vadd.xlane.f32.xlu1 %v993_v43  ;;  %1050 = vadd.xlane.f32.xlu0 %v994_v62  ;;  %v6343_v56 = vld [vmem:[%s5703_s12 + $0x30] sm:$0xff] }
 0x222   : > { %v897_v54 = vpop.xlane.xlu1 %896  ;;  %v899_v16 = vpop.xlane.xlu0 %898  ;;  %v6346_v33 = vld [vmem:[%s5703_s12 + $0x50] sm:$0xff] }
 0x223   : > { %v933_v21 = vmul.f32 0.0078125, %v897_v54  ;;  %v934_v26 = vmul.f32 0.0078125, %v899_v16  ;;  %v995_v63 = vmul.f32 %v6304_v11, %v6304_v11  ;;  %v996_v5 = vmul.f32 %v6307_v53, %v6307_v53 }
 0x225   : > { %v6314_v10 = vsub.f32 %v7889_v4, %v933_v21  ;;  %v6317_v28 = vsub.f32 %v7890_v40, %v934_v26  ;;  %1052 = vadd.xlane.f32.xlu1 %v995_v63  ;;  %1054 = vadd.xlane.f32.xlu0 %v996_v5  ;;  %v6351_v26 = vld [vmem:[%s5703_s12 + $0x70] sm:$0xff] }
 0x226   : > { %v901_v13 = vpop.xlane.xlu1 %900  ;;  %v903_v49 = vpop.xlane.xlu0 %902  ;;  %v6354_v4 = vld [vmem:[%s5703_s12 + $0x90] sm:$0xff] }
 0x227   : > { %v935_v55 = vmul.f32 0.0078125, %v901_v13  ;;  %v936_v18 = vmul.f32 0.0078125, %v903_v49  ;;  %v997_v23 = vmul.f32 %v6314_v10, %v6314_v10  ;;  %v998_v35 = vmul.f32 %v6317_v28, %v6317_v28 }
 0x229   : > { %v6324_v7 = vsub.f32 %v6138_v47, %v935_v55  ;;  %v6327_v58 = vsub.f32 %v7891_v15, %v936_v18  ;;  %1056 = vadd.xlane.f32.xlu1 %v997_v23  ;;  %1058 = vadd.xlane.f32.xlu0 %v998_v35  ;;  %v6359_v18 = vld [vmem:[%s5703_s12 + $0xb0] sm:$0xff] }
 0x22a   : > { %v905_v20 = vpop.xlane.xlu1 %904  ;;  %v1003_v12 = vpop.xlane.xlu0 %1002 }
 0x22b   : > { %v937_v36 = vmul.f32 0.0078125, %v905_v20  ;;  %v1066_v6 = vmul.f32 0.0078125, %v1003_v12  ;;  %v999_v37 = vmul.f32 %v6324_v7, %v6324_v7  ;;  %v1000_v17 = vmul.f32 %v6327_v58, %v6327_v58  ;;  %v6362_v20 = vld [vmem:[%s5703_s12 + $0xd0] sm:$0xff] }
 0x22d   : > { %v6334_v22 = vsub.f32 %v6154_v60, %v937_v36  ;;  %v1098_v47 = vadd.f32 1e-06, %v1066_v6  ;;  %1060 = vadd.xlane.f32.xlu1 %v999_v37  ;;  %1062 = vadd.xlane.f32.xlu0 %v1000_v17  ;;  %v7892_v37 = vld [vmem:[#allocation34_spill] sm:$0xff] }
 0x22e   : > { %v1005_v0 = vpop.xlane.xlu1 %1004  ;;  %v1007_v45 = vpop.xlane.xlu0 %1006 }
 0x22f   : > { %v1067_v9 = vmul.f32 0.0078125, %v1005_v0  ;;  %v1068_v1 = vmul.f32 0.0078125, %v1007_v45  ;;  %v1001_v14 = vmul.f32 %v6334_v22, %v6334_v22  ;;  %4700 = vrsqrt.f32 %v1098_v47  ;;  %v7893_v47 = vld [vmem:[#allocation36_spill] sm:$0xff] }
 0x231   : > { %v1099_v31 = vadd.f32 1e-06, %v1067_v9  ;;  %v1100_v24 = vadd.f32 1e-06, %v1068_v1  ;;  %1064 = vadd.xlane.f32.xlu1 %v1001_v14  ;;  %1194 = vadd.xlane.f32.xlu0 %v6339_v2  ;;  %v6369_v1 = vld [vmem:[%s5703_s12 + $0xf0] sm:$0xff] }
 0x232   : > { %v1009_v60 = vpop.xlane.xlu1 %1008  ;;  %v1011_v8 = vpop.xlane.xlu0 %1010 }
 0x233   : > { %4702 = vrsqrt.f32 %v1099_v31  ;;  %v1069_v43 = vmul.f32 0.0078125, %v1009_v60  ;;  %v1070_v62 = vmul.f32 0.0078125, %v1011_v8  ;;  %v6372_v60 = vld [vmem:[%s5703_s12 + $0x110] sm:$0xff] }
 0x234   : > { %4704 = vrsqrt.f32 %v1100_v24 }
 0x235   : > { %v1101_v59 = vadd.f32 1e-06, %v1069_v43  ;;  %v1102_v54 = vadd.f32 1e-06, %v1070_v62  ;;  %1196 = vadd.xlane.f32.xlu1 %v6343_v56  ;;  %1198 = vadd.xlane.f32.xlu0 %v6346_v33 }
 0x236   : > { %v1013_v16 = vpop.xlane.xlu1 %1012  ;;  %v1015_v21 = vpop.xlane.xlu0 %1014 }
 0x237   : > { %4706 = vrsqrt.f32 %v1101_v59  ;;  %v1071_v63 = vmul.f32 0.0078125, %v1013_v16  ;;  %v1072_v5 = vmul.f32 0.0078125, %v1015_v21 }
 0x238   : > { %4708 = vrsqrt.f32 %v1102_v54 }
 0x239   : > { %v1103_v40 = vadd.f32 1e-06, %v1071_v63  ;;  %v1104_v13 = vadd.f32 1e-06, %v1072_v5  ;;  %1200 = vadd.xlane.f32.xlu1 %v6351_v26  ;;  %1202 = vadd.xlane.f32.xlu0 %v6354_v4  ;;  %v4701_v23 = vpop.eup %4700  ;;  %v6379_v63 = vld [vmem:[%s5703_s12 + $0x130] sm:$0xff] }
 0x23a   : > { %v1017_v49 = vpop.xlane.xlu1 %1016  ;;  %v1019_v55 = vpop.xlane.xlu0 %1018  ;;  %v1162_v17 = vmul.f32 %v4701_v23, %v7892_v37 }
 0x23b   : > { %4710 = vrsqrt.f32 %v1103_v40  ;;  %v1073_v35 = vmul.f32 0.0078125, %v1017_v49  ;;  %v1074_v15 = vmul.f32 0.0078125, %v1019_v55 }
 0x23c   : > { %4712 = vrsqrt.f32 %v1104_v13  ;;  %v6382_v13 = vld [vmem:[%s5703_s12 + $0x150] sm:$0xff] }
 0x23d   : > { %v4703_v12 = vpop.eup %4702  ;;  %v1105_v36 = vadd.f32 1e-06, %v1073_v35  ;;  %v1106_v6 = vadd.f32 1e-06, %v1074_v15  ;;  %1204 = vadd.xlane.f32.xlu1 %v6359_v18  ;;  %1206 = vadd.xlane.f32.xlu0 %v6362_v20  ;;  %v6389_v35 = vld [vmem:[%s5703_s12 + $0x170] sm:$0xff] }
 0x23e   : > { %v1163_v0 = vmul.f32 %v4703_v12, %v7893_v47  ;;  %v1021_v45 = vpop.xlane.xlu1 %1020  ;;  %v1023_v9 = vpop.xlane.xlu0 %1022  ;;  %v6392_v12 = vld [vmem:[%s5703_s12 + $0x190] sm:$0xff] }
 0x23f   : > { %v4705_v14 = vpop.eup %4704  ;;  %4714 = vrsqrt.f32 %v1105_v36  ;;  %v1075_v31 = vmul.f32 0.0078125, %v1021_v45  ;;  %v1076_v24 = vmul.f32 0.0078125, %v1023_v9  ;;  %v6402_v47 = vld [vmem:[%s5703_s12 + $0x1d0] sm:$0xff] }
 0x240   : > { %v1899_v8 = vpack.c.bf16 %v1163_v0, %v1162_v17  ;;  %4716 = vrsqrt.f32 %v1106_v6  ;;  %v1164_v54 = vmul.f32 %v4705_v14, %v6149_v27  ;;  %v7894_v14 = vld [vmem:[#allocation37_spill] sm:$0xff] }
 0x241   : > { %v4707_v43 = vpop.eup %4706  ;;  %v1107_v62 = vadd.f32 1e-06, %v1075_v31  ;;  %v1108_v59 = vadd.f32 1e-06, %v1076_v24  ;;  %1208 = vadd.xlane.f32.xlu1 %v6369_v1  ;;  %1210 = vadd.xlane.f32.xlu0 %v6372_v60  ;;  %v6412_v24 = vld [vmem:[%s5703_s12 + $0x210] sm:$0xff] }
 0x242   : > { %1963 = vst [vmem:[#allocation2 + $0x8] sm:$0xff] %v1899_v8  ;;  %v1165_v16 = vmul.f32 %v4707_v43, %v6160_v46  ;;  %v1025_v21 = vpop.xlane.xlu1 %1024  ;;  %v4709_v5 = vpop.eup %4708 }
 0x243   : > { %4718 = vrsqrt.f32 %v1107_v62  ;;  %v1077_v40 = vmul.f32 0.0078125, %v1025_v21  ;;  %v1166_v46 = vmul.f32 %v4709_v5, %v6163_v34  ;;  %v7895_v62 = vld [vmem:[#allocation38_spill] sm:$0xff]  ;;  %v6422_v21 = vld [vmem:[%s5703_s12 + $0x250] sm:$0xff] }
 0x244   : > { %v1903_v49 = vpack.c.bf16 %v1165_v16, %v1164_v54  ;;  %4720 = vrsqrt.f32 %v1108_v59  ;;  %v7896_v59 = vld [vmem:[#allocation39_spill] sm:$0xff]  ;;  %v6419_v16 = vld [vmem:[%s5703_s12 + $0x230] sm:$0xff] }
 0x245   : > { %v4711_v55 = vpop.eup %4710  ;;  %v1109_v23 = vadd.f32 1e-06, %v1077_v40  ;;  %1212 = vadd.xlane.f32.xlu1 %v6379_v63  ;;  %1214 = vadd.xlane.f32.xlu0 %v6382_v13  ;;  %v6427_v40 = vld [vmem:[%s5703_s12 + $0x270] sm:$0xff] }
 0x246   : > { %1967 = vst [vmem:[#allocation2 + $0x28] sm:$0xff] %v1903_v49  ;;  %v1167_v27 = vmul.f32 %v4711_v55, %v6168_v51  ;;  %v4713_v15 = vpop.eup %4712  ;;  %v6399_v51 = vld [vmem:[%s5703_s12 + $0x1b0] sm:$0xff] }
 0x247   : > { %4722 = vrsqrt.f32 %v1109_v23  ;;  %v1168_v34 = vmul.f32 %v4713_v15, %v6171_v44  ;;  %v6430_v49 = vld [vmem:[%s5703_s12 + $0x290] sm:$0xff] }
 0x248   : > { %v1907_v36 = vpack.c.bf16 %v1167_v27, %v1166_v46  ;;  %v6435_v55 = vld [vmem:[%s5703_s12 + $0x2b0] sm:$0xff] }
 0x249   : > { %v4715_v6 = vpop.eup %4714  ;;  %1216 = vadd.xlane.f32.xlu1 %v6389_v35  ;;  %1218 = vadd.xlane.f32.xlu0 %v6392_v12  ;;  %v6438_v23 = vld [vmem:[%s5703_s12 + $0x2d0] sm:$0xff] }
 0x24a   : > { %1971 = vst [vmem:[#allocation2 + $0x48] sm:$0xff] %v1907_v36  ;;  %v1169_v37 = vmul.f32 %v4715_v6, %v6178_v61  ;;  %v4717_v17 = vpop.eup %4716  ;;  %v6409_v61 = vld [vmem:[%s5703_s12 + $0x1f0] sm:$0xff] }
 0x24b   : > { %v1170_v9 = vmul.f32 %v4717_v17, %v6183_v25  ;;  %v6443_v46 = vld [vmem:[%s5703_s12 + $0x2f0] sm:$0xff] }
 0x24c   : > { %v1911_v0 = vpack.c.bf16 %v1169_v37, %v1168_v34  ;;  %v6446_v27 = vld [vmem:[%s5703_s12 + $0x310] sm:$0xff] }
 0x24d   : > { %v4719_v45 = vpop.eup %4718  ;;  %1220 = vadd.xlane.f32.xlu1 %v6399_v51  ;;  %1222 = vadd.xlane.f32.xlu0 %v6402_v47  ;;  %v6451_v15 = vld [vmem:[%s5703_s12 + $0x330] sm:$0xff] }
 0x24e   : > { %1975 = vst [vmem:[#allocation2 + $0x68] sm:$0xff] %v1911_v0  ;;  %v1171_v44 = vmul.f32 %v4719_v45, %v7894_v14  ;;  %v4721_v31 = vpop.eup %4720  ;;  %7897 = vst [vmem:[#allocation23_spill] sm:$0xff] %v6451_v15  ;;  %v6454_v36 = vld [vmem:[%s5703_s12 + $0x350] sm:$0xff] }
 0x24f   : > { %v1172_v25 = vmul.f32 %v4721_v31, %v7895_v62  ;;  %7898 = vst [vmem:[#allocation21_spill] sm:$0xff] %v6454_v36  ;;  %v6459_v6 = vld [vmem:[%s5703_s12 + $0x370] sm:$0xff] }
 0x250   : > { %v1915_v8 = vpack.c.bf16 %v1171_v44, %v1170_v9  ;;  %7899 = vst [vmem:[#allocation22_spill] sm:$0xff] %v6459_v6  ;;  %v6462_v34 = vld [vmem:[%s5703_s12 + $0x390] sm:$0xff] }
 0x251   : > { %v4723_v43 = vpop.eup %4722  ;;  %1224 = vadd.xlane.f32.xlu1 %v6409_v61  ;;  %1226 = vadd.xlane.f32.xlu0 %v6412_v24  ;;  %7900 = vst [vmem:[#allocation24_spill] sm:$0xff] %v6462_v34  ;;  %v6467_v37 = vld [vmem:[%s5703_s12 + $0x3b0] sm:$0xff] }
 0x252   : > { %1979 = vst [vmem:[#allocation2 + $0x88] sm:$0xff] %v1915_v8  ;;  %v1173_v54 = vmul.f32 %v4723_v43, %v7896_v59  ;;  %7901 = vst [vmem:[#allocation25_spill] sm:$0xff] %v6467_v37  ;;  %v6470_v17 = vld [vmem:[%s5703_s12 + $0x3d0] sm:$0xff] }
 0x253   : > { %7902 = vst [vmem:[#allocation26_spill] sm:$0xff] %v6470_v17  ;;  %v6475_v0 = vld [vmem:[%s5703_s12 + $0x3f0] sm:$0xff] }
 0x254   : > { %v1919_v5 = vpack.c.bf16 %v1173_v54, %v1172_v25  ;;  %7903 = vst [vmem:[#allocation27_spill] sm:$0xff] %v6475_v0 }
 0x255   : > { %1228 = vadd.xlane.f32.xlu1 %v6419_v16  ;;  %1230 = vadd.xlane.f32.xlu0 %v6422_v21 }
 0x256   : > { %1983 = vst [vmem:[#allocation2 + $0xa8] sm:$0xff] %v1919_v5 }
 0x259   : > { %1232 = vadd.xlane.f32.xlu1 %v6427_v40  ;;  %1234 = vadd.xlane.f32.xlu0 %v6430_v49 }
 0x25d   : > { %1236 = vadd.xlane.f32.xlu1 %v6435_v55  ;;  %1238 = vadd.xlane.f32.xlu0 %v6438_v23 }
 0x261   : > { %1240 = vadd.xlane.f32.xlu1 %v6443_v46  ;;  %1242 = vadd.xlane.f32.xlu0 %v6446_v27 }
 0x265   : > { %1244 = vadd.xlane.f32.xlu1 %v6451_v15  ;;  %1246 = vadd.xlane.f32.xlu0 %v6454_v36 }
 0x269   : > { %1248 = vadd.xlane.f32.xlu1 %v6459_v6  ;;  %1250 = vadd.xlane.f32.xlu0 %v6462_v34 }
 0x26d   : > { %1252 = vadd.xlane.f32.xlu1 %v6467_v37  ;;  %1254 = vadd.xlane.f32.xlu0 %v6470_v17 }
 0x271   : > { %1256 = vadd.xlane.f32.xlu1 %v6475_v0 }
 0x296   : > { %v1027_v45 = vpop.xlane.xlu0 %1026 }
 0x297   : > { %v1078_v9 = vmul.f32 0.0078125, %v1027_v45 }
 0x299   : > { %v1110_v14 = vadd.f32 1e-06, %v1078_v9 }
 0x29a   : > { %v1029_v44 = vpop.xlane.xlu1 %1028  ;;  %v1031_v8 = vpop.xlane.xlu0 %1030 }
 0x29b   : > { %v1079_v31 = vmul.f32 0.0078125, %v1029_v44  ;;  %v1080_v43 = vmul.f32 0.0078125, %v1031_v8  ;;  %4724 = vrsqrt.f32 %v1110_v14 }
 0x29d   : > { %v1111_v62 = vadd.f32 1e-06, %v1079_v31  ;;  %v1112_v25 = vadd.f32 1e-06, %v1080_v43 }
 0x29e   : > { %v1033_v59 = vpop.xlane.xlu1 %1032  ;;  %v1035_v5 = vpop.xlane.xlu0 %1034 }
 0x29f   : > { %4726 = vrsqrt.f32 %v1111_v62  ;;  %v1081_v54 = vmul.f32 0.0078125, %v1033_v59  ;;  %v1082_v37 = vmul.f32 0.0078125, %v1035_v5 }
 0x2a0   : > { %4728 = vrsqrt.f32 %v1112_v25 }
 0x2a1   : > { %v1113_v17 = vadd.f32 1e-06, %v1081_v54  ;;  %v1114_v34 = vadd.f32 1e-06, %v1082_v37 }
 0x2a2   : > { %v1037_v6 = vpop.xlane.xlu1 %1036  ;;  %v1039_v45 = vpop.xlane.xlu0 %1038 }
 0x2a3   : > { %4730 = vrsqrt.f32 %v1113_v17  ;;  %v1083_v0 = vmul.f32 0.0078125, %v1037_v6  ;;  %v1084_v9 = vmul.f32 0.0078125, %v1039_v45 }
 0x2a4   : > { %4732 = vrsqrt.f32 %v1114_v34 }
 0x2a5   : > { %v1115_v44 = vadd.f32 1e-06, %v1083_v0  ;;  %v1116_v36 = vadd.f32 1e-06, %v1084_v9  ;;  %v4725_v14 = vpop.eup %4724 }
 0x2a6   : > { %v1041_v8 = vpop.xlane.xlu1 %1040  ;;  %v1043_v43 = vpop.xlane.xlu0 %1042  ;;  %v1174_v25 = vmul.f32 %v4725_v14, %v6231_v42 }
 0x2a7   : > { %4734 = vrsqrt.f32 %v1115_v44  ;;  %v1085_v31 = vmul.f32 0.0078125, %v1041_v8  ;;  %v1086_v62 = vmul.f32 0.0078125, %v1043_v43 }
 0x2a8   : > { %4736 = vrsqrt.f32 %v1116_v36 }
 0x2a9   : > { %v4727_v59 = vpop.eup %4726  ;;  %v1117_v5 = vadd.f32 1e-06, %v1085_v31  ;;  %v1118_v17 = vadd.f32 1e-06, %v1086_v62 }
 0x2aa   : > { %v1175_v37 = vmul.f32 %v4727_v59, %v6238_v39  ;;  %v1045_v6 = vpop.xlane.xlu1 %1044  ;;  %v4729_v54 = vpop.eup %4728 }
 0x2ab   : > { %4738 = vrsqrt.f32 %v1117_v5  ;;  %v1087_v34 = vmul.f32 0.0078125, %v1045_v6  ;;  %v1047_v0 = vpop.xlane.xlu0 %1046  ;;  %v1176_v8 = vmul.f32 %v4729_v54, %v6241_v52 }
 0x2ac   : > { %v1923_v45 = vpack.c.bf16 %v1175_v37, %v1174_v25  ;;  %v1088_v9 = vmul.f32 0.0078125, %v1047_v0  ;;  %4740 = vrsqrt.f32 %v1118_v17 }
 0x2ad   : > { %v4731_v15 = vpop.eup %4730  ;;  %v1119_v44 = vadd.f32 1e-06, %v1087_v34 }
 0x2ae   : > { %1987 = vst [vmem:[#allocation2 + $0xc8] sm:$0xff] %v1923_v45  ;;  %v1177_v36 = vmul.f32 %v4731_v15, %v6250_v38  ;;  %v1120_v31 = vadd.f32 1e-06, %v1088_v9  ;;  %v1049_v42 = vpop.xlane.xlu1 %1048  ;;  %v4733_v14 = vpop.eup %4732 }
 0x2af   : > { %4742 = vrsqrt.f32 %v1119_v44  ;;  %v1089_v39 = vmul.f32 0.0078125, %v1049_v42  ;;  %v1051_v43 = vpop.xlane.xlu0 %1050  ;;  %v1178_v37 = vmul.f32 %v4733_v14, %v6253_v19 }
 0x2b0   : > { %v1927_v62 = vpack.c.bf16 %v1177_v36, %v1176_v8  ;;  %v1090_v59 = vmul.f32 0.0078125, %v1051_v43  ;;  %4744 = vrsqrt.f32 %v1120_v31 }
 0x2b1   : > { %v4735_v5 = vpop.eup %4734  ;;  %v1121_v25 = vadd.f32 1e-06, %v1089_v39 }
 0x2b2   : > { %1991 = vst [vmem:[#allocation2 + $0xe8] sm:$0xff] %v1927_v62  ;;  %v1179_v17 = vmul.f32 %v4735_v5, %v6262_v3  ;;  %v1122_v6 = vadd.f32 1e-06, %v1090_v59  ;;  %v1053_v52 = vpop.xlane.xlu1 %1052  ;;  %v4737_v54 = vpop.eup %4736 }
 0x2b3   : > { %4746 = vrsqrt.f32 %v1121_v25  ;;  %v1091_v38 = vmul.f32 0.0078125, %v1053_v52  ;;  %v1055_v15 = vpop.xlane.xlu0 %1054  ;;  %v1180_v44 = vmul.f32 %v4737_v54, %v6265_v50 }
 0x2b4   : > { %v1931_v34 = vpack.c.bf16 %v1179_v17, %v1178_v37  ;;  %v1092_v0 = vmul.f32 0.0078125, %v1055_v15  ;;  %4748 = vrsqrt.f32 %v1122_v6 }
 0x2b5   : > { %v4739_v45 = vpop.eup %4738  ;;  %v1123_v9 = vadd.f32 1e-06, %v1091_v38 }
 0x2b6   : > { %1995 = vst [vmem:[#allocation2 + $0x108] sm:$0xff] %v1931_v34  ;;  %v1181_v8 = vmul.f32 %v4739_v45, %v6274_v57  ;;  %v1124_v36 = vadd.f32 1e-06, %v1092_v0  ;;  %v1057_v19 = vpop.xlane.xlu1 %1056  ;;  %v4741_v31 = vpop.eup %4740 }
 0x2b7   : > { %4750 = vrsqrt.f32 %v1123_v9  ;;  %v1093_v3 = vmul.f32 0.0078125, %v1057_v19  ;;  %v1059_v42 = vpop.xlane.xlu0 %1058  ;;  %v1182_v59 = vmul.f32 %v4741_v31, %v6277_v41 }
 0x2b8   : > { %v1935_v14 = vpack.c.bf16 %v1181_v8, %v1180_v44  ;;  %v1094_v39 = vmul.f32 0.0078125, %v1059_v42  ;;  %4752 = vrsqrt.f32 %v1124_v36 }
 0x2b9   : > { %v4743_v43 = vpop.eup %4742  ;;  %v1125_v62 = vadd.f32 1e-06, %v1093_v3 }
 0x2ba   : > { %1999 = vst [vmem:[#allocation2 + $0x128] sm:$0xff] %v1935_v14  ;;  %v1183_v5 = vmul.f32 %v4743_v43, %v6284_v29  ;;  %v1126_v25 = vadd.f32 1e-06, %v1094_v39  ;;  %v1061_v50 = vpop.xlane.xlu1 %1060  ;;  %v4745_v37 = vpop.eup %4744 }
 0x2bb   : > { %4754 = vrsqrt.f32 %v1125_v62  ;;  %v1095_v57 = vmul.f32 0.0078125, %v1061_v50  ;;  %v1063_v17 = vpop.xlane.xlu0 %1062  ;;  %v1184_v15 = vmul.f32 %v4745_v37, %v6287_v32 }
 0x2bc   : > { %v1939_v6 = vpack.c.bf16 %v1183_v5, %v1182_v59  ;;  %v1096_v52 = vmul.f32 0.0078125, %v1063_v17  ;;  %4756 = vrsqrt.f32 %v1126_v25 }
 0x2bd   : > { %v4747_v54 = vpop.eup %4746  ;;  %v1127_v38 = vadd.f32 1e-06, %v1095_v57 }
 0x2be   : > { %2003 = vst [vmem:[#allocation2 + $0x148] sm:$0xff] %v1939_v6  ;;  %v1185_v34 = vmul.f32 %v4747_v54, %v6294_v48  ;;  %v1128_v0 = vadd.f32 1e-06, %v1096_v52  ;;  %v1065_v41 = vpop.xlane.xlu1 %1064  ;;  %v4749_v45 = vpop.eup %4748 }
 0x2bf   : > { %4758 = vrsqrt.f32 %v1127_v38  ;;  %v1097_v29 = vmul.f32 0.0078125, %v1065_v41  ;;  %v1195_v9 = vpop.xlane.xlu0 %1194  ;;  %v1186_v31 = vmul.f32 %v4749_v45, %v6297_v30 }
 0x2c0   : > { %v1943_v44 = vpack.c.bf16 %v1185_v34, %v1184_v15  ;;  %v1258_v8 = vmul.f32 0.0078125, %v1195_v9  ;;  %4760 = vrsqrt.f32 %v1128_v0 }
 0x2c1   : > { %v4751_v36 = vpop.eup %4750  ;;  %v1129_v19 = vadd.f32 1e-06, %v1097_v29 }
 0x2c2   : > { %2007 = vst [vmem:[#allocation2 + $0x168] sm:$0xff] %v1943_v44  ;;  %v1187_v3 = vmul.f32 %v4751_v36, %v6304_v11  ;;  %v6493_v32 = vsub.f32 %v6339_v2, %v1258_v8  ;;  %v1197_v48 = vpop.xlane.xlu1 %1196  ;;  %v4753_v42 = vpop.eup %4752 }
 0x2c3   : > { %4762 = vrsqrt.f32 %v1129_v19  ;;  %v1259_v14 = vmul.f32 0.0078125, %v1197_v48  ;;  %v1199_v39 = vpop.xlane.xlu0 %1198  ;;  %v1188_v30 = vmul.f32 %v4753_v42, %v6307_v53 }
 0x2c4   : > { %v1947_v43 = vpack.c.bf16 %v1187_v3, %v1186_v31  ;;  %v1260_v62 = vmul.f32 0.0078125, %v1199_v39  ;;  %v1322_v59 = vmul.f32 %v6493_v32, %v6493_v32 }
 0x2c5   : > { %v4755_v5 = vpop.eup %4754  ;;  %v6498_v25 = vsub.f32 %v6343_v56, %v1259_v14 }
 0x2c6   : > { %2011 = vst [vmem:[#allocation2 + $0x188] sm:$0xff] %v1947_v43  ;;  %v1189_v11 = vmul.f32 %v4755_v5, %v6314_v10  ;;  %v6503_v2 = vsub.f32 %v6346_v33, %v1260_v62  ;;  %1354 = vadd.xlane.f32.xlu0 %v1322_v59  ;;  %v1201_v50 = vpop.xlane.xlu1 %1200  ;;  %v4757_v37 = vpop.eup %4756 }
 0x2c7   : > { %v1261_v57 = vmul.f32 0.0078125, %v1201_v50  ;;  %v1203_v17 = vpop.xlane.xlu0 %1202  ;;  %v1323_v6 = vmul.f32 %v6498_v25, %v6498_v25  ;;  %v1190_v10 = vmul.f32 %v4757_v37, %v6317_v28 }
 0x2c8   : > { %v1951_v52 = vpack.c.bf16 %v1189_v11, %v1188_v30  ;;  %v1262_v54 = vmul.f32 0.0078125, %v1203_v17  ;;  %v1324_v56 = vmul.f32 %v6503_v2, %v6503_v2  ;;  %v6563_v17 = vld [vmem:[%s5703_s12 + $0x38] sm:$0xff] }
 0x2c9   : > { %v4759_v38 = vpop.eup %4758  ;;  %v6510_v53 = vsub.f32 %v6351_v26, %v1261_v57  ;;  %1356 = vadd.xlane.f32.xlu1 %v1323_v6  ;;  %v6559_v57 = vld [vmem:[%s5703_s12 + $0x18] sm:$0xff] }
 0x2ca   : > { %2015 = vst [vmem:[#allocation2 + $0x1a8] sm:$0xff] %v1951_v52  ;;  %v1191_v33 = vmul.f32 %v4759_v38, %v6324_v7  ;;  %v6515_v15 = vsub.f32 %v6354_v4, %v1262_v54  ;;  %1358 = vadd.xlane.f32.xlu0 %v1324_v56  ;;  %v1205_v34 = vpop.xlane.xlu1 %1204  ;;  %v4761_v0 = vpop.eup %4760  ;;  %v6566_v6 = vld [vmem:[%s5703_s12 + $0x58] sm:$0xff] }
 0x2cb   : > { %v1263_v41 = vmul.f32 0.0078125, %v1205_v34  ;;  %v1207_v45 = vpop.xlane.xlu0 %1206  ;;  %v1325_v29 = vmul.f32 %v6510_v53, %v6510_v53  ;;  %v1192_v7 = vmul.f32 %v4761_v0, %v6327_v58  ;;  %v6574_v52 = vld [vmem:[%s5703_s12 + $0x98] sm:$0xff] }
 0x2cc   : > { %v1955_v9 = vpack.c.bf16 %v1191_v33, %v1190_v10  ;;  %v1264_v26 = vmul.f32 0.0078125, %v1207_v45  ;;  %v1326_v44 = vmul.f32 %v6515_v15, %v6515_v15  ;;  %v6579_v54 = vld [vmem:[%s5703_s12 + $0xb8] sm:$0xff] }
 0x2cd   : > { %v4763_v8 = vpop.eup %4762  ;;  %v6522_v28 = vsub.f32 %v6359_v18, %v1263_v41  ;;  %1360 = vadd.xlane.f32.xlu1 %v1325_v29  ;;  %v6582_v56 = vld [vmem:[%s5703_s12 + $0xd8] sm:$0xff] }
 0x2ce   : > { %2019 = vst [vmem:[#allocation2 + $0x1c8] sm:$0xff] %v1955_v9  ;;  %v1193_v4 = vmul.f32 %v4763_v8, %v6334_v22  ;;  %v6527_v36 = vsub.f32 %v6362_v20, %v1264_v26  ;;  %1362 = vadd.xlane.f32.xlu0 %v1326_v44  ;;  %v1209_v19 = vpop.xlane.xlu1 %1208  ;;  %v6587_v38 = vld [vmem:[%s5703_s12 + $0xf8] sm:$0xff] }
 0x2cf   : > { %v1265_v31 = vmul.f32 0.0078125, %v1209_v19  ;;  %v1211_v3 = vpop.xlane.xlu0 %1210  ;;  %v1327_v48 = vmul.f32 %v6522_v28, %v6522_v28  ;;  %v6590_v10 = vld [vmem:[%s5703_s12 + $0x118] sm:$0xff] }
 0x2d0   : > { %v1959_v42 = vpack.c.bf16 %v1193_v4, %v1192_v7  ;;  %v1266_v14 = vmul.f32 0.0078125, %v1211_v3  ;;  %v1328_v18 = vmul.f32 %v6527_v36, %v6527_v36  ;;  %v6595_v33 = vld [vmem:[%s5703_s12 + $0x138] sm:$0xff] }
 0x2d1   : > { %v6534_v39 = vsub.f32 %v6369_v1, %v1265_v31  ;;  %1364 = vadd.xlane.f32.xlu1 %v1327_v48  ;;  %v6598_v34 = vld [vmem:[%s5703_s12 + $0x158] sm:$0xff] }
 0x2d2   : > { %2023 = vst [vmem:[#allocation2 + $0x1e8] sm:$0xff] %v1959_v42  ;;  %v6537_v58 = vsub.f32 %v6372_v60, %v1266_v14  ;;  %1366 = vadd.xlane.f32.xlu0 %v1328_v18  ;;  %v1213_v22 = vpop.xlane.xlu1 %1212  ;;  %v6603_v0 = vld [vmem:[%s5703_s12 + $0x178] sm:$0xff] }
 0x2d3   : > { %v1267_v20 = vmul.f32 0.0078125, %v1213_v22  ;;  %v1215_v43 = vpop.xlane.xlu0 %1214  ;;  %v1329_v62 = vmul.f32 %v6534_v39, %v6534_v39  ;;  %v6606_v41 = vld [vmem:[%s5703_s12 + $0x198] sm:$0xff] }
 0x2d4   : > { %v1268_v59 = vmul.f32 0.0078125, %v1215_v43  ;;  %v1330_v5 = vmul.f32 %v6537_v58, %v6537_v58  ;;  %v6611_v45 = vld [vmem:[%s5703_s12 + $0x1b8] sm:$0xff] }
 0x2d5   : > { %v6544_v1 = vsub.f32 %v6379_v63, %v1267_v20  ;;  %1368 = vadd.xlane.f32.xlu1 %v1329_v62  ;;  %v6614_v29 = vld [vmem:[%s5703_s12 + $0x1d8] sm:$0xff] }
 0x2d6   : > { %v6547_v60 = vsub.f32 %v6382_v13, %v1268_v59  ;;  %1370 = vadd.xlane.f32.xlu0 %v1330_v5  ;;  %v1217_v30 = vpop.xlane.xlu1 %1216  ;;  %v6619_v9 = vld [vmem:[%s5703_s12 + $0x1f8] sm:$0xff] }
 0x2d7   : > { %v1269_v11 = vmul.f32 0.0078125, %v1217_v30  ;;  %v1331_v50 = vmul.f32 %v6544_v1, %v6544_v1  ;;  %v6622_v26 = vld [vmem:[%s5703_s12 + $0x218] sm:$0xff]  ;;  %v1219_v44 = vpop.xlane.xlu0 %1218 }
 0x2d8   : > { %v1332_v37 = vmul.f32 %v6547_v60, %v6547_v60  ;;  %v6627_v8 = vld [vmem:[%s5703_s12 + $0x238] sm:$0xff] }
 0x2d9   : > { %v6554_v63 = vsub.f32 %v6389_v35, %v1269_v11  ;;  %1372 = vadd.xlane.f32.xlu1 %v1331_v50  ;;  %v6571_v35 = vld [vmem:[%s5703_s12 + $0x78] sm:$0xff]  ;;  %v1270_v11 = vmul.f32 0.0078125, %v1219_v44 }
 0x2da   : > { %1374 = vadd.xlane.f32.xlu0 %v1332_v37  ;;  %v6630_v7 = vld [vmem:[%s5703_s12 + $0x258] sm:$0xff]  ;;  %v1221_v4 = vpop.xlane.xlu1 %1220 }
 0x2db   : > { %v1333_v13 = vmul.f32 %v6554_v63, %v6554_v63  ;;  %v6635_v19 = vld [vmem:[%s5703_s12 + $0x278] sm:$0xff]  ;;  %v1223_v3 = vpop.xlane.xlu0 %1222 }
 0x2dc   : > { %v6638_v31 = vld [vmem:[%s5703_s12 + $0x298] sm:$0xff] }
 0x2dd   : > { %1376 = vadd.xlane.f32.xlu1 %v1333_v13  ;;  %7904 = vst [vmem:[#allocation28_spill] sm:$0xff] %v6638_v31  ;;  %v6643_v48 = vld [vmem:[%s5703_s12 + $0x2b8] sm:$0xff]  ;;  %v1271_v13 = vmul.f32 0.0078125, %v1221_v4 }
 0x2de   : > { %1546 = vadd.xlane.f32.xlu0 %v6559_v57  ;;  %7905 = vst [vmem:[#allocation29_spill] sm:$0xff] %v6643_v48  ;;  %v1225_v42 = vpop.xlane.xlu1 %1224  ;;  %v6646_v14 = vld [vmem:[%s5703_s12 + $0x2d8] sm:$0xff] }
 0x2df   : > { %7906 = vst [vmem:[#allocation30_spill] sm:$0xff] %v6646_v14  ;;  %v1227_v18 = vpop.xlane.xlu0 %1226  ;;  %v6651_v22 = vld [vmem:[%s5703_s12 + $0x2f8] sm:$0xff]  ;;  %v6685_v44 = vsub.f32 %v6399_v51, %v1271_v13 }
 0x2e0   : > { %7907 = vst [vmem:[#allocation31_spill] sm:$0xff] %v6651_v22  ;;  %v6654_v20 = vld [vmem:[%s5703_s12 + $0x318] sm:$0xff] }
 0x2e1   : > { %1548 = vadd.xlane.f32.xlu1 %v6563_v17  ;;  %7908 = vst [vmem:[#allocation32_spill] sm:$0xff] %v6654_v20  ;;  %v6659_v62 = vld [vmem:[%s5703_s12 + $0x338] sm:$0xff]  ;;  %v1335_v51 = vmul.f32 %v6685_v44, %v6685_v44 }
 0x2e2   : > { %1550 = vadd.xlane.f32.xlu0 %v6566_v6  ;;  %v1229_v43 = vpop.xlane.xlu1 %1228  ;;  %7909 = vst [vmem:[#allocation33_spill] sm:$0xff] %v6659_v62  ;;  %v6662_v59 = vld [vmem:[%s5703_s12 + $0x358] sm:$0xff] }
 0x2e3   : > { %7910 = vst [vmem:[#allocation35_spill] sm:$0xff] %v6662_v59  ;;  %v1231_v5 = vpop.xlane.xlu0 %1230  ;;  %v6667_v30 = vld [vmem:[%s5703_s12 + $0x378] sm:$0xff] }
 0x2e4   : > { %v6670_v37 = vld [vmem:[%s5703_s12 + $0x398] sm:$0xff]  ;;  %v1276_v13 = vmul.f32 0.0078125, %v1231_v5 }
 0x2e5   : > { %1552 = vadd.xlane.f32.xlu1 %v6571_v35  ;;  %7911 = vst [vmem:[#allocation34_spill] sm:$0xff] %v6670_v37 }
 0x2e6   : > { %1554 = vadd.xlane.f32.xlu0 %v6574_v52  ;;  %v1233_v50 = vpop.xlane.xlu1 %1232 }
 0x2e9   : > { %1556 = vadd.xlane.f32.xlu1 %v6579_v54 }
 0x2ea   : > { %1558 = vadd.xlane.f32.xlu0 %v6582_v56 }
 0x2ed   : > { %1560 = vadd.xlane.f32.xlu1 %v6587_v38 }
 0x2ee   : > { %1562 = vadd.xlane.f32.xlu0 %v6590_v10 }
 0x2f1   : > { %1564 = vadd.xlane.f32.xlu1 %v6595_v33 }
 0x2f2   : > { %1566 = vadd.xlane.f32.xlu0 %v6598_v34 }
 0x2f5   : > { %1568 = vadd.xlane.f32.xlu1 %v6603_v0 }
 0x2f6   : > { %1570 = vadd.xlane.f32.xlu0 %v6606_v41 }
 0x2f9   : > { %1572 = vadd.xlane.f32.xlu1 %v6611_v45 }
 0x2fa   : > { %1574 = vadd.xlane.f32.xlu0 %v6614_v29 }
 0x2fd   : > { %1576 = vadd.xlane.f32.xlu1 %v6619_v9 }
 0x2fe   : > { %1578 = vadd.xlane.f32.xlu0 %v6622_v26 }
 0x301   : > { %1580 = vadd.xlane.f32.xlu1 %v6627_v8 }
 0x302   : > { %1582 = vadd.xlane.f32.xlu0 %v6630_v7 }
 0x305   : > { %1584 = vadd.xlane.f32.xlu1 %v6635_v19 }
 0x306   : > { %1586 = vadd.xlane.f32.xlu0 %v6638_v31  ;;  %v1273_v31 = vmul.f32 0.0078125, %v1225_v42  ;;  %v1275_v42 = vmul.f32 0.0078125, %v1229_v43  ;;  %v6713_v43 = vsub.f32 %v6422_v21, %v1276_v13 }
 0x308   : > { %v1340_v21 = vmul.f32 %v6713_v43, %v6713_v43 }
 0x309   : > { %1588 = vadd.xlane.f32.xlu1 %v6643_v48  ;;  %v1237_v48 = vpop.xlane.xlu1 %1236 }
 0x30a   : > { %1590 = vadd.xlane.f32.xlu0 %v6646_v14  ;;  %v6678_v14 = vld [vmem:[%s5703_s12 + $0x3b8] sm:$0xff] }
 0x30b   : > { %7913 = vst [vmem:[#allocation37_spill] sm:$0xff] %v6678_v14 }
 0x30d   : > { %1592 = vadd.xlane.f32.xlu1 %v6651_v22  ;;  %v6675_v22 = vsub.f32 %v6392_v12, %v1270_v11 }
 0x30e   : > { %1594 = vadd.xlane.f32.xlu0 %v6654_v20  ;;  %v1235_v20 = vpop.xlane.xlu0 %1234 }
 0x30f   : > { %7912 = vst [vmem:[#allocation36_spill] sm:$0xff] %v6675_v22  ;;  %v1334_v12 = vmul.f32 %v6675_v22, %v6675_v22  ;;  %v1241_v22 = vpop.xlane.xlu1 %1240 }
 0x310   : > { %v1281_v13 = vmul.f32 0.0078125, %v1241_v22 }
 0x311   : > { %1596 = vadd.xlane.f32.xlu1 %v6659_v62  ;;  %v1272_v62 = vmul.f32 0.0078125, %v1223_v3  ;;  %v1274_v3 = vmul.f32 0.0078125, %v1227_v18  ;;  %v6708_v18 = vsub.f32 %v6419_v16, %v1275_v42 }
 0x312   : > { %1598 = vadd.xlane.f32.xlu0 %v6662_v59  ;;  %v6681_v59 = vld [vmem:[%s5703_s12 + $0x3d8] sm:$0xff]  ;;  %v1239_v11 = vpop.xlane.xlu0 %1238 }
 0x313   : > { %v6689_v4 = vsub.f32 %v6402_v47, %v1272_v62  ;;  %v6703_v47 = vsub.f32 %v6412_v24, %v1274_v3  ;;  %v1245_v3 = vpop.xlane.xlu1 %1244  ;;  %v1339_v16 = vmul.f32 %v6708_v18, %v6708_v18  ;;  %v1280_v42 = vmul.f32 0.0078125, %v1239_v11 }
 0x314   : > { %v6738_v11 = vsub.f32 %v6443_v46, %v1281_v13 }
 0x315   : > { %1600 = vadd.xlane.f32.xlu1 %v6667_v30  ;;  %v1336_v62 = vmul.f32 %v6689_v4, %v6689_v4  ;;  %v1338_v24 = vmul.f32 %v6703_v47, %v6703_v47 }
 0x316   : > { %1602 = vadd.xlane.f32.xlu0 %v6670_v37  ;;  %v6692_v37 = vld [vmem:[%s5703_s12 + $0x3f8] sm:$0xff]  ;;  %v1345_v46 = vmul.f32 %v6738_v11, %v6738_v11 }
 0x317   : > { %7914 = vst [vmem:[#allocation38_spill] sm:$0xff] %v6692_v37 }
 0x319   : > { %1604 = vadd.xlane.f32.xlu1 %v6678_v14  ;;  %v6698_v14 = vsub.f32 %v6409_v61, %v1273_v31  ;;  %v1277_v31 = vmul.f32 0.0078125, %v1233_v50 }
 0x31a   : > { %1606 = vadd.xlane.f32.xlu0 %v6681_v59 }
 0x31b   : > { %v1337_v61 = vmul.f32 %v6698_v14, %v6698_v14  ;;  %v6718_v5 = vsub.f32 %v6427_v40, %v1277_v31  ;;  %v1249_v31 = vpop.xlane.xlu1 %1248 }
 0x31d   : > { %1608 = vadd.xlane.f32.xlu1 %v6692_v37  ;;  %v1243_v37 = vpop.xlane.xlu0 %1242  ;;  %v1341_v40 = vmul.f32 %v6718_v5, %v6718_v5 }
 0x31e   : > { %1378 = vadd.xlane.f32.xlu0 %v1334_v12  ;;  %v1278_v12 = vmul.f32 0.0078125, %v1235_v20 }
 0x320   : > { %v6723_v50 = vsub.f32 %v6430_v49, %v1278_v12 }
 0x321   : > { %1380 = vadd.xlane.f32.xlu1 %v1335_v51  ;;  %v1279_v51 = vmul.f32 0.0078125, %v1237_v48  ;;  %v6733_v48 = vsub.f32 %v6438_v23, %v1280_v42  ;;  %v1285_v42 = vmul.f32 0.0078125, %v1249_v31 }
 0x322   : > { %1382 = vadd.xlane.f32.xlu0 %v1336_v62  ;;  %v1247_v62 = vpop.xlane.xlu0 %1246  ;;  %v1342_v49 = vmul.f32 %v6723_v50, %v6723_v50 }
 0x323   : > { %v6728_v20 = vsub.f32 %v6435_v55, %v1279_v51  ;;  %v1344_v23 = vmul.f32 %v6733_v48, %v6733_v48  ;;  %v1253_v51 = vpop.xlane.xlu1 %1252 }
 0x325   : > { %1384 = vadd.xlane.f32.xlu1 %v1337_v61  ;;  %v1282_v61 = vmul.f32 0.0078125, %v1243_v37  ;;  %v1343_v55 = vmul.f32 %v6728_v20, %v6728_v20  ;;  %v7916_v37 = vld [vmem:[#allocation23_spill] sm:$0xff] }
 0x326   : > { %1386 = vadd.xlane.f32.xlu0 %v1338_v24  ;;  %v1283_v24 = vmul.f32 0.0078125, %v1245_v3  ;;  %v1251_v12 = vpop.xlane.xlu0 %1250  ;;  %v7918_v3 = vld [vmem:[#allocation21_spill] sm:$0xff] }
 0x327   : > { %v6743_v22 = vsub.f32 %v6446_v27, %v1282_v61  ;;  %v1286_v13 = vmul.f32 0.0078125, %v1251_v12  ;;  %v7924_v12 = vld [vmem:[#allocation25_spill] sm:$0xff] }
 0x329   : > { %1388 = vadd.xlane.f32.xlu1 %v1339_v16  ;;  %7915 = vst [vmem:[#allocation39_spill] sm:$0xff] %v6743_v22  ;;  %v1284_v16 = vmul.f32 0.0078125, %v1247_v62  ;;  %v1346_v27 = vmul.f32 %v6743_v22, %v6743_v22  ;;  %v7920_v62 = vld [vmem:[#allocation22_spill] sm:$0xff] }
 0x32a   : > { %1390 = vadd.xlane.f32.xlu0 %v1340_v21  ;;  %v6748_v21 = vsub.f32 %v7916_v37, %v1283_v24  ;;  %v6758_v61 = vsub.f32 %v7920_v62, %v1285_v42  ;;  %v1287_v24 = vmul.f32 0.0078125, %v1253_v51  ;;  %v7922_v37 = vld [vmem:[#allocation24_spill] sm:$0xff]  ;;  %v7926_v62 = vld [vmem:[#allocation26_spill] sm:$0xff] }
 0x32b   : > { %v6763_v31 = vsub.f32 %v7922_v37, %v1286_v13  ;;  %v7928_v13 = vld [vmem:[#allocation27_spill] sm:$0xff] }
 0x32c   : > { %7917 = vst [vmem:[#allocation23_spill] sm:$0xff] %v6748_v21  ;;  %7921 = vst [vmem:[#allocation22_spill] sm:$0xff] %v6758_v61  ;;  %v6768_v22 = vsub.f32 %v7924_v12, %v1287_v24 }
 0x32d   : > { %1392 = vadd.xlane.f32.xlu1 %v1341_v40  ;;  %v6753_v40 = vsub.f32 %v7918_v3, %v1284_v16  ;;  %7923 = vst [vmem:[#allocation24_spill] sm:$0xff] %v6763_v31  ;;  %v1257_v3 = vpop.xlane.xlu1 %1256 }
 0x32e   : > { %1394 = vadd.xlane.f32.xlu0 %v1342_v49  ;;  %v1255_v49 = vpop.xlane.xlu0 %1254  ;;  %7925 = vst [vmem:[#allocation25_spill] sm:$0xff] %v6768_v22  ;;  %v1289_v42 = vmul.f32 0.0078125, %v1257_v3 }
 0x32f   : > { %7919 = vst [vmem:[#allocation21_spill] sm:$0xff] %v6753_v40  ;;  %v1288_v16 = vmul.f32 0.0078125, %v1255_v49  ;;  %v1351_v49 = vmul.f32 %v6768_v22, %v6768_v22 }
 0x330   : > { %v6778_v37 = vsub.f32 %v7928_v13, %v1289_v42 }
 0x331   : > { %1396 = vadd.xlane.f32.xlu1 %v1343_v55  ;;  %v1347_v55 = vmul.f32 %v6748_v21, %v6748_v21  ;;  %v6773_v51 = vsub.f32 %v7926_v62, %v1288_v16 }
 0x332   : > { %1398 = vadd.xlane.f32.xlu0 %v1344_v23  ;;  %v1348_v23 = vmul.f32 %v6753_v40, %v6753_v40  ;;  %7929 = vst [vmem:[#allocation27_spill] sm:$0xff] %v6778_v37  ;;  %v1353_v24 = vmul.f32 %v6778_v37, %v6778_v37 }
 0x333   : > { %7927 = vst [vmem:[#allocation26_spill] sm:$0xff] %v6773_v51 }
 0x335   : > { %1400 = vadd.xlane.f32.xlu1 %v1345_v46  ;;  %v1349_v46 = vmul.f32 %v6758_v61, %v6758_v61 }
 0x336   : > { %1402 = vadd.xlane.f32.xlu0 %v1346_v27  ;;  %v1350_v27 = vmul.f32 %v6763_v31, %v6763_v31 }
 0x339   : > { %1404 = vadd.xlane.f32.xlu1 %v1347_v55  ;;  %v1352_v55 = vmul.f32 %v6773_v51, %v6773_v51 }
 0x33a   : > { %1406 = vadd.xlane.f32.xlu0 %v1348_v23 }
 0x33d   : > { %1408 = vadd.xlane.f32.xlu1 %v1349_v46 }
 0x33e   : > { %1410 = vadd.xlane.f32.xlu0 %v1350_v27 }
 0x341   : > { %1412 = vadd.xlane.f32.xlu1 %v1351_v49 }
 0x342   : > { %1414 = vadd.xlane.f32.xlu0 %v1352_v55 }
 0x345   : > { %1416 = vadd.xlane.f32.xlu1 %v1353_v24 }
 0x353   : > { %v1355_v23 = vpop.xlane.xlu0 %1354 }
 0x354   : > { %v1418_v16 = vmul.f32 0.0078125, %v1355_v23 }
 0x356   : > { %v1450_v3 = vadd.f32 1e-06, %v1418_v16  ;;  %v1357_v12 = vpop.xlane.xlu1 %1356 }
 0x357   : > { %v1419_v46 = vmul.f32 0.0078125, %v1357_v12  ;;  %v1359_v42 = vpop.xlane.xlu0 %1358 }
 0x358   : > { %v1420_v62 = vmul.f32 0.0078125, %v1359_v42  ;;  %4764 = vrsqrt.f32 %v1450_v3 }
 0x359   : > { %v1451_v13 = vadd.f32 1e-06, %v1419_v46 }
 0x35a   : > { %v1452_v22 = vadd.f32 1e-06, %v1420_v62  ;;  %v1361_v27 = vpop.xlane.xlu1 %1360 }
 0x35b   : > { %4766 = vrsqrt.f32 %v1451_v13  ;;  %v1421_v31 = vmul.f32 0.0078125, %v1361_v27  ;;  %v1363_v51 = vpop.xlane.xlu0 %1362 }
 0x35c   : > { %v1422_v49 = vmul.f32 0.0078125, %v1363_v51  ;;  %4768 = vrsqrt.f32 %v1452_v22 }
 0x35d   : > { %v1453_v61 = vadd.f32 1e-06, %v1421_v31 }
 0x35e   : > { %v1454_v37 = vadd.f32 1e-06, %v1422_v49  ;;  %v1365_v55 = vpop.xlane.xlu1 %1364 }
 0x35f   : > { %4770 = vrsqrt.f32 %v1453_v61  ;;  %v1423_v24 = vmul.f32 0.0078125, %v1365_v55  ;;  %v1367_v23 = vpop.xlane.xlu0 %1366 }
 0x360   : > { %v1424_v16 = vmul.f32 0.0078125, %v1367_v23  ;;  %4772 = vrsqrt.f32 %v1454_v37 }
 0x361   : > { %v1455_v12 = vadd.f32 1e-06, %v1423_v24 }
 0x362   : > { %v1456_v40 = vadd.f32 1e-06, %v1424_v16  ;;  %v1369_v42 = vpop.xlane.xlu1 %1368  ;;  %v4765_v3 = vpop.eup %4764 }
 0x363   : > { %4774 = vrsqrt.f32 %v1455_v12  ;;  %v1425_v46 = vmul.f32 0.0078125, %v1369_v42  ;;  %v1371_v62 = vpop.xlane.xlu0 %1370  ;;  %v1514_v22 = vmul.f32 %v4765_v3, %v6493_v32 }
 0x364   : > { %v1426_v13 = vmul.f32 0.0078125, %v1371_v62  ;;  %4776 = vrsqrt.f32 %v1456_v40 }
 0x365   : > { %v4767_v27 = vpop.eup %4766  ;;  %v1457_v51 = vadd.f32 1e-06, %v1425_v46 }
 0x366   : > { %v1515_v31 = vmul.f32 %v4767_v27, %v6498_v25  ;;  %v1458_v61 = vadd.f32 1e-06, %v1426_v13  ;;  %v1373_v49 = vpop.xlane.xlu1 %1372  ;;  %v4769_v55 = vpop.eup %4768 }
 0x367   : > { %4778 = vrsqrt.f32 %v1457_v51  ;;  %v1427_v37 = vmul.f32 0.0078125, %v1373_v49  ;;  %v1375_v24 = vpop.xlane.xlu0 %1374  ;;  %v1516_v42 = vmul.f32 %v4769_v55, %v6503_v2 }
 0x368   : > { %v1900_v23 = vpack.c.bf16 %v1515_v31, %v1514_v22  ;;  %v1428_v16 = vmul.f32 0.0078125, %v1375_v24  ;;  %4780 = vrsqrt.f32 %v1458_v61 }
 0x369   : > { %v4771_v21 = vpop.eup %4770  ;;  %v1459_v12 = vadd.f32 1e-06, %v1427_v37 }
 0x36a   : > { %1964 = vst [vmem:[#allocation2 + $0x10] sm:$0xff] %v1900_v23  ;;  %v1517_v40 = vmul.f32 %v4771_v21, %v6510_v53  ;;  %v1460_v46 = vadd.f32 1e-06, %v1428_v16  ;;  %v1377_v32 = vpop.xlane.xlu1 %1376  ;;  %v4773_v3 = vpop.eup %4772 }
 0x36b   : > { %4782 = vrsqrt.f32 %v1459_v12  ;;  %v1429_v25 = vmul.f32 0.0078125, %v1377_v32  ;;  %v1547_v62 = vpop.xlane.xlu0 %1546  ;;  %v1518_v31 = vmul.f32 %v4773_v3, %v6515_v15 }
 0x36c   : > { %v1904_v13 = vpack.c.bf16 %v1517_v40, %v1516_v42  ;;  %v1610_v27 = vmul.f32 0.0078125, %v1547_v62  ;;  %4784 = vrsqrt.f32 %v1460_v46 }
 0x36d   : > { %v4775_v51 = vpop.eup %4774  ;;  %v1461_v22 = vadd.f32 1e-06, %v1429_v25 }
 0x36e   : > { %1968 = vst [vmem:[#allocation2 + $0x30] sm:$0xff] %v1904_v13  ;;  %v1519_v61 = vmul.f32 %v4775_v51, %v6522_v28  ;;  %v6793_v2 = vsub.f32 %v6559_v57, %v1610_v27  ;;  %v1549_v53 = vpop.xlane.xlu1 %1548  ;;  %v4777_v21 = vpop.eup %4776 }
 0x36f   : > { %4786 = vrsqrt.f32 %v1461_v22  ;;  %v1611_v49 = vmul.f32 0.0078125, %v1549_v53  ;;  %v1551_v55 = vpop.xlane.xlu0 %1550  ;;  %v1520_v15 = vmul.f32 %v4777_v21, %v6527_v36 }
 0x370   : > { %v1908_v37 = vpack.c.bf16 %v1519_v61, %v1518_v31  ;;  %v1612_v24 = vmul.f32 0.0078125, %v1551_v55  ;;  %v1674_v23 = vmul.f32 %v6793_v2, %v6793_v2 }
 0x371   : > { %v4779_v16 = vpop.eup %4778  ;;  %v6798_v12 = vsub.f32 %v6563_v17, %v1611_v49 }
 0x372   : > { %1972 = vst [vmem:[#allocation2 + $0x50] sm:$0xff] %v1908_v37  ;;  %v1521_v28 = vmul.f32 %v4779_v16, %v6534_v39  ;;  %v6803_v57 = vsub.f32 %v6566_v6, %v1612_v24  ;;  %1706 = vadd.xlane.f32.xlu0 %v1674_v23  ;;  %v1553_v42 = vpop.xlane.xlu1 %1552  ;;  %v4781_v40 = vpop.eup %4780 }
 0x373   : > { %v1613_v46 = vmul.f32 0.0078125, %v1553_v42  ;;  %v1555_v32 = vpop.xlane.xlu0 %1554  ;;  %v1675_v3 = vmul.f32 %v6798_v12, %v6798_v12  ;;  %v1522_v39 = vmul.f32 %v4781_v40, %v6537_v58 }
 0x374   : > { %v1912_v25 = vpack.c.bf16 %v1521_v28, %v1520_v15  ;;  %v1614_v62 = vmul.f32 0.0078125, %v1555_v32  ;;  %v1676_v17 = vmul.f32 %v6803_v57, %v6803_v57 }
 0x375   : > { %v4783_v13 = vpop.eup %4782  ;;  %v6810_v36 = vsub.f32 %v6571_v35, %v1613_v46  ;;  %1708 = vadd.xlane.f32.xlu1 %v1675_v3 }
 0x376   : > { %1976 = vst [vmem:[#allocation2 + $0x70] sm:$0xff] %v1912_v25  ;;  %v1523_v6 = vmul.f32 %v4783_v13, %v6544_v1  ;;  %v6815_v27 = vsub.f32 %v6574_v52, %v1614_v62  ;;  %1710 = vadd.xlane.f32.xlu0 %v1676_v17  ;;  %v1557_v51 = vpop.xlane.xlu1 %1556  ;;  %v4785_v22 = vpop.eup %4784 }
 0x377   : > { %v1615_v31 = vmul.f32 0.0078125, %v1557_v51  ;;  %v1559_v61 = vpop.xlane.xlu0 %1558  ;;  %v1677_v53 = vmul.f32 %v6810_v36, %v6810_v36  ;;  %v1524_v1 = vmul.f32 %v4785_v22, %v6547_v60 }
 0x378   : > { %v1916_v21 = vpack.c.bf16 %v1523_v6, %v1522_v39  ;;  %v1616_v35 = vmul.f32 0.0078125, %v1559_v61  ;;  %v1678_v49 = vmul.f32 %v6815_v27, %v6815_v27 }
 0x379   : > { %v4787_v55 = vpop.eup %4786  ;;  %v6822_v58 = vsub.f32 %v6579_v54, %v1615_v31  ;;  %1712 = vadd.xlane.f32.xlu1 %v1677_v53 }
 0x37a   : > { %1980 = vst [vmem:[#allocation2 + $0x90] sm:$0xff] %v1916_v21  ;;  %v1525_v52 = vmul.f32 %v4787_v55, %v6554_v63  ;;  %v6827_v37 = vsub.f32 %v6582_v56, %v1616_v35  ;;  %1714 = vadd.xlane.f32.xlu0 %v1678_v49  ;;  %v1561_v24 = vpop.xlane.xlu1 %1560 }
 0x37b   : > { %v1617_v23 = vmul.f32 0.0078125, %v1561_v24  ;;  %v1563_v16 = vpop.xlane.xlu0 %1562  ;;  %v1679_v15 = vmul.f32 %v6822_v58, %v6822_v58 }
 0x37c   : > { %v1920_v28 = vpack.c.bf16 %v1525_v52, %v1524_v1  ;;  %v1618_v42 = vmul.f32 0.0078125, %v1563_v16  ;;  %v1680_v54 = vmul.f32 %v6827_v37, %v6827_v37 }
 0x37d   : > { %v6834_v40 = vsub.f32 %v6587_v38, %v1617_v23  ;;  %1716 = vadd.xlane.f32.xlu1 %v1679_v15 }
 0x37e   : > { %1984 = vst [vmem:[#allocation2 + $0xb0] sm:$0xff] %v1920_v28  ;;  %v6837_v60 = vsub.f32 %v6590_v10, %v1618_v42  ;;  %1718 = vadd.xlane.f32.xlu0 %v1680_v54  ;;  %v1565_v63 = vpop.xlane.xlu1 %1564 }
 0x37f   : > { %v1619_v56 = vmul.f32 0.0078125, %v1565_v63  ;;  %v1567_v46 = vpop.xlane.xlu0 %1566  ;;  %v1681_v32 = vmul.f32 %v6834_v40, %v6834_v40 }
 0x380   : > { %v1620_v3 = vmul.f32 0.0078125, %v1567_v46  ;;  %v1682_v25 = vmul.f32 %v6837_v60, %v6837_v60 }
 0x381   : > { %v6844_v62 = vsub.f32 %v6595_v33, %v1619_v56  ;;  %1720 = vadd.xlane.f32.xlu1 %v1681_v32 }
 0x382   : > { %v6847_v38 = vsub.f32 %v6598_v34, %v1620_v3  ;;  %1722 = vadd.xlane.f32.xlu0 %v1682_v25  ;;  %v1569_v10 = vpop.xlane.xlu1 %1568 }
 0x383   : > { %v1621_v17 = vmul.f32 0.0078125, %v1569_v10  ;;  %v1571_v13 = vpop.xlane.xlu0 %1570  ;;  %v1683_v39 = vmul.f32 %v6844_v62, %v6844_v62 }
 0x384   : > { %v1622_v6 = vmul.f32 0.0078125, %v1571_v13  ;;  %v1684_v51 = vmul.f32 %v6847_v38, %v6847_v38 }
 0x385   : > { %v6854_v22 = vsub.f32 %v6603_v0, %v1621_v17  ;;  %1724 = vadd.xlane.f32.xlu1 %v1683_v39 }
 0x386   : > { %v6857_v33 = vsub.f32 %v6606_v41, %v1622_v6  ;;  %1726 = vadd.xlane.f32.xlu0 %v1684_v51  ;;  %v1573_v34 = vpop.xlane.xlu1 %1572 }
 0x387   : > { %v1623_v31 = vmul.f32 0.0078125, %v1573_v34  ;;  %v1575_v61 = vpop.xlane.xlu0 %1574  ;;  %v1685_v53 = vmul.f32 %v6854_v22, %v6854_v22 }
 0x388   : > { %v1624_v21 = vmul.f32 0.0078125, %v1575_v61  ;;  %v1686_v35 = vmul.f32 %v6857_v33, %v6857_v33  ;;  %v7931_v61 = vld [vmem:[#allocation29_spill] sm:$0xff] }
 0x389   : > { %v6864_v49 = vsub.f32 %v6611_v45, %v1623_v31  ;;  %1728 = vadd.xlane.f32.xlu1 %v1685_v53 }
 0x38a   : > { %v6867_v0 = vsub.f32 %v6614_v29, %v1624_v21  ;;  %1730 = vadd.xlane.f32.xlu0 %v1686_v35  ;;  %v1577_v41 = vpop.xlane.xlu1 %1576 }
 0x38b   : > { %v1625_v55 = vmul.f32 0.0078125, %v1577_v41  ;;  %v1579_v1 = vpop.xlane.xlu0 %1578  ;;  %v1687_v52 = vmul.f32 %v6864_v49, %v6864_v49 }
 0x38c   : > { %v1626_v24 = vmul.f32 0.0078125, %v1579_v1  ;;  %v1688_v23 = vmul.f32 %v6867_v0, %v6867_v0 }
 0x38d   : > { %v6874_v16 = vsub.f32 %v6619_v9, %v1625_v55  ;;  %1732 = vadd.xlane.f32.xlu1 %v1687_v52 }
 0x38e   : > { %v6877_v45 = vsub.f32 %v6622_v26, %v1626_v24  ;;  %1734 = vadd.xlane.f32.xlu0 %v1688_v23  ;;  %v1581_v29 = vpop.xlane.xlu1 %1580  ;;  %v7933_v23 = vld [vmem:[#allocation31_spill] sm:$0xff] }
 0x38f   : > { %v1627_v15 = vmul.f32 0.0078125, %v1581_v29  ;;  %v1583_v28 = vpop.xlane.xlu0 %1582  ;;  %v1689_v42 = vmul.f32 %v6874_v16, %v6874_v16 }
 0x390   : > { %v1628_v54 = vmul.f32 0.0078125, %v1583_v28  ;;  %v1690_v63 = vmul.f32 %v6877_v45, %v6877_v45 }
 0x391   : > { %v6884_v56 = vsub.f32 %v6627_v8, %v1627_v15  ;;  %1736 = vadd.xlane.f32.xlu1 %v1689_v42  ;;  %v7930_v8 = vld [vmem:[#allocation28_spill] sm:$0xff] }
 0x392   : > { %v6887_v9 = vsub.f32 %v6630_v7, %v1628_v54  ;;  %1738 = vadd.xlane.f32.xlu0 %v1690_v63  ;;  %v1585_v26 = vpop.xlane.xlu1 %1584  ;;  %v7934_v15 = vld [vmem:[#allocation32_spill] sm:$0xff] }
 0x393   : > { %v1629_v46 = vmul.f32 0.0078125, %v1585_v26  ;;  %v1587_v32 = vpop.xlane.xlu0 %1586  ;;  %v1691_v3 = vmul.f32 %v6884_v56, %v6884_v56 }
 0x394   : > { %v1630_v25 = vmul.f32 0.0078125, %v1587_v32  ;;  %v1692_v10 = vmul.f32 %v6887_v9, %v6887_v9 }
 0x395   : > { %v6894_v17 = vsub.f32 %v6635_v19, %v1629_v46  ;;  %1740 = vadd.xlane.f32.xlu1 %v1691_v3  ;;  %v7932_v19 = vld [vmem:[#allocation30_spill] sm:$0xff]  ;;  %v7935_v3 = vld [vmem:[#allocation33_spill] sm:$0xff] }
 0x396   : > { %v6897_v13 = vsub.f32 %v7930_v8, %v1630_v25  ;;  %1742 = vadd.xlane.f32.xlu0 %v1692_v10  ;;  %v1589_v7 = vpop.xlane.xlu1 %1588  ;;  %v7936_v10 = vld [vmem:[#allocation35_spill] sm:$0xff] }
 0x397   : > { %v1631_v39 = vmul.f32 0.0078125, %v1589_v7  ;;  %v1591_v6 = vpop.xlane.xlu0 %1590  ;;  %v1693_v51 = vmul.f32 %v6894_v17, %v6894_v17 }
 0x398   : > { %v1632_v34 = vmul.f32 0.0078125, %v1591_v6  ;;  %v1694_v31 = vmul.f32 %v6897_v13, %v6897_v13 }
 0x399   : > { %v6904_v53 = vsub.f32 %v7931_v61, %v1631_v39  ;;  %1744 = vadd.xlane.f32.xlu1 %v1693_v51 }
 0x39a   : > { %v6907_v21 = vsub.f32 %v7932_v19, %v1632_v34  ;;  %1746 = vadd.xlane.f32.xlu0 %v1694_v31  ;;  %v1593_v35 = vpop.xlane.xlu1 %1592  ;;  %v7937_v19 = vld [vmem:[#allocation34_spill] sm:$0xff] }
 0x39b   : > { %v1633_v41 = vmul.f32 0.0078125, %v1593_v35  ;;  %v1595_v55 = vpop.xlane.xlu0 %1594  ;;  %v1695_v1 = vmul.f32 %v6904_v53, %v6904_v53 }
 0x39c   : > { %v1634_v52 = vmul.f32 0.0078125, %v1595_v55  ;;  %v1696_v24 = vmul.f32 %v6907_v21, %v6907_v21 }
 0x39d   : > { %v6914_v29 = vsub.f32 %v7933_v23, %v1633_v41  ;;  %1748 = vadd.xlane.f32.xlu1 %v1695_v1 }
 0x39e   : > { %v6917_v28 = vsub.f32 %v7934_v15, %v1634_v52  ;;  %1750 = vadd.xlane.f32.xlu0 %v1696_v24  ;;  %v1597_v42 = vpop.xlane.xlu1 %1596  ;;  %v7938_v15 = vld [vmem:[#allocation37_spill] sm:$0xff] }
 0x39f   : > { %v1635_v54 = vmul.f32 0.0078125, %v1597_v42  ;;  %v1599_v63 = vpop.xlane.xlu0 %1598  ;;  %v1697_v26 = vmul.f32 %v6914_v29, %v6914_v29 }
 0x3a0   : > { %v1636_v46 = vmul.f32 0.0078125, %v1599_v63  ;;  %v1698_v32 = vmul.f32 %v6917_v28, %v6917_v28 }
 0x3a1   : > { %v6924_v25 = vsub.f32 %v7935_v3, %v1635_v54  ;;  %1752 = vadd.xlane.f32.xlu1 %v1697_v26 }
 0x3a2   : > { %v6927_v8 = vsub.f32 %v7936_v10, %v1636_v46  ;;  %1754 = vadd.xlane.f32.xlu0 %v1698_v32  ;;  %v1601_v7 = vpop.xlane.xlu1 %1600  ;;  %v7939_v10 = vld [vmem:[#allocation38_spill] sm:$0xff] }
 0x3a3   : > { %v1637_v39 = vmul.f32 0.0078125, %v1601_v7  ;;  %v1603_v6 = vpop.xlane.xlu0 %1602  ;;  %v1699_v51 = vmul.f32 %v6924_v25, %v6924_v25 }
 0x3a4   : > { %v1638_v34 = vmul.f32 0.0078125, %v1603_v6  ;;  %v1700_v31 = vmul.f32 %v6927_v8, %v6927_v8 }
 0x3a5   : > { %v6934_v61 = vsub.f32 %v6667_v30, %v1637_v39  ;;  %1756 = vadd.xlane.f32.xlu1 %v1699_v51 }
 0x3a6   : > { %v6937_v35 = vsub.f32 %v7937_v19, %v1638_v34  ;;  %1758 = vadd.xlane.f32.xlu0 %v1700_v31  ;;  %v1605_v41 = vpop.xlane.xlu1 %1604 }
 0x3a7   : > { %v1639_v55 = vmul.f32 0.0078125, %v1605_v41  ;;  %v1607_v1 = vpop.xlane.xlu0 %1606  ;;  %v1701_v52 = vmul.f32 %v6934_v61, %v6934_v61 }
 0x3a8   : > { %v1640_v24 = vmul.f32 0.0078125, %v1607_v1  ;;  %v1702_v23 = vmul.f32 %v6937_v35, %v6937_v35 }
 0x3a9   : > { %v6944_v42 = vsub.f32 %v7938_v15, %v1639_v55  ;;  %1760 = vadd.xlane.f32.xlu1 %v1701_v52 }
 0x3aa   : > { %v6947_v30 = vsub.f32 %v6681_v59, %v1640_v24  ;;  %1762 = vadd.xlane.f32.xlu0 %v1702_v23  ;;  %v1609_v54 = vpop.xlane.xlu1 %1608 }
 0x3ab   : > { %v1641_v63 = vmul.f32 0.0078125, %v1609_v54  ;;  %v1379_v26 = vpop.xlane.xlu0 %1378  ;;  %v1703_v46 = vmul.f32 %v6944_v42, %v6944_v42 }
 0x3ac   : > { %v1430_v32 = vmul.f32 0.0078125, %v1379_v26  ;;  %v1704_v3 = vmul.f32 %v6947_v30, %v6947_v30 }
 0x3ad   : > { %v6954_v7 = vsub.f32 %v7939_v10, %v1641_v63  ;;  %1764 = vadd.xlane.f32.xlu1 %v1703_v46 }
 0x3ae   : > { %v1462_v39 = vadd.f32 1e-06, %v1430_v32  ;;  %1766 = vadd.xlane.f32.xlu0 %v1704_v3  ;;  %v1381_v6 = vpop.xlane.xlu1 %1380 }
 0x3af   : > { %v1431_v59 = vmul.f32 0.0078125, %v1381_v6  ;;  %v1383_v51 = vpop.xlane.xlu0 %1382  ;;  %v1705_v34 = vmul.f32 %v6954_v7, %v6954_v7 }
 0x3b0   : > { %v1432_v31 = vmul.f32 0.0078125, %v1383_v51  ;;  %4788 = vrsqrt.f32 %v1462_v39 }
 0x3b1   : > { %v1463_v19 = vadd.f32 1e-06, %v1431_v59  ;;  %1768 = vadd.xlane.f32.xlu1 %v1705_v34 }
 0x3b2   : > { %v1464_v41 = vadd.f32 1e-06, %v1432_v31  ;;  %v1385_v55 = vpop.xlane.xlu1 %1384 }
 0x3b3   : > { %4790 = vrsqrt.f32 %v1463_v19  ;;  %v1433_v1 = vmul.f32 0.0078125, %v1385_v55  ;;  %v1387_v52 = vpop.xlane.xlu0 %1386  ;;  %v7940_v19 = vld [vmem:[#allocation36_spill] sm:$0xff] }
 0x3b4   : > { %v1434_v24 = vmul.f32 0.0078125, %v1387_v52  ;;  %4792 = vrsqrt.f32 %v1464_v41 }
 0x3b5   : > { %v1465_v23 = vadd.f32 1e-06, %v1433_v1 }
 0x3b6   : > { %v1466_v15 = vadd.f32 1e-06, %v1434_v24  ;;  %v1389_v54 = vpop.xlane.xlu1 %1388 }
 0x3b7   : > { %4794 = vrsqrt.f32 %v1465_v23  ;;  %v1435_v63 = vmul.f32 0.0078125, %v1389_v54  ;;  %v1391_v26 = vpop.xlane.xlu0 %1390 }
 0x3b8   : > { %v1436_v46 = vmul.f32 0.0078125, %v1391_v26  ;;  %4796 = vrsqrt.f32 %v1466_v15 }
 0x3b9   : > { %v1467_v32 = vadd.f32 1e-06, %v1435_v63 }
 0x3ba   : > { %v1468_v3 = vadd.f32 1e-06, %v1436_v46  ;;  %v1393_v10 = vpop.xlane.xlu1 %1392  ;;  %v4789_v39 = vpop.eup %4788 }
 0x3bb   : > { %4798 = vrsqrt.f32 %v1467_v32  ;;  %v1437_v6 = vmul.f32 0.0078125, %v1393_v10  ;;  %v1395_v59 = vpop.xlane.xlu0 %1394  ;;  %v1526_v41 = vmul.f32 %v4789_v39, %v7940_v19 }
 0x3bc   : > { %v1438_v51 = vmul.f32 0.0078125, %v1395_v59  ;;  %4800 = vrsqrt.f32 %v1468_v3 }
 0x3bd   : > { %v4791_v34 = vpop.eup %4790  ;;  %v1469_v31 = vadd.f32 1e-06, %v1437_v6 }
 0x3be   : > { %v1527_v55 = vmul.f32 %v4791_v34, %v6685_v44  ;;  %v1470_v1 = vadd.f32 1e-06, %v1438_v51  ;;  %v1397_v52 = vpop.xlane.xlu1 %1396  ;;  %v4793_v24 = vpop.eup %4792 }
 0x3bf   : > { %4802 = vrsqrt.f32 %v1469_v31  ;;  %v1439_v23 = vmul.f32 0.0078125, %v1397_v52  ;;  %v1399_v15 = vpop.xlane.xlu0 %1398  ;;  %v1528_v32 = vmul.f32 %v4793_v24, %v6689_v4 }
 0x3c0   : > { %v1924_v54 = vpack.c.bf16 %v1527_v55, %v1526_v41  ;;  %v1440_v63 = vmul.f32 0.0078125, %v1399_v15  ;;  %4804 = vrsqrt.f32 %v1470_v1 }
 0x3c1   : > { %v4795_v26 = vpop.eup %4794  ;;  %v1471_v46 = vadd.f32 1e-06, %v1439_v23 }
 0x3c2   : > { %1988 = vst [vmem:[#allocation2 + $0xd0] sm:$0xff] %v1924_v54  ;;  %v1529_v3 = vmul.f32 %v4795_v26, %v6698_v14  ;;  %v1472_v10 = vadd.f32 1e-06, %v1440_v63  ;;  %v1401_v39 = vpop.xlane.xlu1 %1400  ;;  %v4797_v6 = vpop.eup %4796 }
 0x3c3   : > { %4806 = vrsqrt.f32 %v1471_v46  ;;  %v1441_v44 = vmul.f32 0.0078125, %v1401_v39  ;;  %v1403_v59 = vpop.xlane.xlu0 %1402  ;;  %v1530_v41 = vmul.f32 %v4797_v6, %v6703_v47 }
 0x3c4   : > { %v1928_v51 = vpack.c.bf16 %v1529_v3, %v1528_v32  ;;  %v1442_v34 = vmul.f32 0.0078125, %v1403_v59  ;;  %4808 = vrsqrt.f32 %v1472_v10 }
 0x3c5   : > { %v4799_v31 = vpop.eup %4798  ;;  %v1473_v19 = vadd.f32 1e-06, %v1441_v44 }
 0x3c6   : > { %1992 = vst [vmem:[#allocation2 + $0xf0] sm:$0xff] %v1928_v51  ;;  %v1531_v55 = vmul.f32 %v4799_v31, %v6708_v18  ;;  %v1474_v1 = vadd.f32 1e-06, %v1442_v34  ;;  %v1405_v4 = vpop.xlane.xlu1 %1404  ;;  %v4801_v52 = vpop.eup %4800 }
 0x3c7   : > { %4810 = vrsqrt.f32 %v1473_v19  ;;  %v1443_v14 = vmul.f32 0.0078125, %v1405_v4  ;;  %v1407_v24 = vpop.xlane.xlu0 %1406  ;;  %v1532_v26 = vmul.f32 %v4801_v52, %v6713_v43 }
 0x3c8   : > { %v1932_v23 = vpack.c.bf16 %v1531_v55, %v1530_v41  ;;  %v1444_v15 = vmul.f32 0.0078125, %v1407_v24  ;;  %4812 = vrsqrt.f32 %v1474_v1 }
 0x3c9   : > { %v4803_v54 = vpop.eup %4802  ;;  %v1475_v63 = vadd.f32 1e-06, %v1443_v14 }
 0x3ca   : > { %1996 = vst [vmem:[#allocation2 + $0x110] sm:$0xff] %v1932_v23  ;;  %v1533_v46 = vmul.f32 %v4803_v54, %v6718_v5  ;;  %v1476_v32 = vadd.f32 1e-06, %v1444_v15  ;;  %v1409_v47 = vpop.xlane.xlu1 %1408  ;;  %v4805_v3 = vpop.eup %4804  ;;  %v5390_v54 = vmov 0.0  }
 0x3cb   : > { %4814 = vrsqrt.f32 %v1475_v63  ;;  %v1445_v18 = vmul.f32 0.0078125, %v1409_v47  ;;  %v1411_v10 = vpop.xlane.xlu0 %1410  ;;  %v1534_v51 = vmul.f32 %v4805_v3, %v6723_v50  ;;  %2026 = vst [vmem:[#allocation3] sm:$0xff] %v5390_v54  ;;  %2027 = vst [vmem:[#allocation3 + $0x8] sm:$0xff] %v5390_v54 }
 0x3cc   : > { %v1936_v39 = vpack.c.bf16 %v1533_v46, %v1532_v26  ;;  %v1446_v6 = vmul.f32 0.0078125, %v1411_v10  ;;  %4816 = vrsqrt.f32 %v1476_v32  ;;  %2028 = vst [vmem:[#allocation3 + $0x10] sm:$0xff] %v5390_v54  ;;  %2029 = vst [vmem:[#allocation3 + $0x18] sm:$0xff] %v5390_v54  ;;  %v7941_v26 = vld [vmem:[#allocation39_spill] sm:$0xff] }
 0x3cd   : > { %v4807_v44 = vpop.eup %4806  ;;  %v1477_v59 = vadd.f32 1e-06, %v1445_v18  ;;  %2030 = vst [vmem:[#allocation3 + $0x20] sm:$0xff] %v5390_v54  ;;  %2031 = vst [vmem:[#allocation3 + $0x28] sm:$0xff] %v5390_v54  ;;  %v7942_v32 = vld [vmem:[#allocation23_spill] sm:$0xff] }
 0x3ce   : > { %2000 = vst [vmem:[#allocation2 + $0x130] sm:$0xff] %v1936_v39  ;;  %v1535_v34 = vmul.f32 %v4807_v44, %v6728_v20  ;;  %v1478_v31 = vadd.f32 1e-06, %v1446_v6  ;;  %v1413_v43 = vpop.xlane.xlu1 %1412  ;;  %v4809_v19 = vpop.eup %4808  ;;  %2032 = vst [vmem:[#allocation3 + $0x30] sm:$0xff] %v5390_v54  ;;  %v7943_v39 = vld [vmem:[#allocation21_spill] sm:$0xff]  ;;  %v7944_v44 = vld [vmem:[#allocation22_spill] sm:$0xff] }
 0x3cf   : > { %4818 = vrsqrt.f32 %v1477_v59  ;;  %v1447_v5 = vmul.f32 0.0078125, %v1413_v43  ;;  %v1415_v41 = vpop.xlane.xlu0 %1414  ;;  %v6969_v14 = vmul.f32 %v4809_v19, %v6733_v48  ;;  %2033 = vst [vmem:[#allocation3 + $0x38] sm:$0xff] %v5390_v54  ;;  %2034 = vst [vmem:[#allocation3 + $0x40] sm:$0xff] %v5390_v54  ;;  %v7945_v43 = vld [vmem:[#allocation24_spill] sm:$0xff] }
 0x3d0   : > { %v1940_v55 = vpack.c.bf16 %v1535_v34, %v1534_v51  ;;  %v1448_v1 = vmul.f32 0.0078125, %v1415_v41  ;;  %4820 = vrsqrt.f32 %v1478_v31  ;;  %2035 = vst [vmem:[#allocation3 + $0x48] sm:$0xff] %v5390_v54  ;;  %2036 = vst [vmem:[#allocation3 + $0x50] sm:$0xff] %v5390_v54 }
 0x3d1   : > { %v4811_v4 = vpop.eup %4810  ;;  %v1479_v52 = vadd.f32 1e-06, %v1447_v5  ;;  %2037 = vst [vmem:[#allocation3 + $0x58] sm:$0xff] %v5390_v54  ;;  %2038 = vst [vmem:[#allocation3 + $0x60] sm:$0xff] %v5390_v54  ;;  %v7946_v5 = vld [vmem:[#allocation25_spill] sm:$0xff] }
 0x3d2   : > { %2004 = vst [vmem:[#allocation2 + $0x150] sm:$0xff] %v1940_v55  ;;  %v6972_v24 = vmul.f32 %v4811_v4, %v6738_v11  ;;  %v6974_v50 = vadd.f32 1e-06, %v1448_v1  ;;  %v1417_v20 = vpop.xlane.xlu1 %1416  ;;  %v6976_v23 = vpop.eup %4812  ;;  %2039 = vst [vmem:[#allocation3 + $0x68] sm:$0xff] %v5390_v54 }
 0x3d3   : > { %4822 = vrsqrt.f32 %v1479_v52  ;;  %v6978_v15 = vmul.f32 0.0078125, %v1417_v20  ;;  %2040 = vst [vmem:[#allocation3 + $0x70] sm:$0xff] %v5390_v54  ;;  %2041 = vst [vmem:[#allocation3 + $0x78] sm:$0xff] %v5390_v54  ;;  %v1538_v46 = vmul.f32 %v6976_v23, %v7941_v26  ;;  %v7947_v52 = vld [vmem:[#allocation26_spill] sm:$0xff] }
 0x3d4   : > { %2042 = vst [vmem:[#allocation3 + $0x80] sm:$0xff] %v5390_v54  ;;  %2043 = vst [vmem:[#allocation3 + $0x88] sm:$0xff] %v5390_v54  ;;  %v1944_v48 = vpack.c.bf16 %v6972_v24, %v6969_v14  ;;  %4824 = vrsqrt.f32 %v6974_v50  ;;  %v7948_v24 = vld [vmem:[#allocation27_spill] sm:$0xff] }
 0x3d5   : > { %2044 = vst [vmem:[#allocation3 + $0x90] sm:$0xff] %v5390_v54  ;;  %2045 = vst [vmem:[#allocation3 + $0x98] sm:$0xff] %v5390_v54  ;;  %v4815_v11 = vpop.eup %4814  ;;  %v1481_v63 = vadd.f32 1e-06, %v6978_v15 }
 0x3d6   : > { %2046 = vst [vmem:[#allocation3 + $0xa0] sm:$0xff] %v5390_v54  ;;  %2047 = vst [vmem:[#allocation3 + $0xa8] sm:$0xff] %v5390_v54  ;;  %v1539_v47 = vmul.f32 %v4815_v11, %v7942_v32  ;;  %v4817_v3 = vpop.eup %4816 }
 0x3d7   : > { %2048 = vst [vmem:[#allocation3 + $0xb0] sm:$0xff] %v5390_v54  ;;  %2049 = vst [vmem:[#allocation3 + $0xb8] sm:$0xff] %v5390_v54  ;;  %4826 = vrsqrt.f32 %v1481_v63  ;;  %v1540_v6 = vmul.f32 %v4817_v3, %v7943_v39 }
 0x3d8   : > { %2050 = vst [vmem:[#allocation3 + $0xc0] sm:$0xff] %v5390_v54  ;;  %2051 = vst [vmem:[#allocation3 + $0xc8] sm:$0xff] %v5390_v54  ;;  %v1948_v18 = vpack.c.bf16 %v1539_v47, %v1538_v46 }
 0x3d9   : > { %2052 = vst [vmem:[#allocation3 + $0xd0] sm:$0xff] %v5390_v54  ;;  %2053 = vst [vmem:[#allocation3 + $0xd8] sm:$0xff] %v5390_v54  ;;  %v4819_v10 = vpop.eup %4818 }
 0x3da   : > { %2054 = vst [vmem:[#allocation3 + $0xe0] sm:$0xff] %v5390_v54  ;;  %2055 = vst [vmem:[#allocation3 + $0xe8] sm:$0xff] %v5390_v54  ;;  %v1541_v59 = vmul.f32 %v4819_v10, %v7944_v44  ;;  %v4821_v51 = vpop.eup %4820 }
 0x3db   : > { %2056 = vst [vmem:[#allocation3 + $0xf0] sm:$0xff] %v5390_v54  ;;  %2057 = vst [vmem:[#allocation3 + $0xf8] sm:$0xff] %v5390_v54  ;;  %v1542_v19 = vmul.f32 %v4821_v51, %v7945_v43 }
 0x3dc   : > { %2058 = vst [vmem:[#allocation3 + $0x100] sm:$0xff] %v5390_v54  ;;  %2059 = vst [vmem:[#allocation3 + $0x108] sm:$0xff] %v5390_v54  ;;  %v1952_v34 = vpack.c.bf16 %v1541_v59, %v1540_v6 }
 0x3dd   : > { %2060 = vst [vmem:[#allocation3 + $0x110] sm:$0xff] %v5390_v54  ;;  %2061 = vst [vmem:[#allocation3 + $0x118] sm:$0xff] %v5390_v54  ;;  %v4823_v31 = vpop.eup %4822 }
 0x3de   : > { %2062 = vst [vmem:[#allocation3 + $0x120] sm:$0xff] %v5390_v54  ;;  %2063 = vst [vmem:[#allocation3 + $0x128] sm:$0xff] %v5390_v54  ;;  %v1543_v41 = vmul.f32 %v4823_v31, %v7946_v5  ;;  %v4825_v55 = vpop.eup %4824 }
 0x3df   : > { %2064 = vst [vmem:[#allocation3 + $0x130] sm:$0xff] %v5390_v54  ;;  %2065 = vst [vmem:[#allocation3 + $0x138] sm:$0xff] %v5390_v54  ;;  %v1544_v14 = vmul.f32 %v4825_v55, %v7947_v52 }
 0x3e0   : > { %2066 = vst [vmem:[#allocation3 + $0x140] sm:$0xff] %v5390_v54  ;;  %2067 = vst [vmem:[#allocation3 + $0x148] sm:$0xff] %v5390_v54  ;;  %v1956_v1 = vpack.c.bf16 %v1543_v41, %v1542_v19 }
 0x3e1   : > { %2068 = vst [vmem:[#allocation3 + $0x150] sm:$0xff] %v5390_v54  ;;  %2069 = vst [vmem:[#allocation3 + $0x158] sm:$0xff] %v5390_v54  ;;  %v4827_v4 = vpop.eup %4826 }
 0x3e2   : > { %2070 = vst [vmem:[#allocation3 + $0x160] sm:$0xff] %v5390_v54  ;;  %2071 = vst [vmem:[#allocation3 + $0x168] sm:$0xff] %v5390_v54  ;;  %v1545_v50 = vmul.f32 %v4827_v4, %v7948_v24 }
 0x3e3   : > { %2072 = vst [vmem:[#allocation3 + $0x170] sm:$0xff] %v5390_v54  ;;  %2073 = vst [vmem:[#allocation3 + $0x178] sm:$0xff] %v5390_v54 }
 0x3e4   : > { %2074 = vst [vmem:[#allocation3 + $0x180] sm:$0xff] %v5390_v54  ;;  %2075 = vst [vmem:[#allocation3 + $0x188] sm:$0xff] %v5390_v54  ;;  %v1960_v20 = vpack.c.bf16 %v1545_v50, %v1544_v14 }
 0x3e5   : > { %2076 = vst [vmem:[#allocation3 + $0x190] sm:$0xff] %v5390_v54  ;;  %2077 = vst [vmem:[#allocation3 + $0x198] sm:$0xff] %v5390_v54 }
 0x3e6   : > { %2078 = vst [vmem:[#allocation3 + $0x1a0] sm:$0xff] %v5390_v54  ;;  %2079 = vst [vmem:[#allocation3 + $0x1a8] sm:$0xff] %v5390_v54 }
 0x3e7   : > { %2080 = vst [vmem:[#allocation3 + $0x1b0] sm:$0xff] %v5390_v54  ;;  %2081 = vst [vmem:[#allocation3 + $0x1b8] sm:$0xff] %v5390_v54 }
 0x3e8   : > { %2082 = vst [vmem:[#allocation3 + $0x1c0] sm:$0xff] %v5390_v54  ;;  %2083 = vst [vmem:[#allocation3 + $0x1c8] sm:$0xff] %v5390_v54 }
 0x3e9   : > { %2084 = vst [vmem:[#allocation3 + $0x1d0] sm:$0xff] %v5390_v54  ;;  %2085 = vst [vmem:[#allocation3 + $0x1d8] sm:$0xff] %v5390_v54 }
 0x3ea   : > { %2086 = vst [vmem:[#allocation3 + $0x1e0] sm:$0xff] %v5390_v54  ;;  %2087 = vst [vmem:[#allocation3 + $0x1e8] sm:$0xff] %v5390_v54 }
 0x3eb   : > { %2088 = vst [vmem:[#allocation3 + $0x1f0] sm:$0xff] %v5390_v54  ;;  %2089 = vst [vmem:[#allocation3 + $0x1f8] sm:$0xff] %v5390_v54 }
 0x3ec   : > { %2008 = vst [vmem:[#allocation2 + $0x170] sm:$0xff] %v1944_v48  ;;  %2012 = vst [vmem:[#allocation2 + $0x190] sm:$0xff] %v1948_v18 }
 0x3ed   : > { %2016 = vst [vmem:[#allocation2 + $0x1b0] sm:$0xff] %v1952_v34  ;;  %2020 = vst [vmem:[#allocation2 + $0x1d0] sm:$0xff] %v1956_v1 }
 0x3ee   : > { %2024 = vst [vmem:[#allocation2 + $0x1f0] sm:$0xff] %v1960_v20 }
 0x3ff   : > { %v1707_v23 = vpop.xlane.xlu0 %1706 }
 0x400   : > { %v1770_v15 = vmul.f32 0.0078125, %v1707_v23 }
 0x402   : > { %v1802_v54 = vadd.f32 1e-06, %v1770_v15  ;;  %v1709_v48 = vpop.xlane.xlu1 %1708 }
 0x403   : > { %v1771_v11 = vmul.f32 0.0078125, %v1709_v48  ;;  %v1711_v63 = vpop.xlane.xlu0 %1710 }
 0x404   : > { %v1772_v26 = vmul.f32 0.0078125, %v1711_v63  ;;  %4828 = vrsqrt.f32 %v1802_v54 }
 0x405   : > { %v1803_v46 = vadd.f32 1e-06, %v1771_v11 }
 0x406   : > { %v1804_v32 = vadd.f32 1e-06, %v1772_v26  ;;  %v1713_v47 = vpop.xlane.xlu1 %1712 }
 0x407   : > { %4830 = vrsqrt.f32 %v1803_v46  ;;  %v1773_v3 = vmul.f32 0.0078125, %v1713_v47  ;;  %v1715_v18 = vpop.xlane.xlu0 %1714 }
 0x408   : > { %v1774_v10 = vmul.f32 0.0078125, %v1715_v18  ;;  %4832 = vrsqrt.f32 %v1804_v32 }
 0x409   : > { %v1805_v39 = vadd.f32 1e-06, %v1773_v3 }
 0x40a   : > { %v1806_v6 = vadd.f32 1e-06, %v1774_v10  ;;  %v1717_v44 = vpop.xlane.xlu1 %1716 }
 0x40b   : > { %4834 = vrsqrt.f32 %v1805_v39  ;;  %v1775_v59 = vmul.f32 0.0078125, %v1717_v44  ;;  %v1719_v51 = vpop.xlane.xlu0 %1718 }
 0x40c   : > { %v1776_v34 = vmul.f32 0.0078125, %v1719_v51  ;;  %4836 = vrsqrt.f32 %v1806_v6 }
 0x40d   : > { %v1807_v31 = vadd.f32 1e-06, %v1775_v59 }
 0x40e   : > { %v1808_v43 = vadd.f32 1e-06, %v1776_v34  ;;  %v1721_v19 = vpop.xlane.xlu1 %1720  ;;  %v4829_v5 = vpop.eup %4828 }
 0x40f   : > { %4838 = vrsqrt.f32 %v1807_v31  ;;  %v1777_v41 = vmul.f32 0.0078125, %v1721_v19  ;;  %v1723_v55 = vpop.xlane.xlu0 %1722  ;;  %v1866_v14 = vmul.f32 %v4829_v5, %v6793_v2 }
 0x410   : > { %v1778_v1 = vmul.f32 0.0078125, %v1723_v55  ;;  %4840 = vrsqrt.f32 %v1808_v43 }
 0x411   : > { %v4831_v4 = vpop.eup %4830  ;;  %v1809_v52 = vadd.f32 1e-06, %v1777_v41 }
 0x412   : > { %v1867_v24 = vmul.f32 %v4831_v4, %v6798_v12  ;;  %v1810_v50 = vadd.f32 1e-06, %v1778_v1  ;;  %v1725_v20 = vpop.xlane.xlu1 %1724  ;;  %v4833_v23 = vpop.eup %4832 }
 0x413   : > { %4842 = vrsqrt.f32 %v1809_v52  ;;  %v1779_v15 = vmul.f32 0.0078125, %v1725_v20  ;;  %v1727_v54 = vpop.xlane.xlu0 %1726  ;;  %v1868_v46 = vmul.f32 %v4833_v23, %v6803_v57 }
 0x414   : > { %v1901_v48 = vpack.c.bf16 %v1867_v24, %v1866_v14  ;;  %v1780_v11 = vmul.f32 0.0078125, %v1727_v54  ;;  %4844 = vrsqrt.f32 %v1810_v50 }
 0x415   : > { %v4835_v63 = vpop.eup %4834  ;;  %v1811_v26 = vadd.f32 1e-06, %v1779_v15 }
 0x416   : > { %1965 = vst [vmem:[#allocation2 + $0x18] sm:$0xff] %v1901_v48  ;;  %v1869_v32 = vmul.f32 %v4835_v63, %v6810_v36  ;;  %v1812_v47 = vadd.f32 1e-06, %v1780_v11  ;;  %v1729_v2 = vpop.xlane.xlu1 %1728  ;;  %v4837_v3 = vpop.eup %4836 }
 0x417   : > { %4846 = vrsqrt.f32 %v1811_v26  ;;  %v1781_v12 = vmul.f32 0.0078125, %v1729_v2  ;;  %v1731_v18 = vpop.xlane.xlu0 %1730  ;;  %v1870_v59 = vmul.f32 %v4837_v3, %v6815_v27 }
 0x418   : > { %v1905_v10 = vpack.c.bf16 %v1869_v32, %v1868_v46  ;;  %v1782_v39 = vmul.f32 0.0078125, %v1731_v18  ;;  %4848 = vrsqrt.f32 %v1812_v47 }
 0x419   : > { %v4839_v6 = vpop.eup %4838  ;;  %v1813_v44 = vadd.f32 1e-06, %v1781_v12 }
 0x41a   : > { %1969 = vst [vmem:[#allocation2 + $0x38] sm:$0xff] %v1905_v10  ;;  %v1871_v51 = vmul.f32 %v4839_v6, %v6822_v58  ;;  %v1814_v34 = vadd.f32 1e-06, %v1782_v39  ;;  %v1733_v57 = vpop.xlane.xlu1 %1732  ;;  %v4841_v31 = vpop.eup %4840 }
 0x41b   : > { %4850 = vrsqrt.f32 %v1813_v44  ;;  %v1783_v36 = vmul.f32 0.0078125, %v1733_v57  ;;  %v1735_v43 = vpop.xlane.xlu0 %1734  ;;  %v1872_v1 = vmul.f32 %v4841_v31, %v6827_v37 }
 0x41c   : > { %v1909_v19 = vpack.c.bf16 %v1871_v51, %v1870_v59  ;;  %v1784_v5 = vmul.f32 0.0078125, %v1735_v43  ;;  %4852 = vrsqrt.f32 %v1814_v34 }
 0x41d   : > { %v4843_v41 = vpop.eup %4842  ;;  %v1815_v55 = vadd.f32 1e-06, %v1783_v36 }
 0x41e   : > { %1973 = vst [vmem:[#allocation2 + $0x58] sm:$0xff] %v1909_v19  ;;  %v1873_v4 = vmul.f32 %v4843_v41, %v6834_v40  ;;  %v1816_v52 = vadd.f32 1e-06, %v1784_v5  ;;  %v1737_v27 = vpop.xlane.xlu1 %1736  ;;  %v4845_v14 = vpop.eup %4844 }
 0x41f   : > { %4854 = vrsqrt.f32 %v1815_v55  ;;  %v1785_v58 = vmul.f32 0.0078125, %v1737_v27  ;;  %v1739_v24 = vpop.xlane.xlu0 %1738  ;;  %v1874_v54 = vmul.f32 %v4845_v14, %v6837_v60 }
 0x420   : > { %v1913_v50 = vpack.c.bf16 %v1873_v4, %v1872_v1  ;;  %v1786_v20 = vmul.f32 0.0078125, %v1739_v24  ;;  %4856 = vrsqrt.f32 %v1816_v52 }
 0x421   : > { %v4847_v23 = vpop.eup %4846  ;;  %v1817_v15 = vadd.f32 1e-06, %v1785_v58 }
 0x422   : > { %1977 = vst [vmem:[#allocation2 + $0x78] sm:$0xff] %v1913_v50  ;;  %v1875_v48 = vmul.f32 %v4847_v23, %v6844_v62  ;;  %v1818_v11 = vadd.f32 1e-06, %v1786_v20  ;;  %v1741_v37 = vpop.xlane.xlu1 %1740  ;;  %v4849_v63 = vpop.eup %4848 }
 0x423   : > { %4858 = vrsqrt.f32 %v1817_v15  ;;  %v1787_v40 = vmul.f32 0.0078125, %v1741_v37  ;;  %v1743_v26 = vpop.xlane.xlu0 %1742  ;;  %v1876_v3 = vmul.f32 %v4849_v63, %v6847_v38 }
 0x424   : > { %v1917_v46 = vpack.c.bf16 %v1875_v48, %v1874_v54  ;;  %v1788_v32 = vmul.f32 0.0078125, %v1743_v26  ;;  %4860 = vrsqrt.f32 %v1818_v11 }
 0x425   : > { %v4851_v47 = vpop.eup %4850  ;;  %v1819_v2 = vadd.f32 1e-06, %v1787_v40 }
 0x426   : > { %1981 = vst [vmem:[#allocation2 + $0x98] sm:$0xff] %v1917_v46  ;;  %v1877_v12 = vmul.f32 %v4851_v47, %v6854_v22  ;;  %v1820_v18 = vadd.f32 1e-06, %v1788_v32  ;;  %v1745_v60 = vpop.xlane.xlu1 %1744  ;;  %v4853_v10 = vpop.eup %4852 }
 0x427   : > { %4862 = vrsqrt.f32 %v1819_v2  ;;  %v1789_v62 = vmul.f32 0.0078125, %v1745_v60  ;;  %v1747_v39 = vpop.xlane.xlu0 %1746  ;;  %v1878_v34 = vmul.f32 %v4853_v10, %v6857_v33 }
 0x428   : > { %v1921_v6 = vpack.c.bf16 %v1877_v12, %v1876_v3  ;;  %v1790_v44 = vmul.f32 0.0078125, %v1747_v39  ;;  %4864 = vrsqrt.f32 %v1820_v18 }
 0x429   : > { %v4855_v59 = vpop.eup %4854  ;;  %v1821_v51 = vadd.f32 1e-06, %v1789_v62 }
 0x42a   : > { %1985 = vst [vmem:[#allocation2 + $0xb8] sm:$0xff] %v1921_v6  ;;  %v1879_v57 = vmul.f32 %v4855_v59, %v6864_v49  ;;  %v1822_v31 = vadd.f32 1e-06, %v1790_v44  ;;  %v1749_v38 = vpop.xlane.xlu1 %1748  ;;  %v4857_v36 = vpop.eup %4856 }
 0x42b   : > { %4866 = vrsqrt.f32 %v1821_v51  ;;  %v1791_v22 = vmul.f32 0.0078125, %v1749_v38  ;;  %v1751_v43 = vpop.xlane.xlu0 %1750  ;;  %v1880_v1 = vmul.f32 %v4857_v36, %v6867_v0 }
 0x42c   : > { %v1925_v19 = vpack.c.bf16 %v1879_v57, %v1878_v34  ;;  %v1792_v5 = vmul.f32 0.0078125, %v1751_v43  ;;  %4868 = vrsqrt.f32 %v1822_v31 }
 0x42d   : > { %v4859_v41 = vpop.eup %4858  ;;  %v1823_v55 = vadd.f32 1e-06, %v1791_v22 }
 0x42e   : > { %1989 = vst [vmem:[#allocation2 + $0xd8] sm:$0xff] %v1925_v19  ;;  %v1881_v4 = vmul.f32 %v4859_v41, %v6874_v16  ;;  %v1824_v52 = vadd.f32 1e-06, %v1792_v5  ;;  %v1753_v33 = vpop.xlane.xlu1 %1752  ;;  %v4861_v27 = vpop.eup %4860 }
 0x42f   : > { %4870 = vrsqrt.f32 %v1823_v55  ;;  %v1793_v49 = vmul.f32 0.0078125, %v1753_v33  ;;  %v1755_v14 = vpop.xlane.xlu0 %1754  ;;  %v1882_v23 = vmul.f32 %v4861_v27, %v6877_v45 }
 0x430   : > { %v1929_v58 = vpack.c.bf16 %v1881_v4, %v1880_v1  ;;  %v1794_v24 = vmul.f32 0.0078125, %v1755_v14  ;;  %4872 = vrsqrt.f32 %v1824_v52 }
 0x431   : > { %v4863_v50 = vpop.eup %4862  ;;  %v1825_v20 = vadd.f32 1e-06, %v1793_v49 }
 0x432   : > { %1993 = vst [vmem:[#allocation2 + $0xf8] sm:$0xff] %v1929_v58  ;;  %v1883_v15 = vmul.f32 %v4863_v50, %v6884_v56  ;;  %v1826_v54 = vadd.f32 1e-06, %v1794_v24  ;;  %v1757_v0 = vpop.xlane.xlu1 %1756  ;;  %v4865_v48 = vpop.eup %4864 }
 0x433   : > { %4874 = vrsqrt.f32 %v1825_v20  ;;  %v1795_v16 = vmul.f32 0.0078125, %v1757_v0  ;;  %v1759_v11 = vpop.xlane.xlu0 %1758  ;;  %v1884_v46 = vmul.f32 %v4865_v48, %v6887_v9 }
 0x434   : > { %v1933_v37 = vpack.c.bf16 %v1883_v15, %v1882_v23  ;;  %v1796_v63 = vmul.f32 0.0078125, %v1759_v11  ;;  %4876 = vrsqrt.f32 %v1826_v54 }
 0x435   : > { %v4867_v40 = vpop.eup %4866  ;;  %v1827_v26 = vadd.f32 1e-06, %v1795_v16 }
 0x436   : > { %1997 = vst [vmem:[#allocation2 + $0x118] sm:$0xff] %v1933_v37  ;;  %v1885_v32 = vmul.f32 %v4867_v40, %v6894_v17  ;;  %v1828_v47 = vadd.f32 1e-06, %v1796_v63  ;;  %v1761_v45 = vpop.xlane.xlu1 %1760  ;;  %v4869_v2 = vpop.eup %4868 }
 0x437   : > { %4878 = vrsqrt.f32 %v1827_v26  ;;  %v1797_v56 = vmul.f32 0.0078125, %v1761_v45  ;;  %v1763_v3 = vpop.xlane.xlu0 %1762  ;;  %v1886_v62 = vmul.f32 %v4869_v2, %v6897_v13 }
 0x438   : > { %v1937_v12 = vpack.c.bf16 %v1885_v32, %v1884_v46  ;;  %v1798_v18 = vmul.f32 0.0078125, %v1763_v3  ;;  %4880 = vrsqrt.f32 %v1828_v47 }
 0x439   : > { %v4871_v60 = vpop.eup %4870  ;;  %v1829_v10 = vadd.f32 1e-06, %v1797_v56 }
 0x43a   : > { %2001 = vst [vmem:[#allocation2 + $0x138] sm:$0xff] %v1937_v12  ;;  %v1887_v39 = vmul.f32 %v4871_v60, %v6904_v53  ;;  %v1830_v6 = vadd.f32 1e-06, %v1798_v18  ;;  %v1765_v9 = vpop.xlane.xlu1 %1764  ;;  %v4873_v44 = vpop.eup %4872 }
 0x43b   : > { %4882 = vrsqrt.f32 %v1829_v10  ;;  %v1799_v17 = vmul.f32 0.0078125, %v1765_v9  ;;  %v1767_v59 = vpop.xlane.xlu0 %1766  ;;  %v1888_v38 = vmul.f32 %v4873_v44, %v6907_v21 }
 0x43c   : > { %v1941_v51 = vpack.c.bf16 %v1887_v39, %v1886_v62  ;;  %v1800_v34 = vmul.f32 0.0078125, %v1767_v59  ;;  %4884 = vrsqrt.f32 %v1830_v6 }
 0x43d   : > { %v4875_v57 = vpop.eup %4874  ;;  %v1831_v31 = vadd.f32 1e-06, %v1799_v17 }
 0x43e   : > { %2005 = vst [vmem:[#allocation2 + $0x158] sm:$0xff] %v1941_v51  ;;  %v1889_v36 = vmul.f32 %v4875_v57, %v6914_v29  ;;  %v1832_v22 = vadd.f32 1e-06, %v1800_v34  ;;  %v1769_v13 = vpop.xlane.xlu1 %1768  ;;  %v4877_v43 = vpop.eup %4876 }
 0x43f   : > { %4886 = vrsqrt.f32 %v1831_v31  ;;  %v1801_v53 = vmul.f32 0.0078125, %v1769_v13  ;;  %v1890_v55 = vmul.f32 %v4877_v43, %v6917_v28 }
 0x440   : > { %v1945_v19 = vpack.c.bf16 %v1889_v36, %v1888_v38  ;;  %4888 = vrsqrt.f32 %v1832_v22 }
 0x441   : > { %v4879_v5 = vpop.eup %4878  ;;  %v1833_v41 = vadd.f32 1e-06, %v1801_v53 }
 0x442   : > { %2009 = vst [vmem:[#allocation2 + $0x178] sm:$0xff] %v1945_v19  ;;  %v1891_v1 = vmul.f32 %v4879_v5, %v6924_v25  ;;  %v4881_v4 = vpop.eup %4880 }
 0x443   : > { %4890 = vrsqrt.f32 %v1833_v41  ;;  %v1892_v29 = vmul.f32 %v4881_v4, %v6927_v8 }
 0x444   : > { %v1949_v52 = vpack.c.bf16 %v1891_v1, %v1890_v55 }
 0x445   : > { %v4883_v21 = vpop.eup %4882 }
 0x446   : > { %2013 = vst [vmem:[#allocation2 + $0x198] sm:$0xff] %v1949_v52  ;;  %v1893_v33 = vmul.f32 %v4883_v21, %v6934_v61  ;;  %v4885_v27 = vpop.eup %4884 }
 0x447   : > { %v1894_v58 = vmul.f32 %v4885_v27, %v6937_v35 }
 0x448   : > { %v1953_v49 = vpack.c.bf16 %v1893_v33, %v1892_v29 }
 0x449   : > { %v4887_v14 = vpop.eup %4886 }
 0x44a   : > { %2017 = vst [vmem:[#allocation2 + $0x1b8] sm:$0xff] %v1953_v49  ;;  %v1895_v24 = vmul.f32 %v4887_v14, %v6944_v42  ;;  %v4889_v28 = vpop.eup %4888 }
 0x44b   : > { %v1896_v20 = vmul.f32 %v4889_v28, %v6947_v30 }
 0x44c   : > { %v1957_v50 = vpack.c.bf16 %v1895_v24, %v1894_v58 }
 0x44d   : > { %v4891_v25 = vpop.eup %4890 }
 0x44e   : > { %2021 = vst [vmem:[#allocation2 + $0x1d8] sm:$0xff] %v1957_v50  ;;  %v1897_v23 = vmul.f32 %v4891_v25, %v6954_v7 }
 0x450   : > { %v1961_v15 = vpack.c.bf16 %v1897_v23, %v1896_v20 }
 0x452   : > { %2025 = vst [vmem:[#allocation2 + $0x1f8] sm:$0xff] %v1961_v15 }
 0x453 PF: > { %v4892_v8 = vld [vmem:[%s5711_s23 + $0x4] ss:$8 sps:$4 sm:$0xff]   ;;  %v4894_v61 = vld [vmem:[%s5711_s23] ss:$8 sps:$4 sm:$0xff]   ;;  %v4895_v35 = vld [vmem:[%s5711_s23 + $0x14] ss:$8 sps:$4 sm:$0xff]  }
 0x454   : > { %2550 = vmatprep.subr.bf16.mxu0 %v4892_v8  ;;  %4356 = vmatprep.subr.bf16.mxu1 %v4892_v8  ;;  %v4897_v42 = vld [vmem:[%s5711_s23 + $0x10] ss:$8 sps:$4 sm:$0xff]   ;;  %v4898_v30 = vld [vmem:[%s5711_s23 + $0x24] ss:$8 sps:$4 sm:$0xff]   ;;  %v4900_v7 = vld [vmem:[%s5711_s23 + $0x20] ss:$8 sps:$4 sm:$0xff]  }
 0x455   : > { %2551 = vmatpush1.bf16.msra.mxu0 %v4894_v61  ;;  %4372 = vmatpush1.bf16.msra.mxu1 %v4894_v61  ;;  %v4901_v54 = vld [vmem:[%s5711_s23 + $0x34] ss:$8 sps:$4 sm:$0xff]   ;;  %v4903_v0 = vld [vmem:[%s5711_s23 + $0x30] ss:$8 sps:$4 sm:$0xff]   ;;  %v4904_v48 = vld [vmem:[%s5711_s23 + $0x44] ss:$8 sps:$4 sm:$0xff]  }
 0x456   : > { %2552 = vmatprep.subr.bf16.mxu0 %v4895_v35  ;;  %4357 = vmatprep.subr.bf16.mxu1 %v4895_v35  ;;  %v4906_v16 = vld [vmem:[%s5711_s23 + $0x40] ss:$8 sps:$4 sm:$0xff]   ;;  %v4907_v11 = vld [vmem:[%s5711_s23 + $0x54] ss:$8 sps:$4 sm:$0xff]   ;;  %v4909_v37 = vld [vmem:[%s5711_s23 + $0x50] ss:$8 sps:$4 sm:$0xff]  }
 0x457   : > { %v4910_v63 = vld [vmem:[%s5711_s23 + $0x64] ss:$8 sps:$4 sm:$0xff]   ;;  %v4912_v26 = vld [vmem:[%s5711_s23 + $0x60] ss:$8 sps:$4 sm:$0xff]   ;;  %v4913_v46 = vld [vmem:[%s5711_s23 + $0x74] ss:$8 sps:$4 sm:$0xff]  }
 0x458   : > { %v2091_v40 = vld [vmem:[#allocation2 + $0x8] sm:$0xff]  ;;  %v4915_v32 = vld [vmem:[%s5711_s23 + $0x70] ss:$8 sps:$4 sm:$0xff]   ;;  %v4919_v2 = vld [vmem:[%s5711_s23 + $0x94] ss:$8 sps:$4 sm:$0xff]   ;;  %p4342_p13 = scmp.ne.s32.totalorder %s5364_s24, 1 }
 0x459   : > { %2553 = vmatpush1.bf16.msra.mxu0 %v4897_v42  ;;  %4373 = vmatpush1.bf16.msra.mxu1 %v4897_v42  ;;  %v4916_v47 = vld [vmem:[%s5711_s23 + $0x84] ss:$8 sps:$4 sm:$0xff]   ;;  %v4918_v45 = vld [vmem:[%s5711_s23 + $0x80] ss:$8 sps:$4 sm:$0xff]   ;;  %v4921_v56 = vld [vmem:[%s5711_s23 + $0x90] ss:$8 sps:$4 sm:$0xff]  }
 0x45a   : > { %2554 = vmatprep.subr.bf16.mxu0 %v4898_v30  ;;  %4358 = vmatprep.subr.bf16.mxu1 %v4898_v30  ;;  %v4922_v3 = vld [vmem:[%s5711_s23 + $0xa4] ss:$8 sps:$4 sm:$0xff]   ;;  %v4924_v12 = vld [vmem:[%s5711_s23 + $0xa0] ss:$8 sps:$4 sm:$0xff]   ;;  %v4925_v18 = vld [vmem:[%s5711_s23 + $0xb4] ss:$8 sps:$4 sm:$0xff]  }
 0x45b   : > { %2582 = vmatprep.mubr.bf16.mxu0 %v2091_v40  ;;  %v4927_v60 = vld [vmem:[%s5711_s23 + $0xb0] ss:$8 sps:$4 sm:$0xff]   ;;  %v4928_v10 = vld [vmem:[%s5711_s23 + $0xc4] ss:$8 sps:$4 sm:$0xff]   ;;  %v4930_v62 = vld [vmem:[%s5711_s23 + $0xc0] ss:$8 sps:$4 sm:$0xff]  }
 0x45c   : > { %v4931_v39 = vld [vmem:[%s5711_s23 + $0xd4] ss:$8 sps:$4 sm:$0xff]   ;;  %v4933_v6 = vld [vmem:[%s5711_s23 + $0xd0] ss:$8 sps:$4 sm:$0xff]   ;;  %v4934_v9 = vld [vmem:[%s5711_s23 + $0xe4] ss:$8 sps:$4 sm:$0xff]  }
 0x45d   : > { %2555 = vmatpush1.bf16.msra.mxu0 %v4900_v7  ;;  %4374 = vmatpush1.bf16.msra.mxu1 %v4900_v7  ;;  %v4936_v44 = vld [vmem:[%s5711_s23 + $0xe0] ss:$8 sps:$4 sm:$0xff]   ;;  %v4937_v17 = vld [vmem:[%s5711_s23 + $0xf4] ss:$8 sps:$4 sm:$0xff]   ;;  %v4939_v59 = vld [vmem:[%s5711_s23 + $0xf0] ss:$8 sps:$4 sm:$0xff]  }
 0x45e   : > { %2556 = vmatprep.subr.bf16.mxu0 %v4901_v54  ;;  %4359 = vmatprep.subr.bf16.mxu1 %v4901_v54  ;;  %v2123_v51 = vld [vmem:[#allocation2 + $0x108] sm:$0xff]  ;;  %v2090_v57 = vld [vmem:[#allocation2] sm:$0xff]  ;;  %v4945_v36 = vld [vmem:[%s5711_s23 + $0x114] ss:$8 sps:$4 sm:$0xff]   ;;  %s7952_s1 = sld [smem:[#allocation44_spill]] (!%p4342_p13) }
 0x45f   : > { %v4942_v34 = vld [vmem:[%s5711_s23 + $0x104] ss:$8 sps:$4 sm:$0xff]   ;;  %v4940_v31 = vld [vmem:[%s5711_s23 + $0x100] ss:$8 sps:$4 sm:$0xff]   ;;  %2662 = vmatprep.mubr.bf16.mxu1 %v2123_v51  ;;  %v4943_v43 = vld [vmem:[%s5711_s23 + $0x110] ss:$8 sps:$4 sm:$0xff]  }
 0x460   : > { %v2122_v38 = vld [vmem:[#allocation2 + $0x100] sm:$0xff]  ;;  %v2095_v22 = vld [vmem:[#allocation2 + $0x28] sm:$0xff]  ;;  %v4951_v55 = vld [vmem:[%s5711_s23 + $0x134] ss:$8 sps:$4 sm:$0xff]  }
 0x461   : > { %2557 = vmatpush1.bf16.msra.mxu0 %v4903_v0  ;;  %4375 = vmatpush1.bf16.msra.mxu1 %v4903_v0  ;;  %v2127_v13 = vld [vmem:[#allocation2 + $0x128] sm:$0xff]  ;;  %v2094_v19 = vld [vmem:[#allocation2 + $0x20] sm:$0xff]  ;;  %v4949_v52 = vld [vmem:[%s5711_s23 + $0x130] ss:$8 sps:$4 sm:$0xff]  }
 0x462   : > { %2558 = vmatprep.subr.bf16.mxu0 %v4904_v48  ;;  %4360 = vmatprep.subr.bf16.mxu1 %v4904_v48  ;;  %v4948_v53 = vld [vmem:[%s5711_s23 + $0x124] ss:$8 sps:$4 sm:$0xff]   ;;  %v4946_v5 = vld [vmem:[%s5711_s23 + $0x120] ss:$8 sps:$4 sm:$0xff]   ;;  %v4957_v49 = vld [vmem:[%s5711_s23 + $0x154] ss:$8 sps:$4 sm:$0xff]  }
 0x463   : > { %v2126_v41 = vld [vmem:[#allocation2 + $0x120] sm:$0xff]  ;;  %v2099_v1 = vld [vmem:[#allocation2 + $0x48] sm:$0xff]  ;;  %v4955_v24 = vld [vmem:[%s5711_s23 + $0x150] ss:$8 sps:$4 sm:$0xff]  }
 0x464   : > { %v2131_v4 = vld [vmem:[#allocation2 + $0x148] sm:$0xff]  ;;  %v2098_v29 = vld [vmem:[#allocation2 + $0x40] sm:$0xff]  ;;  %v4963_v23 = vld [vmem:[%s5711_s23 + $0x174] ss:$8 sps:$4 sm:$0xff]  }
 0x465   : > { %2559 = vmatpush1.bf16.msra.mxu0 %v4906_v16  ;;  %4376 = vmatpush1.bf16.msra.mxu1 %v4906_v16  ;;  %v4954_v21 = vld [vmem:[%s5711_s23 + $0x144] ss:$8 sps:$4 sm:$0xff]   ;;  %v4952_v33 = vld [vmem:[%s5711_s23 + $0x140] ss:$8 sps:$4 sm:$0xff]   ;;  %v4961_v61 = vld [vmem:[%s5711_s23 + $0x170] ss:$8 sps:$4 sm:$0xff]  }
 0x466   : > { %2560 = vmatprep.subr.bf16.mxu0 %v4907_v11  ;;  %4361 = vmatprep.subr.bf16.mxu1 %v4907_v11  ;;  %v2130_v27 = vld [vmem:[#allocation2 + $0x140] sm:$0xff]  ;;  %v2103_v14 = vld [vmem:[#allocation2 + $0x68] sm:$0xff]  ;;  %v4969_v54 = vld [vmem:[%s5711_s23 + $0x194] ss:$8 sps:$4 sm:$0xff]  }
 0x467   : > { %v2135_v58 = vld [vmem:[#allocation2 + $0x168] sm:$0xff]  ;;  %v2102_v50 = vld [vmem:[#allocation2 + $0x60] sm:$0xff]  ;;  %v4967_v16 = vld [vmem:[%s5711_s23 + $0x190] ss:$8 sps:$4 sm:$0xff]  }
 0x468   : > { %v4960_v28 = vld [vmem:[%s5711_s23 + $0x164] ss:$8 sps:$4 sm:$0xff]   ;;  %v4958_v25 = vld [vmem:[%s5711_s23 + $0x160] ss:$8 sps:$4 sm:$0xff]  }
 0x469   : > { %2561 = vmatpush1.bf16.msra.mxu0 %v4909_v37  ;;  %4377 = vmatpush1.bf16.msra.mxu1 %v4909_v37  ;;  %v2134_v20 = vld [vmem:[#allocation2 + $0x160] sm:$0xff]  ;;  %v2107_v15 = vld [vmem:[#allocation2 + $0x88] sm:$0xff] }
 0x46a   : > { %2562 = vmatprep.subr.bf16.mxu0 %v4910_v63  ;;  %4362 = vmatprep.subr.bf16.mxu1 %v4910_v63  ;;  %v2139_v8 = vld [vmem:[#allocation2 + $0x188] sm:$0xff]  ;;  %v2106_v42 = vld [vmem:[#allocation2 + $0x80] sm:$0xff] }
 0x46b   : > { %v4966_v35 = vld [vmem:[%s5711_s23 + $0x184] ss:$8 sps:$4 sm:$0xff]   ;;  %v4964_v30 = vld [vmem:[%s5711_s23 + $0x180] ss:$8 sps:$4 sm:$0xff]  }
 0x46c   : > { %v2138_v7 = vld [vmem:[#allocation2 + $0x180] sm:$0xff]  ;;  %v2111_v0 = vld [vmem:[#allocation2 + $0xa8] sm:$0xff] }
 0x46d   : > { %2563 = vmatpush1.bf16.msra.mxu0 %v4912_v26  ;;  %4378 = vmatpush1.bf16.msra.mxu1 %v4912_v26  ;;  %v2143_v48 = vld [vmem:[#allocation2 + $0x1a8] sm:$0xff]  ;;  %v2110_v37 = vld [vmem:[#allocation2 + $0xa0] sm:$0xff]  ;;  %v4975_v26 = vld [vmem:[%s5711_s23 + $0x1b4] ss:$8 sps:$4 sm:$0xff]  }
 0x46e   : > { %2564 = vmatprep.subr.bf16.mxu0 %v4913_v46  ;;  %4363 = vmatprep.subr.bf16.mxu1 %v4913_v46  ;;  %v4972_v11 = vld [vmem:[%s5711_s23 + $0x1a4] ss:$8 sps:$4 sm:$0xff]   ;;  %v4970_v63 = vld [vmem:[%s5711_s23 + $0x1a0] ss:$8 sps:$4 sm:$0xff]  }
 0x46f   : > { %v2142_v40 = vld [vmem:[#allocation2 + $0x1a0] sm:$0xff]  ;;  %v2115_v46 = vld [vmem:[#allocation2 + $0xc8] sm:$0xff] }
 0x470   : > { %v4990_v51 = vld [vmem:[%s5725_s18 + $0x4] ss:$8 sps:$4 sm:$0xff]  }
 0x471   : > { %2565 = vmatpush1.bf16.msra.mxu0 %v4915_v32  ;;  %4379 = vmatpush1.bf16.msra.mxu1 %v4915_v32  ;;  %v2147_v32 = vld [vmem:[#allocation2 + $0x1c8] sm:$0xff] }
 0x472   : > { %2566 = vmatprep.subr.bf16.mxu0 %v4916_v47  ;;  %4364 = vmatprep.subr.bf16.mxu1 %v4916_v47  ;;  %v4973_v47 = vld [vmem:[%s5711_s23 + $0x1b0] ss:$8 sps:$4 sm:$0xff]  }
 0x475   : > { %2567 = vmatpush1.bf16.msra.mxu0 %v4918_v45  ;;  %4380 = vmatpush1.bf16.msra.mxu1 %v4918_v45  ;;  %v4978_v45 = vld [vmem:[%s5711_s23 + $0x1c4] ss:$8 sps:$4 sm:$0xff]  }
 0x476   : > { %2568 = vmatprep.subr.bf16.mxu0 %v4919_v2  ;;  %4365 = vmatprep.subr.bf16.mxu1 %v4919_v2  ;;  %v2114_v2 = vld [vmem:[#allocation2 + $0xc0] sm:$0xff] }
 0x479   : > { %2569 = vmatpush1.bf16.msra.mxu0 %v4921_v56  ;;  %4381 = vmatpush1.bf16.msra.mxu1 %v4921_v56  ;;  %v4976_v56 = vld [vmem:[%s5711_s23 + $0x1c0] ss:$8 sps:$4 sm:$0xff]  }
 0x47a   : > { %2570 = vmatprep.subr.bf16.mxu0 %v4922_v3  ;;  %4366 = vmatprep.subr.bf16.mxu1 %v4922_v3  ;;  %v2146_v3 = vld [vmem:[#allocation2 + $0x1c0] sm:$0xff] }
 0x47d   : > { %2571 = vmatpush1.bf16.msra.mxu0 %v4924_v12  ;;  %4382 = vmatpush1.bf16.msra.mxu1 %v4924_v12  ;;  %v4981_v12 = vld [vmem:[%s5711_s23 + $0x1d4] ss:$8 sps:$4 sm:$0xff]  }
 0x47e   : > { %2572 = vmatprep.subr.bf16.mxu0 %v4925_v18  ;;  %4367 = vmatprep.subr.bf16.mxu1 %v4925_v18  ;;  %v2119_v18 = vld [vmem:[#allocation2 + $0xe8] sm:$0xff] }
 0x481   : > { %2573 = vmatpush1.bf16.msra.mxu0 %v4927_v60  ;;  %4383 = vmatpush1.bf16.msra.mxu1 %v4927_v60  ;;  %v2151_v60 = vld [vmem:[#allocation2 + $0x1e8] sm:$0xff] }
 0x482   : > { %2574 = vmatprep.subr.bf16.mxu0 %v4928_v10  ;;  %4368 = vmatprep.subr.bf16.mxu1 %v4928_v10  ;;  %v4979_v10 = vld [vmem:[%s5711_s23 + $0x1d0] ss:$8 sps:$4 sm:$0xff]  }
 0x485   : > { %2575 = vmatpush1.bf16.msra.mxu0 %v4930_v62  ;;  %4384 = vmatpush1.bf16.msra.mxu1 %v4930_v62  ;;  %v4984_v62 = vld [vmem:[%s5711_s23 + $0x1e4] ss:$8 sps:$4 sm:$0xff]  }
 0x486   : > { %2576 = vmatprep.subr.bf16.mxu0 %v4931_v39  ;;  %4369 = vmatprep.subr.bf16.mxu1 %v4931_v39  ;;  %v2118_v39 = vld [vmem:[#allocation2 + $0xe0] sm:$0xff] }
 0x489   : > { %2577 = vmatpush1.bf16.msra.mxu0 %v4933_v6  ;;  %4385 = vmatpush1.bf16.msra.mxu1 %v4933_v6  ;;  %v4982_v6 = vld [vmem:[%s5711_s23 + $0x1e0] ss:$8 sps:$4 sm:$0xff]  }
 0x48a   : > { %2578 = vmatprep.subr.bf16.mxu0 %v4934_v9  ;;  %4370 = vmatprep.subr.bf16.mxu1 %v4934_v9  ;;  %v2150_v9 = vld [vmem:[#allocation2 + $0x1e0] sm:$0xff] }
 0x48d   : > { %2579 = vmatpush1.bf16.msra.mxu0 %v4936_v44  ;;  %4386 = vmatpush1.bf16.msra.mxu1 %v4936_v44  ;;  %v4987_v44 = vld [vmem:[%s5711_s23 + $0x1f4] ss:$8 sps:$4 sm:$0xff]  }
 0x48e   : > { %2580 = vmatprep.subr.bf16.mxu0 %v4937_v17  ;;  %4371 = vmatprep.subr.bf16.mxu1 %v4937_v17  ;;  %v2093_v17 = vld [vmem:[#allocation2 + $0x18] sm:$0xff] }
 0x491   : > { %2581 = vmatpush1.bf16.msra.mxu0 %v4939_v59  ;;  %4387 = vmatpush1.bf16.msra.mxu1 %v4939_v59  ;;  %v4988_v59 = vld [vmem:[%s5725_s18] ss:$8 sps:$4 sm:$0xff]  }
 0x492   : > { %2743 = vmatprep.subr.bf16.mxu0 %v4942_v34  ;;  %v4985_v34 = vld [vmem:[%s5711_s23 + $0x1f0] ss:$8 sps:$4 sm:$0xff]   ;;  %3544 = vmatprep.subr.bf16.mxu1 %v4990_v51 }
 0x494   : > { %2583 = vmatmul.mubr.bf16.vlgmr.msra.gmra.mrb[0].mxu0 %v2090_v57  ;;  %2663 = vmatmul.mubr.bf16.vlgmr.msra.gmra.mrb[0].mxu1 %v2122_v38  ;;  %v4993_v57 = vld [vmem:[%s5725_s18 + $0x14] ss:$8 sps:$4 sm:$0xff]   ;;  %v4996_v38 = vld [vmem:[%s5725_s18 + $0x24] ss:$8 sps:$4 sm:$0xff]  }
 0x495   : > { %2744 = vmatpush1.bf16.msra.mxu0 %v4940_v31  ;;  %2592 = vmatprep.mubr.bf16.mxu0 %v2095_v22  ;;  %v4991_v31 = vld [vmem:[%s5725_s18 + $0x10] ss:$8 sps:$4 sm:$0xff]  }
 0x496   : > { %2745 = vmatprep.subr.bf16.mxu0 %v4945_v36  ;;  %2672 = vmatprep.mubr.bf16.mxu1 %v2127_v13  ;;  %v2092_v36 = vld [vmem:[#allocation2 + $0x10] sm:$0xff]  ;;  %v2097_v22 = vld [vmem:[#allocation2 + $0x38] sm:$0xff]  ;;  %v4994_v13 = vld [vmem:[%s5725_s18 + $0x20] ss:$8 sps:$4 sm:$0xff]  }
 0x497   : > { %3545 = vmatpush1.bf16.msra.mxu1 %v4988_v59 }
 0x498   : > { %3546 = vmatprep.subr.bf16.mxu1 %v4993_v57 }
 0x499   : > { %2746 = vmatpush1.bf16.msra.mxu0 %v4943_v43  ;;  %v4999_v43 = vld [vmem:[%s5725_s18 + $0x34] ss:$8 sps:$4 sm:$0xff]  }
 0x49a   : > { %2747 = vmatprep.subr.bf16.mxu0 %v4948_v53  ;;  %v4997_v53 = vld [vmem:[%s5725_s18 + $0x30] ss:$8 sps:$4 sm:$0xff]  }
 0x49b   : > { %3547 = vmatpush1.bf16.msra.mxu1 %v4991_v31 }
 0x49c   : > { %2593 = vmatmul.mubr.bf16.gmra.mrb[4].mxu0 %v2094_v19  ;;  %2673 = vmatmul.mubr.bf16.gmra.mrb[4].mxu1 %v2126_v41  ;;  %v5002_v19 = vld [vmem:[%s5725_s18 + $0x44] ss:$8 sps:$4 sm:$0xff]   ;;  %v2101_v41 = vld [vmem:[#allocation2 + $0x58] sm:$0xff] }
 0x49d   : > { %2748 = vmatpush1.bf16.msra.mxu0 %v4946_v5  ;;  %2602 = vmatprep.mubr.bf16.mxu0 %v2099_v1  ;;  %v2096_v5 = vld [vmem:[#allocation2 + $0x30] sm:$0xff] }
 0x49e   : > { %2749 = vmatprep.subr.bf16.mxu0 %v4951_v55  ;;  %2682 = vmatprep.mubr.bf16.mxu1 %v2131_v4  ;;  %v5000_v55 = vld [vmem:[%s5725_s18 + $0x40] ss:$8 sps:$4 sm:$0xff]   ;;  %v5005_v1 = vld [vmem:[%s5725_s18 + $0x54] ss:$8 sps:$4 sm:$0xff]   ;;  %v5003_v4 = vld [vmem:[%s5725_s18 + $0x50] ss:$8 sps:$4 sm:$0xff]  }
 0x49f   : > { %3548 = vmatprep.subr.bf16.mxu1 %v4996_v38 }
 0x4a0   : > { %3549 = vmatpush1.bf16.msra.mxu1 %v4994_v13 }
 0x4a1   : > { %2750 = vmatpush1.bf16.msra.mxu0 %v4949_v52  ;;  %3550 = vmatprep.subr.bf16.mxu1 %v4999_v43  ;;  %v5008_v52 = vld [vmem:[%s5725_s18 + $0x64] ss:$8 sps:$4 sm:$0xff]  }
 0x4a2   : > { %2751 = vmatprep.subr.bf16.mxu0 %v4954_v21  ;;  %v2100_v21 = vld [vmem:[#allocation2 + $0x50] sm:$0xff] }
 0x4a4   : > { %2603 = vmatmul.mubr.bf16.gmra.mrb[8].mxu0 %v2098_v29  ;;  %2683 = vmatmul.mubr.bf16.gmra.mrb[8].mxu1 %v2130_v27  ;;  %v2105_v29 = vld [vmem:[#allocation2 + $0x78] sm:$0xff] }
 0x4a5   : > { %2752 = vmatpush1.bf16.msra.mxu0 %v4952_v33  ;;  %2612 = vmatprep.mubr.bf16.mxu0 %v2103_v14  ;;  %v5006_v33 = vld [vmem:[%s5725_s18 + $0x60] ss:$8 sps:$4 sm:$0xff]   ;;  %v5011_v27 = vld [vmem:[%s5725_s18 + $0x74] ss:$8 sps:$4 sm:$0xff]   ;;  %v5014_v14 = vld [vmem:[%s5725_s18 + $0x84] ss:$8 sps:$4 sm:$0xff]  }
 0x4a6   : > { %2753 = vmatprep.subr.bf16.mxu0 %v4957_v49  ;;  %2692 = vmatprep.mubr.bf16.mxu1 %v2135_v58  ;;  %v5009_v49 = vld [vmem:[%s5725_s18 + $0x70] ss:$8 sps:$4 sm:$0xff]  }
 0x4a7   : > { %3551 = vmatpush1.bf16.msra.mxu1 %v4997_v53  ;;  %v2104_v58 = vld [vmem:[#allocation2 + $0x70] sm:$0xff] }
 0x4a8   : > { %3552 = vmatprep.subr.bf16.mxu1 %v5002_v19 }
 0x4a9   : > { %2754 = vmatpush1.bf16.msra.mxu0 %v4955_v24  ;;  %v2109_v24 = vld [vmem:[#allocation2 + $0x98] sm:$0xff] }
 0x4aa   : > { %2755 = vmatprep.subr.bf16.mxu0 %v4960_v28  ;;  %v5012_v28 = vld [vmem:[%s5725_s18 + $0x80] ss:$8 sps:$4 sm:$0xff]  }
 0x4ab   : > { %3553 = vmatpush1.bf16.msra.mxu1 %v5000_v55 }
 0x4ac   : > { %2613 = vmatmul.mubr.bf16.gmra.mrb[12].mxu0 %v2102_v50  ;;  %2693 = vmatmul.mubr.bf16.gmra.mrb[12].mxu1 %v2134_v20  ;;  %v5017_v50 = vld [vmem:[%s5725_s18 + $0x94] ss:$8 sps:$4 sm:$0xff]  }
 0x4ad   : > { %2756 = vmatpush1.bf16.msra.mxu0 %v4958_v25  ;;  %2622 = vmatprep.mubr.bf16.mxu0 %v2107_v15  ;;  %v5015_v25 = vld [vmem:[%s5725_s18 + $0x90] ss:$8 sps:$4 sm:$0xff]  }
 0x4ae   : > { %2757 = vmatprep.subr.bf16.mxu0 %v4963_v23  ;;  %2702 = vmatprep.mubr.bf16.mxu1 %v2139_v8  ;;  %v2108_v20 = vld [vmem:[#allocation2 + $0x90] sm:$0xff]  ;;  %v2113_v23 = vld [vmem:[#allocation2 + $0xb8] sm:$0xff] }
 0x4af   : > { %3554 = vmatprep.subr.bf16.mxu1 %v5005_v1  ;;  %v2112_v15 = vld [vmem:[#allocation2 + $0xb0] sm:$0xff]  ;;  %v2117_v8 = vld [vmem:[#allocation2 + $0xd8] sm:$0xff] }
 0x4b0   : > { %3555 = vmatpush1.bf16.msra.mxu1 %v5003_v4 }
 0x4b1   : > { %2758 = vmatpush1.bf16.msra.mxu0 %v4961_v61  ;;  %3556 = vmatprep.subr.bf16.mxu1 %v5008_v52  ;;  %v2116_v61 = vld [vmem:[#allocation2 + $0xd0] sm:$0xff] }
 0x4b2   : > { %2759 = vmatprep.subr.bf16.mxu0 %v4966_v35  ;;  %v2121_v35 = vld [vmem:[#allocation2 + $0xf8] sm:$0xff] }
 0x4b4   : > { %2623 = vmatmul.mubr.bf16.gmra.mrb[16].mxu0 %v2106_v42  ;;  %2703 = vmatmul.mubr.bf16.gmra.mrb[16].mxu1 %v2138_v7  ;;  %v2120_v42 = vld [vmem:[#allocation2 + $0xf0] sm:$0xff] }
 0x4b5   : > { %2760 = vmatpush1.bf16.msra.mxu0 %v4964_v30  ;;  %2632 = vmatprep.mubr.bf16.mxu0 %v2111_v0  ;;  %v2125_v30 = vld [vmem:[#allocation2 + $0x118] sm:$0xff]  ;;  %v2124_v7 = vld [vmem:[#allocation2 + $0x110] sm:$0xff] }
 0x4b6   : > { %2761 = vmatprep.subr.bf16.mxu0 %v4969_v54  ;;  %2712 = vmatprep.mubr.bf16.mxu1 %v2143_v48  ;;  %v2129_v54 = vld [vmem:[#allocation2 + $0x138] sm:$0xff]  ;;  %v2128_v0 = vld [vmem:[#allocation2 + $0x130] sm:$0xff] }
 0x4b7   : > { %3557 = vmatpush1.bf16.msra.mxu1 %v5006_v33  ;;  %v2133_v48 = vld [vmem:[#allocation2 + $0x158] sm:$0xff] }
 0x4b8   : > { %3558 = vmatprep.subr.bf16.mxu1 %v5011_v27 }
 0x4b9   : > { %2762 = vmatpush1.bf16.msra.mxu0 %v4967_v16  ;;  %v2132_v16 = vld [vmem:[#allocation2 + $0x150] sm:$0xff] }
 0x4ba   : > { %2763 = vmatprep.subr.bf16.mxu0 %v4972_v11  ;;  %v2137_v11 = vld [vmem:[#allocation2 + $0x178] sm:$0xff] }
 0x4bb   : > { %3559 = vmatpush1.bf16.msra.mxu1 %v5009_v49 }
 0x4bc   : > { %2633 = vmatmul.mubr.bf16.gmra.mrb[20].mxu0 %v2110_v37  ;;  %2713 = vmatmul.mubr.bf16.gmra.mrb[20].mxu1 %v2142_v40  ;;  %v5020_v37 = vld [vmem:[%s5725_s18 + $0xa4] ss:$8 sps:$4 sm:$0xff]   ;;  %v2136_v40 = vld [vmem:[#allocation2 + $0x170] sm:$0xff] }
 0x4bd   : > { %2764 = vmatpush1.bf16.msra.mxu0 %v4970_v63  ;;  %2642 = vmatprep.mubr.bf16.mxu0 %v2115_v46  ;;  %v5018_v63 = vld [vmem:[%s5725_s18 + $0xa0] ss:$8 sps:$4 sm:$0xff]   ;;  %v5023_v46 = vld [vmem:[%s5725_s18 + $0xb4] ss:$8 sps:$4 sm:$0xff]  }
 0x4be   : > { %2765 = vmatprep.subr.bf16.mxu0 %v4975_v26  ;;  %2722 = vmatprep.mubr.bf16.mxu1 %v2147_v32  ;;  %v2141_v26 = vld [vmem:[#allocation2 + $0x198] sm:$0xff] }
 0x4bf   : > { %3560 = vmatprep.subr.bf16.mxu1 %v5014_v14  ;;  %v5021_v32 = vld [vmem:[%s5725_s18 + $0xb0] ss:$8 sps:$4 sm:$0xff]  }
 0x4c0   : > { %3561 = vmatpush1.bf16.msra.mxu1 %v5012_v28 }
 0x4c1   : > { %2766 = vmatpush1.bf16.msra.mxu0 %v4973_v47  ;;  %3562 = vmatprep.subr.bf16.mxu1 %v5017_v50  ;;  %v5026_v47 = vld [vmem:[%s5725_s18 + $0xc4] ss:$8 sps:$4 sm:$0xff]  }
 0x4c2   : > { %2767 = vmatprep.subr.bf16.mxu0 %v4978_v45  ;;  %v5024_v45 = vld [vmem:[%s5725_s18 + $0xc0] ss:$8 sps:$4 sm:$0xff]  }
 0x4c4   : > { %2643 = vmatmul.mubr.bf16.gmra.mrb[24].mxu0 %v2114_v2  ;;  %2723 = vmatmul.mubr.bf16.gmra.mrb[24].mxu1 %v2146_v3  ;;  %v2140_v2 = vld [vmem:[#allocation2 + $0x190] sm:$0xff] }
 0x4c5   : > { %2768 = vmatpush1.bf16.msra.mxu0 %v4976_v56  ;;  %2652 = vmatprep.mubr.bf16.mxu0 %v2119_v18  ;;  %v2145_v56 = vld [vmem:[#allocation2 + $0x1b8] sm:$0xff]  ;;  %v5032_v18 = vld [vmem:[%s5725_s18 + $0xe4] ss:$8 sps:$4 sm:$0xff]  }
 0x4c6   : > { %2769 = vmatprep.subr.bf16.mxu0 %v4981_v12  ;;  %2732 = vmatprep.mubr.bf16.mxu1 %v2151_v60  ;;  %v5029_v3 = vld [vmem:[%s5725_s18 + $0xd4] ss:$8 sps:$4 sm:$0xff]   ;;  %v5027_v12 = vld [vmem:[%s5725_s18 + $0xd0] ss:$8 sps:$4 sm:$0xff]  }
 0x4c7   : > { %3563 = vmatpush1.bf16.msra.mxu1 %v5015_v25  ;;  %v2144_v60 = vld [vmem:[#allocation2 + $0x1b0] sm:$0xff] }
 0x4c8   : > { %3564 = vmatprep.subr.bf16.mxu1 %v5020_v37 }
 0x4c9   : > { %2770 = vmatpush1.bf16.msra.mxu0 %v4979_v10  ;;  %v5030_v10 = vld [vmem:[%s5725_s18 + $0xe0] ss:$8 sps:$4 sm:$0xff]  }
 0x4ca   : > { %2771 = vmatprep.subr.bf16.mxu0 %v4984_v62  ;;  %v2149_v62 = vld [vmem:[#allocation2 + $0x1d8] sm:$0xff] }
 0x4cb   : > { %3565 = vmatpush1.bf16.msra.mxu1 %v5018_v63 }
 0x4cc   : > { %2653 = vmatmul.mubr.bf16.gmra.mrb[28].mxu0 %v2118_v39  ;;  %2733 = vmatmul.mubr.bf16.gmra.mrb[28].mxu1 %v2150_v9  ;;  %v5035_v39 = vld [vmem:[%s5725_s18 + $0xf4] ss:$8 sps:$4 sm:$0xff]  }
 0x4cd   : > { %2772 = vmatpush1.bf16.msra.mxu0 %v4982_v6  ;;  %2775 = vmatprep.mubr.bf16.mxu0 %v2093_v17  ;;  %v5033_v6 = vld [vmem:[%s5725_s18 + $0xf0] ss:$8 sps:$4 sm:$0xff]  }
 0x4ce   : > { %2773 = vmatprep.subr.bf16.mxu0 %v4987_v44  ;;  %3566 = vmatprep.subr.bf16.mxu1 %v5023_v46  ;;  %v2148_v9 = vld [vmem:[#allocation2 + $0x1d0] sm:$0xff]  ;;  %v2153_v44 = vld [vmem:[#allocation2 + $0x1f8] sm:$0xff] }
 0x4cf   : > { %3567 = vmatpush1.bf16.msra.mxu1 %v5021_v32  ;;  %v2152_v17 = vld [vmem:[#allocation2 + $0x1f0] sm:$0xff] }
 0x4d0   : > { %3568 = vmatprep.subr.bf16.mxu1 %v5026_v47 }
 0x4d1   : > { %2774 = vmatpush1.bf16.msra.mxu0 %v4985_v34 }
 0x4d3   : > { %3569 = vmatpush1.bf16.msra.mxu1 %v5024_v45 }
 0x4d4   : > { %2776 = vmatmul.mubr.bf16.vlgmr.msra.gmra.mrb[0].mxu0 %v2092_v36  ;;  %3570 = vmatprep.subr.bf16.mxu1 %v5029_v3 }
 0x4d5   : > { %2785 = vmatprep.mubr.bf16.mxu0 %v2097_v22 }
 0x4d7   : > { %3571 = vmatpush1.bf16.msra.mxu1 %v5027_v12 }
 0x4d8   : > { %3572 = vmatprep.subr.bf16.mxu1 %v5032_v18 }
 0x4db   : > { %3573 = vmatpush1.bf16.msra.mxu1 %v5030_v10 }
 0x4dc   : > { %2786 = vmatmul.mubr.bf16.gmra.mrb[4].mxu0 %v2096_v5  ;;  %3574 = vmatprep.subr.bf16.mxu1 %v5035_v39 }
 0x4dd   : > { %2795 = vmatprep.mubr.bf16.mxu0 %v2101_v41 }
 0x4df   : > { %3575 = vmatpush1.bf16.msra.mxu1 %v5033_v6 }
 0x4e4   : > { %2796 = vmatmul.mubr.bf16.gmra.mrb[8].mxu0 %v2100_v21 }
 0x4e5   : > { %2805 = vmatprep.mubr.bf16.mxu0 %v2105_v29 }
 0x4ec   : > { %2806 = vmatmul.mubr.bf16.gmra.mrb[12].mxu0 %v2104_v58 }
 0x4ed   : > { %2815 = vmatprep.mubr.bf16.mxu0 %v2109_v24  ;;  %v2220_v24 = vlaneseq }
 0x4f4   : > { %2816 = vmatmul.mubr.bf16.gmra.mrb[16].mxu0 %v2108_v20  ;;  %v7241_v20 = vshrl.u32 %v2220_v24, 7 }
 0x4f5   : > { %2825 = vmatprep.mubr.bf16.mxu0 %v2113_v23 }
 0x4f6   : > { %7949 = vst [vmem:[#allocation40_spill] sm:$0xff] %v7241_v20 }
 0x4fc   : > { %2826 = vmatmul.mubr.bf16.gmra.mrb[20].mxu0 %v2112_v15  ;;  %v7822_v15 = vsub.s32 0, %v7241_v20 }
 0x4fd   : > { %2835 = vmatprep.mubr.bf16.mxu0 %v2117_v8 }
 0x504   : > { %2836 = vmatmul.mubr.bf16.gmra.mrb[24].mxu0 %v2116_v61  ;;  %v2218_v61 = vld [vmem:[%s353_s15] sm:$0x3] }
 0x505   : > { %2845 = vmatprep.mubr.bf16.mxu0 %v2121_v35  ;;  %v7821_v35 = vsub.s32 1, %v7241_v20 }
 0x50c   : > { %2846 = vmatmul.mubr.bf16.gmra.mrb[28].mxu0 %v2120_v42 }
 0x50d   : > { %2855 = vmatprep.mubr.bf16.mxu0 %v2125_v30 }
 0x514   : > { %2856 = vmatmul.mubr.bf16.gmra.mrb[32].mxu0 %v2124_v7  ;;  %v7260_v7 = vrot.slane %v2218_v61, %v7822_v15 }
 0x515   : > { %2865 = vmatprep.mubr.bf16.mxu0 %v2129_v54  ;;  %v7264_v54 = vrot.slane %v2218_v61, %v7821_v35 }
 0x51c   : > { %2866 = vmatmul.mubr.bf16.gmra.mrb[36].mxu0 %v2128_v0 }
 0x51d   : > { %2875 = vmatprep.mubr.bf16.mxu0 %v2133_v48 }
 0x524   : > { %2876 = vmatmul.mubr.bf16.gmra.mrb[40].mxu0 %v2132_v16 }
 0x525   : > { %2885 = vmatprep.mubr.bf16.mxu0 %v2137_v11 }
 0x52c   : > { %2886 = vmatmul.mubr.bf16.gmra.mrb[44].mxu0 %v2136_v40 }
 0x52d   : > { %2895 = vmatprep.mubr.bf16.mxu0 %v2141_v26 }
 0x534   : > { %2896 = vmatmul.mubr.bf16.gmra.mrb[48].mxu0 %v2140_v2 }
 0x535   : > { %2905 = vmatprep.mubr.bf16.mxu0 %v2145_v56 }
 0x53c   : > { %2906 = vmatmul.mubr.bf16.gmra.mrb[52].mxu0 %v2144_v60 }
 0x53d   : > { %2915 = vmatprep.mubr.bf16.mxu0 %v2149_v62 }
 0x544   : > { %2916 = vmatmul.mubr.bf16.gmra.mrb[56].mxu0 %v2148_v9 }
 0x545   : > { %2925 = vmatprep.mubr.bf16.mxu0 %v2153_v44 }
 0x54c   : > { %2926 = vmatmul.mubr.bf16.gmra.mrb[60].mxu0 %v2152_v17 }
 0x567   : > { %v7185_v59 = vpop.f32.mrb[0].mxu1 }
 0x568   : > { %v7187_v51 = vpop.f32.mrb[1].mxu1 }
 0x569   : > { %v7189_v34 = vpop.f32.mrb[2].mxu1 }
 0x56a   : > { %v7191_v57 = vpop.f32.mrb[3].mxu1 }
 0x56f   : > { %v7193_v31 = vpop.f32.mrb[4].mxu1 }
 0x570   : > { %v7195_v38 = vpop.f32.mrb[5].mxu1 }
 0x571   : > { %v7197_v36 = vpop.f32.mrb[6].mxu1 }
 0x572   : > { %v7199_v22 = vpop.f32.mrb[7].mxu1 }
 0x577   : > { %v7201_v13 = vpop.f32.mrb[8].mxu1 }
 0x578   : > { %v7203_v43 = vpop.f32.mrb[9].mxu1 }
 0x579   : > { %v7205_v53 = vpop.f32.mrb[10].mxu1 }
 0x57a   : > { %v7207_v19 = vpop.f32.mrb[11].mxu1 }
 0x57f   : > { %v7209_v5 = vpop.f32.mrb[12].mxu1 }
 0x580   : > { %v7211_v41 = vpop.f32.mrb[13].mxu1 }
 0x581   : > { %v7213_v55 = vpop.f32.mrb[14].mxu1 }
 0x582   : > { %v7215_v1 = vpop.f32.mrb[15].mxu1 }
 0x587   : > { %v7217_v4 = vpop.f32.mrb[16].mxu1 }
 0x588   : > { %v7219_v52 = vpop.f32.mrb[17].mxu1 }
 0x589   : > { %v7221_v21 = vpop.f32.mrb[18].mxu1 }
 0x58a   : > { %v7223_v29 = vpop.f32.mrb[19].mxu1 }
 0x58f   : > { %v7225_v33 = vpop.f32.mrb[20].mxu1 }
 0x590   : > { %v7227_v27 = vpop.f32.mrb[21].mxu1 }
 0x591   : > { %v7229_v49 = vpop.f32.mrb[22].mxu1 }
 0x592   : > { %v7231_v14 = vpop.f32.mrb[23].mxu1 }
 0x597   : > { %v7233_v58 = vpop.f32.mrb[24].mxu1 }
 0x598   : > { %v7235_v28 = vpop.f32.mrb[25].mxu1 }
 0x599   : > { %v7237_v50 = vpop.f32.mrb[26].mxu1 }
 0x59a   : > { %v7239_v25 = vpop.f32.mrb[27].mxu1 }
 0x59f   : > { %v7243_v23 = vpop.f32.mrb[28].mxu1 }
 0x5a0   : > { %v7246_v8 = vpop.f32.mrb[29].mxu1 }
 0x5a1   : > { %v7254_v42 = vpop.f32.mrb[30].mxu1 }
 0x5a2   : > { %v7256_v30 = vpop.f32.mrb[31].mxu1 }
 0x5a3   : > { %7950 = vst [vmem:[#allocation41_spill] sm:$0xff] %v7256_v30 }
 0x5a7   : > { %v2777_v0 = vpop.f32.mrb[0].mxu0 }
 0x5a8   : > { %v4388_v48 = vadd.f32 %v2777_v0, %v7260_v7  ;;  %v2779_v16 = vpop.f32.mrb[1].mxu0 }
 0x5a9   : > { %v4389_v11 = vadd.f32 %v2779_v16, %v7264_v54  ;;  %v2781_v37 = vpop.f32.mrb[2].mxu0 }
 0x5aa   : > { %v3000_v63 = vmul.f32 0.70710677, %v4388_v48  ;;  %v4390_v40 = vadd.f32 %v2781_v37, %v7260_v7  ;;  %v2783_v26 = vpop.f32.mrb[3].mxu0 }
 0x5ab   : > { %v3001_v46 = vmul.f32 0.70710677, %v4389_v11  ;;  %v4391_v32 = vadd.f32 %v2783_v26, %v7264_v54 }
 0x5ac   : > { %5036 = verf.f32 %v3000_v63  ;;  %v3002_v47 = vmul.f32 0.70710677, %v4390_v40 }
 0x5ad   : > { %5038 = verf.f32 %v3001_v46  ;;  %v3003_v45 = vmul.f32 0.70710677, %v4391_v32 }
 0x5ae   : > { %5040 = verf.f32 %v3002_v47  ;;  %v2936_v47 = vmul.f32 0.5, %v4388_v48 }
 0x5af   : > { %5042 = verf.f32 %v3003_v45  ;;  %v2787_v2 = vpop.f32.mrb[4].mxu0  ;;  %v2938_v45 = vmul.f32 0.5, %v4390_v40 }
 0x5b0   : > { %v4392_v56 = vadd.f32 %v2787_v2, %v7260_v7  ;;  %v2789_v3 = vpop.f32.mrb[5].mxu0 }
 0x5b1   : > { %v4393_v12 = vadd.f32 %v2789_v3, %v7264_v54  ;;  %v2791_v18 = vpop.f32.mrb[6].mxu0 }
 0x5b2   : > { %v3004_v60 = vmul.f32 0.70710677, %v4392_v56  ;;  %v4394_v10 = vadd.f32 %v2791_v18, %v7260_v7  ;;  %v2793_v62 = vpop.f32.mrb[7].mxu0 }
 0x5b3   : > { %v3005_v39 = vmul.f32 0.70710677, %v4393_v12  ;;  %v4395_v6 = vadd.f32 %v2793_v62, %v7264_v54  ;;  %v2939_v62 = vmul.f32 0.5, %v4391_v32 }
 0x5b4   : > { %5044 = verf.f32 %v3004_v60  ;;  %v3006_v9 = vmul.f32 0.70710677, %v4394_v10  ;;  %v2937_v60 = vmul.f32 0.5, %v4389_v11 }
 0x5b5   : > { %5046 = verf.f32 %v3005_v39  ;;  %v3007_v44 = vmul.f32 0.70710677, %v4395_v6 }
 0x5b6   : > { %v5037_v17 = vpop.eup %5036  ;;  %5048 = verf.f32 %v3006_v9 }
 0x5b7   : > { %v5039_v24 = vpop.eup %5038  ;;  %v3128_v61 = vadd.f32 1.0, %v5037_v17  ;;  %5050 = verf.f32 %v3007_v44  ;;  %v2797_v0 = vpop.f32.mrb[8].mxu0 }
 0x5b8   : > { %v5041_v16 = vpop.eup %5040  ;;  %v3129_v37 = vadd.f32 1.0, %v5039_v24  ;;  %v7275_v63 = vadd.f32 %v2797_v0, %v7260_v7  ;;  %v2799_v26 = vpop.f32.mrb[9].mxu0 }
 0x5b9   : > { %v5043_v46 = vpop.eup %5042  ;;  %v3130_v2 = vadd.f32 1.0, %v5041_v16  ;;  %v7278_v3 = vadd.f32 %v2799_v26, %v7264_v54  ;;  %v2801_v18 = vpop.f32.mrb[10].mxu0  ;;  %v3192_v17 = vmul.f32 %v3128_v61, %v2936_v47 }
 0x5ba   : > { %v3131_v39 = vadd.f32 1.0, %v5043_v46  ;;  %v3008_v9 = vmul.f32 0.70710677, %v7275_v63  ;;  %v2803_v44 = vpop.f32.mrb[11].mxu0  ;;  %v4398_v35 = vadd.f32 %v2801_v18, %v7260_v7  ;;  %v3193_v15 = vmul.f32 %v3129_v37, %v2937_v60 }
 0x5bb   : > { %v3194_v24 = vmul.f32 %v3130_v2, %v2938_v45  ;;  %v3009_v0 = vmul.f32 0.70710677, %v7278_v3  ;;  %v4399_v40 = vadd.f32 %v2803_v44, %v7264_v54  ;;  %v2940_v60 = vmul.f32 0.5, %v4392_v56 }
 0x5bc   : > { %v3195_v48 = vmul.f32 %v3131_v39, %v2939_v62  ;;  %5052 = verf.f32 %v3008_v9  ;;  %v3010_v26 = vmul.f32 0.70710677, %v4398_v35  ;;  %v2942_v62 = vmul.f32 0.5, %v4394_v10 }
 0x5bd   : > { %v3320_v16 = vpack.c.bf16 %v3194_v24, %v3192_v17  ;;  %5054 = verf.f32 %v3009_v0  ;;  %v3011_v32 = vmul.f32 0.70710677, %v4399_v40  ;;  %v2941_v44 = vmul.f32 0.5, %v4393_v12 }
 0x5be   : > { %v5045_v11 = vpop.eup %5044  ;;  %v3321_v46 = vpack.c.bf16 %v3195_v48, %v3193_v15  ;;  %5056 = verf.f32 %v3010_v26  ;;  %v2943_v17 = vmul.f32 0.5, %v4395_v6 }
 0x5bf   : > { %v5047_v20 = vpop.eup %5046  ;;  %v3132_v30 = vadd.f32 1.0, %v5045_v11  ;;  %v2807_v61 = vpop.f32.mrb[12].mxu0  ;;  %5058 = verf.f32 %v3011_v32 }
 0x5c0   : > { %v5049_v47 = vpop.eup %5048  ;;  %v3133_v45 = vadd.f32 1.0, %v5047_v20  ;;  %v7285_v2 = vadd.f32 %v2807_v61, %v7260_v7  ;;  %v2809_v37 = vpop.f32.mrb[13].mxu0  ;;  %3576 = vmatprep.mubr.bf16.mxu1 %v3321_v46 }
 0x5c1   : > { %v5051_v18 = vpop.eup %5050  ;;  %v3134_v39 = vadd.f32 1.0, %v5049_v47  ;;  %v7288_v9 = vadd.f32 %v2809_v37, %v7264_v54  ;;  %v2811_v15 = vpop.f32.mrb[14].mxu0  ;;  %3577 = vmatmul.mubr.bf16.vlgmr.msra.gmra.mrb[32].mxu1 %v3320_v16  ;;  %v3196_v48 = vmul.f32 %v3132_v30, %v2940_v60 }
 0x5c2   : > { %v3135_v24 = vadd.f32 1.0, %v5051_v18  ;;  %v3012_v20 = vmul.f32 0.70710677, %v7285_v2  ;;  %v2813_v0 = vpop.f32.mrb[15].mxu0  ;;  %v4402_v32 = vadd.f32 %v2811_v15, %v7260_v7  ;;  %v3197_v56 = vmul.f32 %v3133_v45, %v2941_v44 }
 0x5c3   : > { %v3198_v26 = vmul.f32 %v3134_v39, %v2942_v62  ;;  %v3013_v11 = vmul.f32 0.70710677, %v7288_v9  ;;  %v4403_v46 = vadd.f32 %v2813_v0, %v7264_v54  ;;  %v2944_v39 = vmul.f32 0.5, %v7275_v63 }
 0x5c4   : > { %v3199_v10 = vmul.f32 %v3135_v24, %v2943_v17  ;;  %5060 = verf.f32 %v3012_v20  ;;  %v3014_v61 = vmul.f32 0.70710677, %v4402_v32  ;;  %v2945_v20 = vmul.f32 0.5, %v7278_v3 }
 0x5c5   : > { %5062 = verf.f32 %v3013_v11  ;;  %v3322_v16 = vpack.c.bf16 %v3198_v26, %v3196_v48  ;;  %v3015_v6 = vmul.f32 0.70710677, %v4403_v46  ;;  %v2946_v0 = vmul.f32 0.5, %v4398_v35 }
 0x5c6   : > { %v5053_v12 = vpop.eup %5052  ;;  %v3323_v47 = vpack.c.bf16 %v3199_v10, %v3197_v56  ;;  %5064 = verf.f32 %v3014_v61  ;;  %v2947_v56 = vmul.f32 0.5, %v4399_v40 }
 0x5c7   : > { %v5055_v37 = vpop.eup %5054  ;;  %v2817_v18 = vpop.f32.mrb[16].mxu0  ;;  %v3136_v30 = vadd.f32 1.0, %v5053_v12  ;;  %5066 = verf.f32 %v3015_v6 }
 0x5c8   : > { %v7295_v60 = vadd.f32 %v2817_v18, %v7260_v7  ;;  %v2819_v62 = vpop.f32.mrb[17].mxu0  ;;  %3586 = vmatprep.mubr.bf16.mxu1 %v3323_v47  ;;  %v5057_v45 = vpop.eup %5056  ;;  %v3137_v15 = vadd.f32 1.0, %v5055_v37 }
 0x5c9   : > { %v7299_v44 = vadd.f32 %v2819_v62, %v7264_v54  ;;  %v2821_v17 = vpop.f32.mrb[18].mxu0  ;;  %3587 = vmatmul.mubr.bf16.gmra.mrb[36].mxu1 %v3322_v16  ;;  %v5059_v24 = vpop.eup %5058  ;;  %v3138_v48 = vadd.f32 1.0, %v5057_v45  ;;  %v3200_v12 = vmul.f32 %v3136_v30, %v2944_v39 }
 0x5ca   : > { %v3016_v26 = vmul.f32 0.70710677, %v7295_v60  ;;  %v2823_v11 = vpop.f32.mrb[19].mxu0  ;;  %v3139_v10 = vadd.f32 1.0, %v5059_v24  ;;  %v7305_v63 = vadd.f32 %v2821_v17, %v7260_v7  ;;  %v3201_v47 = vmul.f32 %v3137_v15, %v2945_v20 }
 0x5cb   : > { %v3017_v61 = vmul.f32 0.70710677, %v7299_v44  ;;  %v3202_v6 = vmul.f32 %v3138_v48, %v2946_v0  ;;  %v7308_v16 = vadd.f32 %v2823_v11, %v7264_v54  ;;  %v2948_v15 = vmul.f32 0.5, %v7285_v2 }
 0x5cc   : > { %5068 = verf.f32 %v3016_v26  ;;  %v3203_v3 = vmul.f32 %v3139_v10, %v2947_v56  ;;  %v3018_v35 = vmul.f32 0.70710677, %v7305_v63  ;;  %v2949_v56 = vmul.f32 0.5, %v7288_v9 }
 0x5cd   : > { %5070 = verf.f32 %v3017_v61  ;;  %v3019_v40 = vmul.f32 0.70710677, %v7308_v16  ;;  %v3324_v18 = vpack.c.bf16 %v3202_v6, %v3200_v12  ;;  %v2950_v10 = vmul.f32 0.5, %v4402_v32 }
 0x5ce   : > { %v5061_v37 = vpop.eup %5060  ;;  %5072 = verf.f32 %v3018_v35  ;;  %v3325_v17 = vpack.c.bf16 %v3203_v3, %v3201_v47  ;;  %v2951_v47 = vmul.f32 0.5, %v4403_v46 }
 0x5cf   : > { %v5063_v62 = vpop.eup %5062  ;;  %v2827_v45 = vpop.f32.mrb[20].mxu0  ;;  %v3140_v24 = vadd.f32 1.0, %v5061_v37  ;;  %5074 = verf.f32 %v3019_v40 }
 0x5d0   : > { %v7313_v30 = vadd.f32 %v2827_v45, %v7260_v7  ;;  %v2829_v39 = vpop.f32.mrb[21].mxu0  ;;  %v5065_v0 = vpop.eup %5064  ;;  %v3141_v20 = vadd.f32 1.0, %v5063_v62  ;;  %3596 = vmatprep.mubr.bf16.mxu1 %v3325_v17 }
 0x5d1   : > { %v7317_v48 = vadd.f32 %v2829_v39, %v7264_v54  ;;  %v2831_v26 = vpop.f32.mrb[22].mxu0  ;;  %v5067_v11 = vpop.eup %5066  ;;  %v3142_v61 = vadd.f32 1.0, %v5065_v0  ;;  %3597 = vmatmul.mubr.bf16.gmra.mrb[40].mxu1 %v3324_v18  ;;  %v3204_v37 = vmul.f32 %v3140_v24, %v2948_v15 }
 0x5d2   : > { %v3020_v12 = vmul.f32 0.70710677, %v7313_v30  ;;  %v2833_v6 = vpop.f32.mrb[23].mxu0  ;;  %v3143_v3 = vadd.f32 1.0, %v5067_v11  ;;  %v7323_v2 = vadd.f32 %v2831_v26, %v7260_v7  ;;  %v3205_v9 = vmul.f32 %v3141_v20, %v2949_v56 }
 0x5d3   : > { %v3021_v35 = vmul.f32 0.70710677, %v7317_v48  ;;  %v3206_v40 = vmul.f32 %v3142_v61, %v2950_v10  ;;  %v7326_v62 = vadd.f32 %v2833_v6, %v7264_v54  ;;  %v2952_v20 = vmul.f32 0.5, %v7295_v60 }
 0x5d4   : > { %5076 = verf.f32 %v3020_v12  ;;  %v3207_v32 = vmul.f32 %v3143_v3, %v2951_v47  ;;  %v3022_v45 = vmul.f32 0.70710677, %v7323_v2  ;;  %v2953_v47 = vmul.f32 0.5, %v7299_v44 }
 0x5d5   : > { %5078 = verf.f32 %v3021_v35  ;;  %v3023_v46 = vmul.f32 0.70710677, %v7326_v62  ;;  %v3326_v17 = vpack.c.bf16 %v3206_v40, %v3204_v37  ;;  %v2954_v3 = vmul.f32 0.5, %v7305_v63 }
 0x5d6   : > { %v5069_v18 = vpop.eup %5068  ;;  %5080 = verf.f32 %v3022_v45  ;;  %v3327_v26 = vpack.c.bf16 %v3207_v32, %v3205_v9  ;;  %v2955_v9 = vmul.f32 0.5, %v7308_v16 }
 0x5d7   : > { %v5071_v39 = vpop.eup %5070  ;;  %v2837_v0 = vpop.f32.mrb[24].mxu0  ;;  %v3144_v11 = vadd.f32 1.0, %v5069_v18  ;;  %5082 = verf.f32 %v3023_v46 }
 0x5d8   : > { %v7331_v24 = vadd.f32 %v2837_v0, %v7260_v7  ;;  %v2839_v15 = vpop.f32.mrb[25].mxu0  ;;  %v5073_v10 = vpop.eup %5072  ;;  %v3145_v56 = vadd.f32 1.0, %v5071_v39  ;;  %3606 = vmatprep.mubr.bf16.mxu1 %v3327_v26 }
 0x5d9   : > { %v7335_v61 = vadd.f32 %v2839_v15, %v7264_v54  ;;  %v2841_v12 = vpop.f32.mrb[26].mxu0  ;;  %v5075_v6 = vpop.eup %5074  ;;  %v3146_v35 = vadd.f32 1.0, %v5073_v10  ;;  %3607 = vmatmul.mubr.bf16.gmra.mrb[44].mxu1 %v3326_v17  ;;  %v3208_v18 = vmul.f32 %v3144_v11, %v2952_v20 }
 0x5da   : > { %v3024_v37 = vmul.f32 0.70710677, %v7331_v24  ;;  %v2843_v40 = vpop.f32.mrb[27].mxu0  ;;  %v3147_v32 = vadd.f32 1.0, %v5075_v6  ;;  %v7343_v45 = vadd.f32 %v2841_v12, %v7260_v7  ;;  %v3209_v63 = vmul.f32 %v3145_v56, %v2953_v47 }
 0x5db   : > { %v3025_v60 = vmul.f32 0.70710677, %v7335_v61  ;;  %v3210_v46 = vmul.f32 %v3146_v35, %v2954_v3  ;;  %v7346_v44 = vadd.f32 %v2843_v40, %v7264_v54  ;;  %v2665_v56 = vadd.f32 %v7185_v59, %v7260_v7 }
 0x5dc   : > { %5084 = verf.f32 %v3024_v37  ;;  %v3211_v39 = vmul.f32 %v3147_v32, %v2955_v9  ;;  %v3026_v17 = vmul.f32 0.70710677, %v7343_v45  ;;  %v2956_v3 = vmul.f32 0.5, %v7313_v30 }
 0x5dd   : > { %5086 = verf.f32 %v3025_v60  ;;  %v3027_v16 = vmul.f32 0.70710677, %v7346_v44  ;;  %v3328_v26 = vpack.c.bf16 %v3210_v46, %v3208_v18  ;;  %v2667_v9 = vadd.f32 %v7187_v51, %v7264_v54 }
 0x5de   : > { %v5077_v0 = vpop.eup %5076  ;;  %5088 = verf.f32 %v3026_v17  ;;  %v3329_v12 = vpack.c.bf16 %v3211_v39, %v3209_v63  ;;  %v2957_v60 = vmul.f32 0.5, %v7317_v48  ;;  %v2958_v18 = vmul.f32 0.5, %v7323_v2 }
 0x5df   : > { %v5079_v15 = vpop.eup %5078  ;;  %v2847_v10 = vpop.f32.mrb[28].mxu0  ;;  %v3148_v6 = vadd.f32 1.0, %v5077_v0  ;;  %5090 = verf.f32 %v3027_v16  ;;  %v2959_v30 = vmul.f32 0.5, %v7326_v62 }
 0x5e0   : > { %v7351_v11 = vadd.f32 %v2847_v10, %v7260_v7  ;;  %v2849_v20 = vpop.f32.mrb[29].mxu0  ;;  %v5081_v47 = vpop.eup %5080  ;;  %v3149_v35 = vadd.f32 1.0, %v5079_v15  ;;  %3616 = vmatprep.mubr.bf16.mxu1 %v3329_v12 }
 0x5e1   : > { %v7357_v37 = vadd.f32 %v2849_v20, %v7264_v54  ;;  %v2851_v40 = vpop.f32.mrb[30].mxu0  ;;  %v5083_v32 = vpop.eup %5082  ;;  %v3150_v46 = vadd.f32 1.0, %v5081_v47  ;;  %3617 = vmatmul.mubr.bf16.gmra.mrb[48].mxu1 %v3328_v26  ;;  %v3212_v16 = vmul.f32 %v3148_v6, %v2956_v3  ;;  %v2669_v47 = vadd.f32 %v7189_v34, %v7260_v7 }
 0x5e2   : > { %v3028_v59 = vmul.f32 0.70710677, %v7351_v11  ;;  %v2853_v63 = vpop.f32.mrb[31].mxu0  ;;  %v3151_v39 = vadd.f32 1.0, %v5083_v32  ;;  %v7367_v0 = vadd.f32 %v2851_v40, %v7260_v7  ;;  %v3213_v2 = vmul.f32 %v3149_v35, %v2957_v60 }
 0x5e3   : > { %v3029_v17 = vmul.f32 0.70710677, %v7357_v37  ;;  %v3214_v51 = vmul.f32 %v3150_v46, %v2958_v18  ;;  %v7370_v48 = vadd.f32 %v2853_v63, %v7264_v54  ;;  %v2671_v6 = vadd.f32 %v7191_v57, %v7264_v54 }
 0x5e4   : > { %5092 = verf.f32 %v3028_v59  ;;  %v3215_v15 = vmul.f32 %v3151_v39, %v2959_v30  ;;  %v3030_v26 = vmul.f32 0.70710677, %v7367_v0  ;;  %v2675_v18 = vadd.f32 %v7193_v31, %v7260_v7 }
 0x5e5   : > { %5094 = verf.f32 %v3029_v17  ;;  %v3031_v62 = vmul.f32 0.70710677, %v7370_v48  ;;  %v3330_v12 = vpack.c.bf16 %v3214_v51, %v3212_v16  ;;  %v2960_v59 = vmul.f32 0.5, %v7331_v24 }
 0x5e6   : > { %v5085_v10 = vpop.eup %5084  ;;  %5096 = verf.f32 %v3030_v26  ;;  %v3331_v40 = vpack.c.bf16 %v3215_v15, %v3213_v2  ;;  %v2677_v57 = vadd.f32 %v7195_v38, %v7264_v54  ;;  %v2961_v17 = vmul.f32 0.5, %v7335_v61 }
 0x5e7   : > { %v5087_v20 = vpop.eup %5086  ;;  %v2857_v3 = vpop.f32.mrb[32].mxu0  ;;  %v3152_v32 = vadd.f32 1.0, %v5085_v10  ;;  %5098 = verf.f32 %v3031_v62  ;;  %v2963_v24 = vmul.f32 0.5, %v7346_v44 }
 0x5e8   : > { %v7378_v35 = vadd.f32 %v2857_v3, %v2665_v56  ;;  %v2859_v60 = vpop.f32.mrb[33].mxu0  ;;  %v5089_v46 = vpop.eup %5088  ;;  %v3153_v63 = vadd.f32 1.0, %v5087_v20  ;;  %3626 = vmatprep.mubr.bf16.mxu1 %v3331_v40  ;;  %v2962_v56 = vmul.f32 0.5, %v7343_v45  ;;  %v2681_v40 = vadd.f32 %v7199_v22, %v7264_v54 }
 0x5e9   : > { %v7383_v30 = vadd.f32 %v2859_v60, %v2667_v9  ;;  %v2861_v34 = vpop.f32.mrb[34].mxu0  ;;  %v5091_v39 = vpop.eup %5090  ;;  %v3154_v16 = vadd.f32 1.0, %v5089_v46  ;;  %3627 = vmatmul.mubr.bf16.gmra.mrb[52].mxu1 %v3330_v12  ;;  %v3216_v26 = vmul.f32 %v3152_v32, %v2960_v59  ;;  %v2687_v22 = vadd.f32 %v7203_v43, %v7264_v54 }
 0x5ea   : > { %v3032_v51 = vmul.f32 0.70710677, %v7378_v35  ;;  %v2863_v31 = vpop.f32.mrb[35].mxu0  ;;  %v3155_v2 = vadd.f32 1.0, %v5091_v39  ;;  %v7392_v15 = vadd.f32 %v2861_v34, %v2669_v47  ;;  %v3217_v61 = vmul.f32 %v3153_v63, %v2961_v17 }
 0x5eb   : > { %v3033_v9 = vmul.f32 0.70710677, %v7383_v30  ;;  %v3218_v10 = vmul.f32 %v3154_v16, %v2962_v56  ;;  %v7394_v38 = vadd.f32 %v2863_v31, %v2671_v6  ;;  %v2679_v47 = vadd.f32 %v7197_v36, %v7260_v7 }
 0x5ec   : > { %5100 = verf.f32 %v3032_v51  ;;  %v3219_v62 = vmul.f32 %v3155_v2, %v2963_v24  ;;  %v3034_v45 = vmul.f32 0.70710677, %v7392_v15  ;;  %v2685_v63 = vadd.f32 %v7201_v13, %v7260_v7 }
 0x5ed   : > { %5102 = verf.f32 %v3033_v9  ;;  %v3035_v12 = vmul.f32 0.70710677, %v7394_v38  ;;  %v3332_v3 = vpack.c.bf16 %v3218_v10, %v3216_v26  ;;  %v2964_v39 = vmul.f32 0.5, %v7351_v11 }
 0x5ee   : > { %v5093_v20 = vpop.eup %5092  ;;  %5104 = verf.f32 %v3034_v45  ;;  %v3333_v6 = vpack.c.bf16 %v3219_v62, %v3217_v61  ;;  %v2965_v51 = vmul.f32 0.5, %v7357_v37  ;;  %v2967_v11 = vmul.f32 0.5, %v7370_v48 }
 0x5ef   : > { %v5095_v44 = vpop.eup %5094  ;;  %v2867_v32 = vpop.f32.mrb[36].mxu0  ;;  %v3156_v60 = vadd.f32 1.0, %v5093_v20  ;;  %5106 = verf.f32 %v3035_v12  ;;  %v2689_v12 = vadd.f32 %v7205_v53, %v7260_v7 }
 0x5f0   : > { %v7402_v46 = vadd.f32 %v2867_v32, %v2675_v18  ;;  %v2869_v59 = vpop.f32.mrb[37].mxu0  ;;  %v5097_v34 = vpop.eup %5096  ;;  %v3157_v17 = vadd.f32 1.0, %v5095_v44  ;;  %3636 = vmatprep.mubr.bf16.mxu1 %v3333_v6  ;;  %v2966_v18 = vmul.f32 0.5, %v7367_v0 }
 0x5f1   : > { %v7407_v56 = vadd.f32 %v2869_v59, %v2677_v57  ;;  %v2871_v36 = vpop.f32.mrb[38].mxu0  ;;  %v5099_v16 = vpop.eup %5098  ;;  %v3158_v31 = vadd.f32 1.0, %v5097_v34  ;;  %3637 = vmatmul.mubr.bf16.gmra.mrb[56].mxu1 %v3332_v3  ;;  %v3220_v26 = vmul.f32 %v3156_v60, %v2964_v39  ;;  %v2691_v3 = vadd.f32 %v7207_v19, %v7264_v54 }
 0x5f2   : > { %v3036_v24 = vmul.f32 0.70710677, %v7402_v46  ;;  %v2873_v13 = vpop.f32.mrb[39].mxu0  ;;  %v3159_v2 = vadd.f32 1.0, %v5099_v16  ;;  %v7416_v9 = vadd.f32 %v2871_v36, %v2679_v47  ;;  %v3221_v37 = vmul.f32 %v3157_v17, %v2965_v51 }
 0x5f3   : > { %v3037_v57 = vmul.f32 0.70710677, %v7407_v56  ;;  %v3222_v10 = vmul.f32 %v3158_v31, %v2966_v18  ;;  %v7418_v43 = vadd.f32 %v2873_v13, %v2681_v40  ;;  %v2695_v60 = vadd.f32 %v7209_v5, %v7260_v7 }
 0x5f4   : > { %5108 = verf.f32 %v3036_v24  ;;  %v3223_v61 = vmul.f32 %v3159_v2, %v2967_v11  ;;  %v3038_v0 = vmul.f32 0.70710677, %v7416_v9  ;;  %v2968_v34 = vmul.f32 0.5, %v7378_v35 }
 0x5f5   : > { %5110 = verf.f32 %v3037_v57  ;;  %v3039_v45 = vmul.f32 0.70710677, %v7418_v43  ;;  %v3334_v20 = vpack.c.bf16 %v3222_v10, %v3220_v26  ;;  %v2697_v19 = vadd.f32 %v7211_v41, %v7264_v54 }
 0x5f6   : > { %v5101_v62 = vpop.eup %5100  ;;  %5112 = verf.f32 %v3038_v0  ;;  %v3335_v47 = vpack.c.bf16 %v3223_v61, %v3221_v37  ;;  %v2969_v16 = vmul.f32 0.5, %v7383_v30  ;;  %v2971_v35 = vmul.f32 0.5, %v7394_v38 }
 0x5f7   : > { %v5103_v48 = vpop.eup %5102  ;;  %v2877_v44 = vpop.f32.mrb[40].mxu0  ;;  %v3160_v40 = vadd.f32 1.0, %v5101_v62  ;;  %5114 = verf.f32 %v3039_v45  ;;  %v2699_v37 = vadd.f32 %v7213_v55, %v7260_v7  ;;  %v2701_v61 = vadd.f32 %v7215_v1, %v7264_v54 }
 0x5f8   : > { %v7426_v32 = vadd.f32 %v2877_v44, %v2685_v63  ;;  %v2879_v6 = vpop.f32.mrb[41].mxu0  ;;  %v5105_v59 = vpop.eup %5104  ;;  %v3161_v39 = vadd.f32 1.0, %v5103_v48  ;;  %3646 = vmatprep.mubr.bf16.mxu1 %v3335_v47  ;;  %v2970_v63 = vmul.f32 0.5, %v7392_v15  ;;  %v2972_v44 = vmul.f32 0.5, %v7402_v46 }
 0x5f9   : > { %v7431_v17 = vadd.f32 %v2879_v6, %v2687_v22  ;;  %v2881_v53 = vpop.f32.mrb[42].mxu0  ;;  %v5107_v36 = vpop.eup %5106  ;;  %v3162_v51 = vadd.f32 1.0, %v5105_v59  ;;  %3647 = vmatmul.mubr.bf16.gmra.mrb[60].mxu1 %v3334_v20  ;;  %v3224_v13 = vmul.f32 %v3160_v40, %v2968_v34  ;;  %v2707_v1 = vadd.f32 %v7219_v52, %v7264_v54 }
 0x5fa   : > { %v3040_v18 = vmul.f32 0.70710677, %v7426_v32  ;;  %v2883_v5 = vpop.f32.mrb[43].mxu0  ;;  %v3163_v31 = vadd.f32 1.0, %v5107_v36  ;;  %v7440_v24 = vadd.f32 %v2881_v53, %v2689_v12  ;;  %v3225_v30 = vmul.f32 %v3161_v39, %v2969_v16 }
 0x5fb   : > { %v3041_v22 = vmul.f32 0.70710677, %v7431_v17  ;;  %v3226_v11 = vmul.f32 %v3162_v51, %v2970_v63  ;;  %v7442_v41 = vadd.f32 %v2883_v5, %v2691_v3  ;;  %v2705_v12 = vadd.f32 %v7217_v4, %v7260_v7 }
 0x5fc   : > { %5116 = verf.f32 %v3040_v18  ;;  %v3227_v2 = vmul.f32 %v3163_v31, %v2971_v35  ;;  %v3042_v15 = vmul.f32 0.70710677, %v7440_v24  ;;  %v2973_v59 = vmul.f32 0.5, %v7407_v56 }
 0x5fd   : > { %5118 = verf.f32 %v3041_v22  ;;  %v3043_v26 = vmul.f32 0.70710677, %v7442_v41  ;;  %v3336_v10 = vpack.c.bf16 %v3226_v11, %v3224_v13  ;;  %v2975_v46 = vmul.f32 0.5, %v7418_v43 }
 0x5fe   : > { %v5109_v57 = vpop.eup %5108  ;;  %5120 = verf.f32 %v3042_v15  ;;  %v3337_v62 = vpack.c.bf16 %v3227_v2, %v3225_v30  ;;  %v2709_v31 = vadd.f32 %v7221_v21, %v7260_v7  ;;  %v2711_v22 = vadd.f32 %v7223_v29, %v7264_v54 }
 0x5ff   : > { %v5111_v38 = vpop.eup %5110  ;;  %v2887_v0 = vpop.f32.mrb[44].mxu0  ;;  %v3164_v45 = vadd.f32 1.0, %v5109_v57  ;;  %5122 = verf.f32 %v3043_v26  ;;  %v2715_v57 = vadd.f32 %v7225_v33, %v7260_v7  ;;  %v2717_v29 = vadd.f32 %v7227_v27, %v7264_v54 }
 0x600   : > { %v7450_v20 = vadd.f32 %v2887_v0, %v2695_v60  ;;  %v2889_v48 = vpop.f32.mrb[45].mxu0  ;;  %v5113_v3 = vpop.eup %5112  ;;  %v3165_v47 = vadd.f32 1.0, %v5111_v38  ;;  %3656 = vmatprep.mubr.bf16.mxu1 %v3337_v62  ;;  %v2974_v60 = vmul.f32 0.5, %v7416_v9  ;;  %v2977_v0 = vmul.f32 0.5, %v7431_v17 }
 0x601   : > { %v7455_v40 = vadd.f32 %v2889_v48, %v2697_v19  ;;  %v2891_v55 = vpop.f32.mrb[46].mxu0  ;;  %v5115_v6 = vpop.eup %5114  ;;  %v3166_v34 = vadd.f32 1.0, %v5113_v3  ;;  %3657 = vmatmul.mubr.bf16.gmra.mrb[64].mxu1 %v3336_v10  ;;  %v3228_v16 = vmul.f32 %v3164_v45, %v2972_v44  ;;  %v2976_v10 = vmul.f32 0.5, %v7426_v32 }
 0x602   : > { %v3044_v39 = vmul.f32 0.70710677, %v7450_v20  ;;  %v2893_v4 = vpop.f32.mrb[47].mxu0  ;;  %v3167_v53 = vadd.f32 1.0, %v5115_v6  ;;  %v7464_v36 = vadd.f32 %v2891_v55, %v2699_v37  ;;  %v3229_v56 = vmul.f32 %v3165_v47, %v2973_v59 }
 0x603   : > { %v3045_v19 = vmul.f32 0.70710677, %v7455_v40  ;;  %v3230_v63 = vmul.f32 %v3166_v34, %v2974_v60  ;;  %v7466_v52 = vadd.f32 %v2893_v4, %v2701_v61  ;;  %v2978_v62 = vmul.f32 0.5, %v7440_v24 }
 0x604   : > { %5124 = verf.f32 %v3044_v39  ;;  %v3231_v51 = vmul.f32 %v3167_v53, %v2975_v46  ;;  %v3046_v9 = vmul.f32 0.70710677, %v7464_v36  ;;  %v2979_v32 = vmul.f32 0.5, %v7442_v41 }
 0x605   : > { %5126 = verf.f32 %v3045_v19  ;;  %v3047_v5 = vmul.f32 0.70710677, %v7466_v52  ;;  %v3338_v35 = vpack.c.bf16 %v3230_v63, %v3228_v16  ;;  %v2719_v34 = vadd.f32 %v7229_v49, %v7260_v7 }
 0x606   : > { %v5117_v18 = vpop.eup %5116  ;;  %5128 = verf.f32 %v3046_v9  ;;  %v3339_v11 = vpack.c.bf16 %v3231_v51, %v3229_v56  ;;  %v2721_v39 = vadd.f32 %v7231_v14, %v7264_v54  ;;  %v2725_v63 = vadd.f32 %v7233_v58, %v7260_v7 }
 0x607   : > { %v5119_v43 = vpop.eup %5118  ;;  %v2897_v13 = vpop.f32.mrb[48].mxu0  ;;  %v3168_v30 = vadd.f32 1.0, %v5117_v18  ;;  %5130 = verf.f32 %v3047_v5  ;;  %v2980_v51 = vmul.f32 0.5, %v7450_v20  ;;  %v2727_v14 = vadd.f32 %v7235_v28, %v7264_v54 }
 0x608   : > { %v7474_v2 = vadd.f32 %v2897_v13, %v2705_v12  ;;  %v2899_v15 = vpop.f32.mrb[49].mxu0  ;;  %v5121_v26 = vpop.eup %5120  ;;  %v3169_v38 = vadd.f32 1.0, %v5119_v43  ;;  %3666 = vmatprep.mubr.bf16.mxu1 %v3339_v11  ;;  %v2982_v43 = vmul.f32 0.5, %v7464_v36  ;;  %v2983_v20 = vmul.f32 0.5, %v7466_v52 }
 0x609   : > { %v7479_v37 = vadd.f32 %v2899_v15, %v2707_v1  ;;  %v2901_v21 = vpop.f32.mrb[50].mxu0  ;;  %v5123_v61 = vpop.eup %5122  ;;  %v3170_v45 = vadd.f32 1.0, %v5121_v26  ;;  %3667 = vmatmul.mubr.bf16.gmra.mrb[68].mxu1 %v3338_v35  ;;  %v3232_v47 = vmul.f32 %v3168_v30, %v2976_v10  ;;  %v2981_v35 = vmul.f32 0.5, %v7455_v40 }
 0x60a   : > { %v3048_v48 = vmul.f32 0.70710677, %v7474_v2  ;;  %v2903_v33 = vpop.f32.mrb[51].mxu0  ;;  %v3171_v12 = vadd.f32 1.0, %v5123_v61  ;;  %v7488_v44 = vadd.f32 %v2901_v21, %v2709_v31  ;;  %v3233_v17 = vmul.f32 %v3169_v38, %v2977_v0 }
 0x60b   : > { %v3049_v3 = vmul.f32 0.70710677, %v7479_v37  ;;  %v3234_v55 = vmul.f32 %v3170_v45, %v2978_v62  ;;  %v7490_v27 = vadd.f32 %v2903_v33, %v2711_v22  ;;  %v2731_v61 = vadd.f32 %v7239_v25, %v7264_v54 }
 0x60c   : > { %5132 = verf.f32 %v3048_v48  ;;  %v3235_v1 = vmul.f32 %v3171_v12, %v2979_v32  ;;  %v3050_v24 = vmul.f32 0.70710677, %v7488_v44  ;;  %v2735_v32 = vadd.f32 %v7243_v23, %v7260_v7 }
 0x60d   : > { %5134 = verf.f32 %v3049_v3  ;;  %v3051_v59 = vmul.f32 0.70710677, %v7490_v27  ;;  %v3340_v60 = vpack.c.bf16 %v3234_v55, %v3232_v47  ;;  %v2984_v3 = vmul.f32 0.5, %v7474_v2 }
 0x60e   : > { %v5125_v6 = vpop.eup %5124  ;;  %5136 = verf.f32 %v3050_v24  ;;  %v3341_v46 = vpack.c.bf16 %v3235_v1, %v3233_v17  ;;  %v2737_v25 = vadd.f32 %v7246_v8, %v7264_v54  ;;  %v2985_v1 = vmul.f32 0.5, %v7479_v37 }
 0x60f   : > { %v5127_v41 = vpop.eup %5126  ;;  %v2907_v4 = vpop.f32.mrb[52].mxu0  ;;  %v3172_v53 = vadd.f32 1.0, %v5125_v6  ;;  %5138 = verf.f32 %v3051_v59  ;;  %v2986_v24 = vmul.f32 0.5, %v7488_v44  ;;  %v2987_v2 = vmul.f32 0.5, %v7490_v27 }
 0x610   : > { %v7498_v19 = vadd.f32 %v2907_v4, %v2715_v57  ;;  %v2909_v16 = vpop.f32.mrb[53].mxu0  ;;  %v5129_v56 = vpop.eup %5128  ;;  %v3173_v9 = vadd.f32 1.0, %v5127_v41  ;;  %3676 = vmatprep.mubr.bf16.mxu1 %v3341_v46 }
 0x611   : > { %v7503_v18 = vadd.f32 %v2909_v16, %v2717_v29  ;;  %v2911_v49 = vpop.f32.mrb[54].mxu0  ;;  %v5131_v5 = vpop.eup %5130  ;;  %v3174_v31 = vadd.f32 1.0, %v5129_v56  ;;  %3677 = vmatmul.mubr.bf16.gmra.mrb[72].mxu1 %v3340_v60  ;;  %v3236_v15 = vmul.f32 %v3172_v53, %v2980_v51  ;;  %v2729_v29 = vadd.f32 %v7237_v50, %v7260_v7 }
 0x612   : > { %v3052_v22 = vmul.f32 0.70710677, %v7498_v19  ;;  %v2913_v58 = vpop.f32.mrb[55].mxu0  ;;  %v3175_v13 = vadd.f32 1.0, %v5131_v5  ;;  %v7512_v30 = vadd.f32 %v2911_v49, %v2719_v34  ;;  %v3237_v40 = vmul.f32 %v3173_v9, %v2981_v35 }
 0x613   : > { %v3053_v11 = vmul.f32 0.70710677, %v7503_v18  ;;  %v3238_v57 = vmul.f32 %v3174_v31, %v2982_v43  ;;  %v7514_v28 = vadd.f32 %v2913_v58, %v2721_v39  ;;  %v2739_v49 = vadd.f32 %v7254_v42, %v7260_v7 }
 0x614   : > { %5140 = verf.f32 %v3052_v22  ;;  %v3239_v26 = vmul.f32 %v3175_v13, %v2983_v20  ;;  %v3054_v36 = vmul.f32 0.70710677, %v7512_v30  ;;  %v2988_v43 = vmul.f32 0.5, %v7498_v19  ;;  %v7951_v22 = vld [vmem:[#allocation41_spill] sm:$0xff] }
 0x615   : > { %5142 = verf.f32 %v3053_v11  ;;  %v3055_v38 = vmul.f32 0.70710677, %v7514_v28  ;;  %v3342_v21 = vpack.c.bf16 %v3238_v57, %v3236_v15  ;;  %v2741_v58 = vadd.f32 %v7951_v22, %v7264_v54 }
 0x616   : > { %v5133_v10 = vpop.eup %5132  ;;  %5144 = verf.f32 %v3054_v36  ;;  %v3343_v62 = vpack.c.bf16 %v3239_v26, %v3237_v40  ;;  %v2989_v15 = vmul.f32 0.5, %v7503_v18  ;;  %v2990_v57 = vmul.f32 0.5, %v7512_v30 }
 0x617   : > { %v5135_v52 = vpop.eup %5134  ;;  %v2917_v0 = vpop.f32.mrb[56].mxu0  ;;  %v3176_v45 = vadd.f32 1.0, %v5133_v10  ;;  %5146 = verf.f32 %v3055_v38  ;;  %v2991_v7 = vmul.f32 0.5, %v7514_v28 }
 0x618   : > { %v7522_v48 = vadd.f32 %v2917_v0, %v2725_v63  ;;  %v2919_v33 = vpop.f32.mrb[57].mxu0  ;;  %v5137_v12 = vpop.eup %5136  ;;  %v3177_v47 = vadd.f32 1.0, %v5135_v52  ;;  %3686 = vmatprep.mubr.bf16.mxu1 %v3343_v62 }
 0x619   : > { %v7527_v55 = vadd.f32 %v2919_v33, %v2727_v14  ;;  %v2921_v50 = vpop.f32.mrb[58].mxu0  ;;  %v5139_v17 = vpop.eup %5138  ;;  %v3178_v6 = vadd.f32 1.0, %v5137_v12  ;;  %3687 = vmatmul.mubr.bf16.gmra.mrb[76].mxu1 %v3342_v21  ;;  %v3240_v39 = vmul.f32 %v3176_v45, %v2984_v3 }
 0x61a   : > { %v3056_v59 = vmul.f32 0.70710677, %v7522_v48  ;;  %v2923_v23 = vpop.f32.mrb[59].mxu0  ;;  %v3179_v60 = vadd.f32 1.0, %v5139_v17  ;;  %v2922_v34 = vadd.f32 %v2921_v50, %v2729_v29  ;;  %v3241_v46 = vmul.f32 %v3177_v47, %v2985_v1 }
 0x61b   : > { %v3057_v41 = vmul.f32 0.70710677, %v7527_v55  ;;  %v3242_v4 = vmul.f32 %v3178_v6, %v2986_v24  ;;  %v2924_v8 = vadd.f32 %v2923_v23, %v2731_v61  ;;  %v2992_v3 = vmul.f32 0.5, %v7522_v48 }
 0x61c   : > { %5148 = verf.f32 %v3056_v59  ;;  %v3243_v53 = vmul.f32 %v3179_v60, %v2987_v2  ;;  %v3058_v37 = vmul.f32 0.70710677, %v2922_v34  ;;  %v2994_v47 = vmul.f32 0.5, %v2922_v34 }
 0x61d   : > { %5150 = verf.f32 %v3057_v41  ;;  %v3059_v16 = vmul.f32 0.70710677, %v2924_v8  ;;  %v3344_v63 = vpack.c.bf16 %v3242_v4, %v3240_v39  ;;  %v2995_v17 = vmul.f32 0.5, %v2924_v8 }
 0x61e   : > { %v5141_v44 = vpop.eup %5140  ;;  %5152 = verf.f32 %v3058_v37  ;;  %v3345_v9 = vpack.c.bf16 %v3243_v53, %v3241_v46 }
 0x61f   : > { %v5143_v56 = vpop.eup %5142  ;;  %v2927_v51 = vpop.f32.mrb[60].mxu0  ;;  %v3180_v27 = vadd.f32 1.0, %v5141_v44  ;;  %5154 = verf.f32 %v3059_v16 }
 0x620   : > { %v2928_v14 = vadd.f32 %v2927_v51, %v2735_v32  ;;  %v2929_v5 = vpop.f32.mrb[61].mxu0  ;;  %v5145_v35 = vpop.eup %5144  ;;  %v3181_v31 = vadd.f32 1.0, %v5143_v56  ;;  %3696 = vmatprep.mubr.bf16.mxu1 %v3345_v9 }
 0x621   : > { %v2930_v20 = vadd.f32 %v2929_v5, %v2737_v25  ;;  %v2931_v13 = vpop.f32.mrb[62].mxu0  ;;  %v5147_v11 = vpop.eup %5146  ;;  %v3182_v40 = vadd.f32 1.0, %v5145_v35  ;;  %3697 = vmatmul.mubr.bf16.gmra.mrb[80].mxu1 %v3344_v63  ;;  %v3244_v38 = vmul.f32 %v3180_v27, %v2988_v43  ;;  %v2993_v25 = vmul.f32 0.5, %v7527_v55  ;;  %v3256_v5 = vld [vmem:[#allocation3] sm:$0xff]  ;;  %v3257_v35 = vld [vmem:[#allocation3 + $0x8] sm:$0xff] }
 0x622   : > { %v3060_v26 = vmul.f32 0.70710677, %v2928_v14  ;;  %v2933_v42 = vpop.f32.mrb[63].mxu0  ;;  %v3183_v36 = vadd.f32 1.0, %v5147_v11  ;;  %v2932_v10 = vadd.f32 %v2931_v13, %v2739_v49  ;;  %v3245_v52 = vmul.f32 %v3181_v31, %v2989_v15  ;;  %v3258_v31 = vld [vmem:[#allocation3 + $0x10] sm:$0xff] }
 0x623   : > { %v3061_v19 = vmul.f32 0.70710677, %v2930_v20  ;;  %v3246_v21 = vmul.f32 %v3182_v40, %v2990_v57  ;;  %v2934_v54 = vadd.f32 %v2933_v42, %v2741_v58  ;;  %v2996_v34 = vmul.f32 0.5, %v2928_v14  ;;  %v3259_v58 = vld [vmem:[#allocation3 + $0x18] sm:$0xff]  ;;  %v3260_v40 = vld [vmem:[#allocation3 + $0x20] sm:$0xff] }
 0x624   : > { %5156 = verf.f32 %v3060_v26  ;;  %v3247_v29 = vmul.f32 %v3183_v36, %v2991_v7  ;;  %v3062_v61 = vmul.f32 0.70710677, %v2932_v10  ;;  %v2998_v37 = vmul.f32 0.5, %v2932_v10  ;;  %v3261_v26 = vld [vmem:[#allocation3 + $0x28] sm:$0xff]  ;;  %v3262_v7 = vld [vmem:[#allocation3 + $0x30] sm:$0xff]  ;;  %v3263_v10 = vld [vmem:[#allocation3 + $0x38] sm:$0xff] }
 0x625   : > { %5158 = verf.f32 %v3061_v19  ;;  %v3063_v0 = vmul.f32 0.70710677, %v2934_v54  ;;  %v3346_v30 = vpack.c.bf16 %v3246_v21, %v3244_v38  ;;  %v2997_v55 = vmul.f32 0.5, %v2930_v20 }
 0x626   : > { %v5149_v18 = vpop.eup %5148  ;;  %5160 = verf.f32 %v3062_v61  ;;  %v3347_v45 = vpack.c.bf16 %v3247_v29, %v3245_v52  ;;  %v2999_v8 = vmul.f32 0.5, %v2934_v54  ;;  %v3264_v61 = vld [vmem:[#allocation3 + $0x40] sm:$0xff] }
 0x627   : > { %v5151_v62 = vpop.eup %5150  ;;  %v3184_v33 = vadd.f32 1.0, %v5149_v18  ;;  %5162 = verf.f32 %v3063_v0  ;;  %v3265_v18 = vld [vmem:[#allocation3 + $0x48] sm:$0xff] }
 0x628   : > { %v5153_v28 = vpop.eup %5152  ;;  %v3185_v32 = vadd.f32 1.0, %v5151_v62  ;;  %3706 = vmatprep.mubr.bf16.mxu1 %v3347_v45 }
 0x629   : > { %v5155_v12 = vpop.eup %5154  ;;  %v3186_v50 = vadd.f32 1.0, %v5153_v28  ;;  %3707 = vmatmul.mubr.bf16.gmra.mrb[84].mxu1 %v3346_v30  ;;  %v3248_v24 = vmul.f32 %v3184_v33, %v2992_v3  ;;  %v3266_v30 = vld [vmem:[#allocation3 + $0x50] sm:$0xff]  ;;  %v3267_v33 = vld [vmem:[#allocation3 + $0x58] sm:$0xff] }
 0x62a   : > { %v3187_v1 = vadd.f32 1.0, %v5155_v12  ;;  %v3249_v59 = vmul.f32 %v3185_v32, %v2993_v25  ;;  %v3269_v25 = vld [vmem:[#allocation3 + $0x68] sm:$0xff] }
 0x62b   : > { %v3250_v6 = vmul.f32 %v3186_v50, %v2994_v47  ;;  %v3268_v50 = vld [vmem:[#allocation3 + $0x60] sm:$0xff] }
 0x62c   : > { %v3251_v23 = vmul.f32 %v3187_v1, %v2995_v17  ;;  %v3270_v1 = vld [vmem:[#allocation3 + $0x70] sm:$0xff] }
 0x62d   : > { %v3348_v60 = vpack.c.bf16 %v3250_v6, %v3248_v24 }
 0x62e   : > { %v5157_v2 = vpop.eup %5156  ;;  %v3349_v39 = vpack.c.bf16 %v3251_v23, %v3249_v59  ;;  %v3271_v59 = vld [vmem:[#allocation3 + $0x78] sm:$0xff] }
 0x62f   : > { %v5159_v41 = vpop.eup %5158  ;;  %v3188_v4 = vadd.f32 1.0, %v5157_v2 }
 0x630   : > { %v5161_v46 = vpop.eup %5160  ;;  %v3189_v53 = vadd.f32 1.0, %v5159_v41  ;;  %3716 = vmatprep.mubr.bf16.mxu1 %v3349_v39 }
 0x631   : > { %v5163_v48 = vpop.eup %5162  ;;  %v3190_v44 = vadd.f32 1.0, %v5161_v46  ;;  %3717 = vmatmul.mubr.bf16.gmra.mrb[88].mxu1 %v3348_v60  ;;  %v3252_v63 = vmul.f32 %v3188_v4, %v2996_v34  ;;  %v3272_v4 = vld [vmem:[#allocation3 + $0x80] sm:$0xff]  ;;  %v3273_v46 = vld [vmem:[#allocation3 + $0x88] sm:$0xff] }
 0x632   : > { %v3191_v16 = vadd.f32 1.0, %v5163_v48  ;;  %v3253_v51 = vmul.f32 %v3189_v53, %v2997_v55  ;;  %v3274_v48 = vld [vmem:[#allocation3 + $0x90] sm:$0xff] }
 0x633   : > { %v3254_v56 = vmul.f32 %v3190_v44, %v2998_v37  ;;  %v3275_v44 = vld [vmem:[#allocation3 + $0x98] sm:$0xff] }
 0x634   : > { %v3255_v9 = vmul.f32 %v3191_v16, %v2999_v8 }
 0x635   : > { %v3350_v27 = vpack.c.bf16 %v3254_v56, %v3252_v63 }
 0x636   : > { %v3351_v49 = vpack.c.bf16 %v3255_v9, %v3253_v51  ;;  %v3276_v51 = vld [vmem:[#allocation3 + $0xa0] sm:$0xff]  ;;  %v3277_v9 = vld [vmem:[#allocation3 + $0xa8] sm:$0xff] }
 0x638   : > { %3726 = vmatprep.mubr.bf16.mxu1 %v3351_v49  ;;  %v3278_v49 = vld [vmem:[#allocation3 + $0xb0] sm:$0xff] }
 0x639   : > { %3727 = vmatmul.mubr.bf16.gmra.mrb[92].mxu1 %v3350_v27 }
 0x694   : > { %v3578_v43 = vpop.f32.mrb[32].mxu1 }
 0x695   : > { %v3737_v22 = vadd.f32 %v3578_v43, %v3256_v5  ;;  %v3580_v14 = vpop.f32.mrb[33].mxu1  ;;  %v3279_v43 = vld [vmem:[#allocation3 + $0xb8] sm:$0xff] }
 0x696   : > { %v3738_v13 = vadd.f32 %v3580_v14, %v3257_v35  ;;  %v3582_v11 = vpop.f32.mrb[34].mxu1 }
 0x697   : > { %3801 = vst [vmem:[#allocation3] sm:$0xff] %v3737_v22  ;;  %v3739_v20 = vadd.f32 %v3582_v11, %v3258_v31  ;;  %v3584_v15 = vpop.f32.mrb[35].mxu1  ;;  %v3280_v11 = vld [vmem:[#allocation3 + $0xc0] sm:$0xff] }
 0x698   : > { %3802 = vst [vmem:[#allocation3 + $0x8] sm:$0xff] %v3738_v13  ;;  %v3740_v57 = vadd.f32 %v3584_v15, %v3259_v58 }
 0x699   : > { %3803 = vst [vmem:[#allocation3 + $0x10] sm:$0xff] %v3739_v20  ;;  %v3281_v20 = vld [vmem:[#allocation3 + $0xc8] sm:$0xff] }
 0x69a   : > { %3804 = vst [vmem:[#allocation3 + $0x18] sm:$0xff] %v3740_v57  ;;  %v3282_v57 = vld [vmem:[#allocation3 + $0xd0] sm:$0xff] }
 0x69c   : > { %v3588_v42 = vpop.f32.mrb[36].mxu1 }
 0x69d   : > { %v3741_v36 = vadd.f32 %v3588_v42, %v3260_v40  ;;  %v3590_v19 = vpop.f32.mrb[37].mxu1  ;;  %v3283_v42 = vld [vmem:[#allocation3 + $0xd8] sm:$0xff] }
 0x69e   : > { %v3742_v38 = vadd.f32 %v3590_v19, %v3261_v26  ;;  %v3592_v21 = vpop.f32.mrb[38].mxu1 }
 0x69f   : > { %3805 = vst [vmem:[#allocation3 + $0x20] sm:$0xff] %v3741_v36  ;;  %v3743_v54 = vadd.f32 %v3592_v21, %v3262_v7  ;;  %v3594_v52 = vpop.f32.mrb[39].mxu1  ;;  %v3284_v21 = vld [vmem:[#allocation3 + $0xe0] sm:$0xff] }
 0x6a0   : > { %3806 = vst [vmem:[#allocation3 + $0x28] sm:$0xff] %v3742_v38  ;;  %v3744_v29 = vadd.f32 %v3594_v52, %v3263_v10 }
 0x6a1   : > { %3807 = vst [vmem:[#allocation3 + $0x30] sm:$0xff] %v3743_v54  ;;  %v3285_v54 = vld [vmem:[#allocation3 + $0xe8] sm:$0xff] }
 0x6a2   : > { %3808 = vst [vmem:[#allocation3 + $0x38] sm:$0xff] %v3744_v29  ;;  %v3286_v29 = vld [vmem:[#allocation3 + $0xf0] sm:$0xff] }
 0x6a4   : > { %v3598_v0 = vpop.f32.mrb[40].mxu1 }
 0x6a5   : > { %v3745_v62 = vadd.f32 %v3598_v0, %v3264_v61  ;;  %v3600_v45 = vpop.f32.mrb[41].mxu1  ;;  %v3287_v0 = vld [vmem:[#allocation3 + $0xf8] sm:$0xff] }
 0x6a6   : > { %v3746_v28 = vadd.f32 %v3600_v45, %v3265_v18  ;;  %v3602_v32 = vpop.f32.mrb[42].mxu1 }
 0x6a7   : > { %3809 = vst [vmem:[#allocation3 + $0x40] sm:$0xff] %v3745_v62  ;;  %v3747_v12 = vadd.f32 %v3602_v32, %v3266_v30  ;;  %v3604_v3 = vpop.f32.mrb[43].mxu1  ;;  %v3288_v32 = vld [vmem:[#allocation3 + $0x100] sm:$0xff] }
 0x6a8   : > { %3810 = vst [vmem:[#allocation3 + $0x48] sm:$0xff] %v3746_v28  ;;  %v3748_v47 = vadd.f32 %v3604_v3, %v3267_v33 }
 0x6a9   : > { %3811 = vst [vmem:[#allocation3 + $0x50] sm:$0xff] %v3747_v12  ;;  %v3289_v12 = vld [vmem:[#allocation3 + $0x108] sm:$0xff] }
 0x6aa   : > { %3812 = vst [vmem:[#allocation3 + $0x58] sm:$0xff] %v3748_v47  ;;  %v3290_v47 = vld [vmem:[#allocation3 + $0x110] sm:$0xff] }
 0x6ac   : > { %v3608_v17 = vpop.f32.mrb[44].mxu1 }
 0x6ad   : > { %v3749_v24 = vadd.f32 %v3608_v17, %v3268_v50  ;;  %v3610_v6 = vpop.f32.mrb[45].mxu1  ;;  %v3291_v17 = vld [vmem:[#allocation3 + $0x118] sm:$0xff] }
 0x6ae   : > { %v3750_v23 = vadd.f32 %v3610_v6, %v3269_v25  ;;  %v3612_v2 = vpop.f32.mrb[46].mxu1 }
 0x6af   : > { %3813 = vst [vmem:[#allocation3 + $0x60] sm:$0xff] %v3749_v24  ;;  %v3751_v60 = vadd.f32 %v3612_v2, %v3270_v1  ;;  %v3614_v41 = vpop.f32.mrb[47].mxu1  ;;  %v3292_v2 = vld [vmem:[#allocation3 + $0x120] sm:$0xff] }
 0x6b0   : > { %3814 = vst [vmem:[#allocation3 + $0x68] sm:$0xff] %v3750_v23  ;;  %v3752_v39 = vadd.f32 %v3614_v41, %v3271_v59 }
 0x6b1   : > { %3815 = vst [vmem:[#allocation3 + $0x70] sm:$0xff] %v3751_v60  ;;  %v3293_v60 = vld [vmem:[#allocation3 + $0x128] sm:$0xff] }
 0x6b2   : > { %3816 = vst [vmem:[#allocation3 + $0x78] sm:$0xff] %v3752_v39  ;;  %v3294_v39 = vld [vmem:[#allocation3 + $0x130] sm:$0xff] }
 0x6b4   : > { %v3618_v53 = vpop.f32.mrb[48].mxu1 }
 0x6b5   : > { %v3753_v34 = vadd.f32 %v3618_v53, %v3272_v4  ;;  %v3620_v37 = vpop.f32.mrb[49].mxu1  ;;  %v3295_v53 = vld [vmem:[#allocation3 + $0x138] sm:$0xff] }
 0x6b6   : > { %v3754_v55 = vadd.f32 %v3620_v37, %v3273_v46  ;;  %v3622_v8 = vpop.f32.mrb[50].mxu1 }
 0x6b7   : > { %3817 = vst [vmem:[#allocation3 + $0x80] sm:$0xff] %v3753_v34  ;;  %v3755_v16 = vadd.f32 %v3622_v8, %v3274_v48  ;;  %v3624_v63 = vpop.f32.mrb[51].mxu1  ;;  %v3296_v8 = vld [vmem:[#allocation3 + $0x140] sm:$0xff] }
 0x6b8   : > { %3818 = vst [vmem:[#allocation3 + $0x88] sm:$0xff] %v3754_v55  ;;  %v3756_v56 = vadd.f32 %v3624_v63, %v3275_v44 }
 0x6b9   : > { %3819 = vst [vmem:[#allocation3 + $0x90] sm:$0xff] %v3755_v16  ;;  %v3297_v16 = vld [vmem:[#allocation3 + $0x148] sm:$0xff] }
 0x6ba   : > { %3820 = vst [vmem:[#allocation3 + $0x98] sm:$0xff] %v3756_v56  ;;  %v3298_v56 = vld [vmem:[#allocation3 + $0x150] sm:$0xff] }
 0x6bc   : > { %v3628_v27 = vpop.f32.mrb[52].mxu1 }
 0x6bd   : > { %v3757_v5 = vadd.f32 %v3628_v27, %v3276_v51  ;;  %v3630_v35 = vpop.f32.mrb[53].mxu1  ;;  %v3299_v27 = vld [vmem:[#allocation3 + $0x158] sm:$0xff] }
 0x6be   : > { %v3758_v31 = vadd.f32 %v3630_v35, %v3277_v9  ;;  %v3632_v22 = vpop.f32.mrb[54].mxu1 }
 0x6bf   : > { %3821 = vst [vmem:[#allocation3 + $0xa0] sm:$0xff] %v3757_v5  ;;  %v3759_v14 = vadd.f32 %v3632_v22, %v3278_v49  ;;  %v3634_v58 = vpop.f32.mrb[55].mxu1  ;;  %v3300_v22 = vld [vmem:[#allocation3 + $0x160] sm:$0xff] }
 0x6c0   : > { %3822 = vst [vmem:[#allocation3 + $0xa8] sm:$0xff] %v3758_v31  ;;  %v3760_v13 = vadd.f32 %v3634_v58, %v3279_v43 }
 0x6c1   : > { %3823 = vst [vmem:[#allocation3 + $0xb0] sm:$0xff] %v3759_v14  ;;  %v3301_v14 = vld [vmem:[#allocation3 + $0x168] sm:$0xff] }
 0x6c2   : > { %3824 = vst [vmem:[#allocation3 + $0xb8] sm:$0xff] %v3760_v13  ;;  %v3302_v13 = vld [vmem:[#allocation3 + $0x170] sm:$0xff] }
 0x6c4   : > { %v3638_v15 = vpop.f32.mrb[56].mxu1 }
 0x6c5   : > { %v3761_v40 = vadd.f32 %v3638_v15, %v3280_v11  ;;  %v3640_v26 = vpop.f32.mrb[57].mxu1  ;;  %v3303_v15 = vld [vmem:[#allocation3 + $0x178] sm:$0xff] }
 0x6c6   : > { %v3762_v7 = vadd.f32 %v3640_v26, %v3281_v20  ;;  %v3642_v36 = vpop.f32.mrb[58].mxu1 }
 0x6c7   : > { %3825 = vst [vmem:[#allocation3 + $0xc0] sm:$0xff] %v3761_v40  ;;  %v3763_v19 = vadd.f32 %v3642_v36, %v3282_v57  ;;  %v3644_v10 = vpop.f32.mrb[59].mxu1  ;;  %v3304_v36 = vld [vmem:[#allocation3 + $0x180] sm:$0xff] }
 0x6c8   : > { %3826 = vst [vmem:[#allocation3 + $0xc8] sm:$0xff] %v3762_v7  ;;  %v3764_v38 = vadd.f32 %v3644_v10, %v3283_v42 }
 0x6c9   : > { %3827 = vst [vmem:[#allocation3 + $0xd0] sm:$0xff] %v3763_v19  ;;  %v3305_v19 = vld [vmem:[#allocation3 + $0x188] sm:$0xff] }
 0x6ca   : > { %3828 = vst [vmem:[#allocation3 + $0xd8] sm:$0xff] %v3764_v38  ;;  %v3306_v38 = vld [vmem:[#allocation3 + $0x190] sm:$0xff] }
 0x6cc   : > { %v3648_v52 = vpop.f32.mrb[60].mxu1 }
 0x6cd   : > { %v3765_v61 = vadd.f32 %v3648_v52, %v3284_v21  ;;  %v3650_v18 = vpop.f32.mrb[61].mxu1  ;;  %v3307_v52 = vld [vmem:[#allocation3 + $0x198] sm:$0xff] }
 0x6ce   : > { %v3766_v30 = vadd.f32 %v3650_v18, %v3285_v54  ;;  %v3652_v62 = vpop.f32.mrb[62].mxu1 }
 0x6cf   : > { %3829 = vst [vmem:[#allocation3 + $0xe0] sm:$0xff] %v3765_v61  ;;  %v3767_v45 = vadd.f32 %v3652_v62, %v3286_v29  ;;  %v3654_v33 = vpop.f32.mrb[63].mxu1  ;;  %v3308_v62 = vld [vmem:[#allocation3 + $0x1a0] sm:$0xff] }
 0x6d0   : > { %3830 = vst [vmem:[#allocation3 + $0xe8] sm:$0xff] %v3766_v30  ;;  %v3768_v28 = vadd.f32 %v3654_v33, %v3287_v0 }
 0x6d1   : > { %3831 = vst [vmem:[#allocation3 + $0xf0] sm:$0xff] %v3767_v45  ;;  %v3309_v45 = vld [vmem:[#allocation3 + $0x1a8] sm:$0xff] }
 0x6d2   : > { %3832 = vst [vmem:[#allocation3 + $0xf8] sm:$0xff] %v3768_v28  ;;  %v3310_v28 = vld [vmem:[#allocation3 + $0x1b0] sm:$0xff] }
 0x6d4   : > { %v3658_v3 = vpop.f32.mrb[64].mxu1 }
 0x6d5   : > { %v3769_v50 = vadd.f32 %v3658_v3, %v3288_v32  ;;  %v3660_v25 = vpop.f32.mrb[65].mxu1  ;;  %v3311_v3 = vld [vmem:[#allocation3 + $0x1b8] sm:$0xff] }
 0x6d6   : > { %v3770_v1 = vadd.f32 %v3660_v25, %v3289_v12  ;;  %v3662_v24 = vpop.f32.mrb[66].mxu1 }
 0x6d7   : > { %3833 = vst [vmem:[#allocation3 + $0x100] sm:$0xff] %v3769_v50  ;;  %v3771_v6 = vadd.f32 %v3662_v24, %v3290_v47  ;;  %v3664_v59 = vpop.f32.mrb[67].mxu1  ;;  %v3312_v24 = vld [vmem:[#allocation3 + $0x1c0] sm:$0xff] }
 0x6d8   : > { %3834 = vst [vmem:[#allocation3 + $0x108] sm:$0xff] %v3770_v1  ;;  %v3772_v23 = vadd.f32 %v3664_v59, %v3291_v17 }
 0x6d9   : > { %3835 = vst [vmem:[#allocation3 + $0x110] sm:$0xff] %v3771_v6  ;;  %v3313_v6 = vld [vmem:[#allocation3 + $0x1c8] sm:$0xff] }
 0x6da   : > { %3836 = vst [vmem:[#allocation3 + $0x118] sm:$0xff] %v3772_v23  ;;  %v3314_v23 = vld [vmem:[#allocation3 + $0x1d0] sm:$0xff] }
 0x6dc   : > { %v3668_v41 = vpop.f32.mrb[68].mxu1 }
 0x6dd   : > { %v3773_v4 = vadd.f32 %v3668_v41, %v3292_v2  ;;  %v3670_v46 = vpop.f32.mrb[69].mxu1  ;;  %v3315_v41 = vld [vmem:[#allocation3 + $0x1d8] sm:$0xff] }
 0x6de   : > { %v3774_v48 = vadd.f32 %v3670_v46, %v3293_v60  ;;  %v3672_v34 = vpop.f32.mrb[70].mxu1 }
 0x6df   : > { %3837 = vst [vmem:[#allocation3 + $0x120] sm:$0xff] %v3773_v4  ;;  %v3775_v37 = vadd.f32 %v3672_v34, %v3294_v39  ;;  %v3674_v44 = vpop.f32.mrb[71].mxu1  ;;  %v3316_v34 = vld [vmem:[#allocation3 + $0x1e0] sm:$0xff] }
 0x6e0   : > { %3838 = vst [vmem:[#allocation3 + $0x128] sm:$0xff] %v3774_v48  ;;  %v3776_v55 = vadd.f32 %v3674_v44, %v3295_v53 }
 0x6e1   : > { %3839 = vst [vmem:[#allocation3 + $0x130] sm:$0xff] %v3775_v37  ;;  %v3317_v37 = vld [vmem:[#allocation3 + $0x1e8] sm:$0xff] }
 0x6e2   : > { %3840 = vst [vmem:[#allocation3 + $0x138] sm:$0xff] %v3776_v55  ;;  %v3318_v55 = vld [vmem:[#allocation3 + $0x1f0] sm:$0xff] }
 0x6e4   : > { %v3678_v63 = vpop.f32.mrb[72].mxu1 }
 0x6e5   : > { %v3777_v51 = vadd.f32 %v3678_v63, %v3296_v8  ;;  %v3680_v9 = vpop.f32.mrb[73].mxu1  ;;  %v3319_v63 = vld [vmem:[#allocation3 + $0x1f8] sm:$0xff] }
 0x6e6   : > { %v3778_v49 = vadd.f32 %v3680_v9, %v3297_v16  ;;  %v3682_v5 = vpop.f32.mrb[74].mxu1 }
 0x6e7   : > { %3841 = vst [vmem:[#allocation3 + $0x140] sm:$0xff] %v3777_v51  ;;  %v3779_v35 = vadd.f32 %v3682_v5, %v3298_v56  ;;  %v3684_v43 = vpop.f32.mrb[75].mxu1  ;;  %v3869_v5 = vld [vmem:[#allocation3] sm:$0xff] (!%p4342_p13) }
 0x6e8   : > { %3842 = vst [vmem:[#allocation3 + $0x148] sm:$0xff] %v3778_v49  ;;  %v3780_v31 = vadd.f32 %v3684_v43, %v3299_v27  ;;  %v3870_v43 = vld [vmem:[#allocation3 + $0x8] sm:$0xff] (!%p4342_p13) }
 0x6e9   : > { %3843 = vst [vmem:[#allocation3 + $0x150] sm:$0xff] %v3779_v35  ;;  %v3933_v35 = vld [vmem:[%s7952_s1] sm:$0x3] (!%p4342_p13) }
 0x6ea   : > { %3844 = vst [vmem:[#allocation3 + $0x158] sm:$0xff] %v3780_v31  ;;  %v7953_v31 = vld [vmem:[#allocation40_spill] sm:$0xff] (!%p4342_p13) }
 0x6ec   : > { %v3688_v58 = vpop.f32.mrb[76].mxu1 }
 0x6ed   : > { %v3781_v11 = vadd.f32 %v3688_v58, %v3300_v22  ;;  %v3690_v20 = vpop.f32.mrb[77].mxu1  ;;  %v7954_v22 = vsub.s32 (!%p4342_p13), 0, %v7953_v31  ;;  %v7955_v58 = vsub.s32 (!%p4342_p13), 1, %v7953_v31 }
 0x6ee   : > { %v3782_v57 = vadd.f32 %v3690_v20, %v3301_v14  ;;  %v3692_v40 = vpop.f32.mrb[78].mxu1  ;;  %v3872_v20 = vld [vmem:[#allocation3 + $0x18] sm:$0xff] (!%p4342_p13) }
 0x6ef   : > { %3845 = vst [vmem:[#allocation3 + $0x160] sm:$0xff] %v3781_v11  ;;  %v3783_v26 = vadd.f32 %v3692_v40, %v3302_v13  ;;  %v3694_v42 = vpop.f32.mrb[79].mxu1  ;;  %v7552_v14 = vrot.slane (!%p4342_p13), %v3933_v35, %v7954_v22  ;;  %v7556_v13 = vrot.slane (!%p4342_p13), %v3933_v35, %v7955_v58  ;;  %v3871_v11 = vld [vmem:[#allocation3 + $0x10] sm:$0xff] (!%p4342_p13) }
 0x6f0   : > { %3846 = vst [vmem:[#allocation3 + $0x168] sm:$0xff] %v3782_v57  ;;  %v3784_v7 = vadd.f32 %v3694_v42, %v3303_v15  ;;  %v3873_v15 = vld [vmem:[#allocation3 + $0x20] sm:$0xff] (!%p4342_p13)  ;;  %v3874_v57 = vld [vmem:[#allocation3 + $0x28] sm:$0xff] (!%p4342_p13)  ;;  %v3875_v40 = vld [vmem:[#allocation3 + $0x30] sm:$0xff] (!%p4342_p13) }
 0x6f1   : > { %3847 = vst [vmem:[#allocation3 + $0x170] sm:$0xff] %v3783_v26  ;;  %v3876_v26 = vld [vmem:[#allocation3 + $0x38] sm:$0xff] (!%p4342_p13)  ;;  %v3945_v42 = vadd.f32 (!%p4342_p13), %v7552_v14, %v3869_v5  ;;  %v3898_v5 = vld [vmem:[#allocation3 + $0xe8] sm:$0xff] (!%p4342_p13)  ;;  %v3899_v35 = vld [vmem:[#allocation3 + $0xf0] sm:$0xff] (!%p4342_p13) }
 0x6f2   : > { %3848 = vst [vmem:[#allocation3 + $0x178] sm:$0xff] %v3784_v7  ;;  %v3946_v7 = vadd.f32 (!%p4342_p13), %v7556_v13, %v3870_v43  ;;  %v3900_v43 = vld [vmem:[#allocation3 + $0xf8] sm:$0xff] (!%p4342_p13)  ;;  %v3974_v31 = vadd.f32 (!%p4342_p13), %v7556_v13, %v3898_v5  ;;  %v3975_v22 = vadd.f32 (!%p4342_p13), %v7552_v14, %v3899_v35 }
 0x6f3   : > { %4009 = vst [vmem:[%s5727_s13] sm:$0xff] (!%p4342_p13), %v3945_v42  ;;  %v3976_v58 = vadd.f32 (!%p4342_p13), %v7556_v13, %v3900_v43  ;;  %v3904_v42 = vld [vmem:[#allocation3 + $0x118] sm:$0xff] (!%p4342_p13) }
 0x6f4   : > { %v3698_v10 = vpop.f32.mrb[80].mxu1  ;;  %4010 = vst [vmem:[%s5727_s13 + $0x8] sm:$0xff] (!%p4342_p13), %v3946_v7  ;;  %v3905_v7 = vld [vmem:[#allocation3 + $0x120] sm:$0xff] (!%p4342_p13)  ;;  %4038 = vst [vmem:[%s5727_s13 + $0xe8] sm:$0xff] (!%p4342_p13), %v3974_v31 }
 0x6f5   : > { %v3785_v21 = vadd.f32 %v3698_v10, %v3304_v36  ;;  %v3700_v54 = vpop.f32.mrb[81].mxu1  ;;  %v3947_v36 = vadd.f32 (!%p4342_p13), %v7552_v14, %v3871_v11  ;;  %v3877_v10 = vld [vmem:[#allocation3 + $0x40] sm:$0xff] (!%p4342_p13)  ;;  %4039 = vst [vmem:[%s5727_s13 + $0xf0] sm:$0xff] (!%p4342_p13), %v3975_v22  ;;  %4040 = vst [vmem:[%s5727_s13 + $0xf8] sm:$0xff] (!%p4342_p13), %v3976_v58 }
 0x6f6   : > { %v3786_v29 = vadd.f32 %v3700_v54, %v3305_v19  ;;  %v3702_v61 = vpop.f32.mrb[82].mxu1  ;;  %v3948_v19 = vadd.f32 (!%p4342_p13), %v7556_v13, %v3872_v20  ;;  %v3949_v54 = vadd.f32 (!%p4342_p13), %v7552_v14, %v3873_v15  ;;  %v3901_v11 = vld [vmem:[#allocation3 + $0x100] sm:$0xff] (!%p4342_p13)  ;;  %v3902_v20 = vld [vmem:[#allocation3 + $0x108] sm:$0xff] (!%p4342_p13)  ;;  %v3903_v15 = vld [vmem:[#allocation3 + $0x110] sm:$0xff] (!%p4342_p13) }
 0x6f7   : > { %3849 = vst [vmem:[#allocation3 + $0x180] sm:$0xff] %v3785_v21  ;;  %v3787_v18 = vadd.f32 %v3702_v61, %v3306_v38  ;;  %v3704_v0 = vpop.f32.mrb[83].mxu1  ;;  %v3878_v38 = vld [vmem:[#allocation3 + $0x48] sm:$0xff] (!%p4342_p13)  ;;  %v3879_v21 = vld [vmem:[#allocation3 + $0x50] sm:$0xff] (!%p4342_p13)  ;;  %v3952_v61 = vadd.f32 (!%p4342_p13), %v7556_v13, %v3876_v26  ;;  %4011 = vst [vmem:[%s5727_s13 + $0x10] sm:$0xff] (!%p4342_p13), %v3947_v36  ;;  %v3979_v26 = vadd.f32 (!%p4342_p13), %v7552_v14, %v3903_v15 }
 0x6f8   : > { %3850 = vst [vmem:[#allocation3 + $0x188] sm:$0xff] %v3786_v29  ;;  %v3788_v30 = vadd.f32 %v3704_v0, %v3307_v52  ;;  %v3950_v52 = vadd.f32 (!%p4342_p13), %v7556_v13, %v3874_v57  ;;  %v3951_v29 = vadd.f32 (!%p4342_p13), %v7552_v14, %v3875_v40  ;;  %v3881_v0 = vld [vmem:[#allocation3 + $0x60] sm:$0xff] (!%p4342_p13)  ;;  %4012 = vst [vmem:[%s5727_s13 + $0x18] sm:$0xff] (!%p4342_p13), %v3948_v19  ;;  %v3906_v36 = vld [vmem:[#allocation3 + $0x128] sm:$0xff] (!%p4342_p13) }
 0x6f9   : > { %3851 = vst [vmem:[#allocation3 + $0x190] sm:$0xff] %v3787_v18  ;;  %v3880_v18 = vld [vmem:[#allocation3 + $0x58] sm:$0xff] (!%p4342_p13)  ;;  %4013 = vst [vmem:[%s5727_s13 + $0x20] sm:$0xff] (!%p4342_p13), %v3949_v54  ;;  %v3977_v57 = vadd.f32 (!%p4342_p13), %v7552_v14, %v3901_v11  ;;  %v3978_v40 = vadd.f32 (!%p4342_p13), %v7556_v13, %v3902_v20  ;;  %v3980_v19 = vadd.f32 (!%p4342_p13), %v7556_v13, %v3904_v42 }
 0x6fa   : > { %3852 = vst [vmem:[#allocation3 + $0x198] sm:$0xff] %v3788_v30  ;;  %v3882_v30 = vld [vmem:[#allocation3 + $0x68] sm:$0xff] (!%p4342_p13)  ;;  %4014 = vst [vmem:[%s5727_s13 + $0x28] sm:$0xff] (!%p4342_p13), %v3950_v52  ;;  %v3908_v54 = vld [vmem:[#allocation3 + $0x138] sm:$0xff] (!%p4342_p13) }
 0x6fb   : > { %4015 = vst [vmem:[%s5727_s13 + $0x30] sm:$0xff] (!%p4342_p13), %v3951_v29  ;;  %4016 = vst [vmem:[%s5727_s13 + $0x38] sm:$0xff] (!%p4342_p13), %v3952_v61  ;;  %v3909_v52 = vld [vmem:[#allocation3 + $0x140] sm:$0xff] (!%p4342_p13)  ;;  %v3984_v61 = vadd.f32 (!%p4342_p13), %v7556_v13, %v3908_v54 }
 0x6fc   : > { %v3708_v33 = vpop.f32.mrb[84].mxu1  ;;  %4041 = vst [vmem:[%s5727_s13 + $0x100] sm:$0xff] (!%p4342_p13), %v3977_v57  ;;  %4042 = vst [vmem:[%s5727_s13 + $0x108] sm:$0xff] (!%p4342_p13), %v3978_v40 }
 0x6fd   : > { %v3789_v32 = vadd.f32 %v3708_v33, %v3308_v62  ;;  %v3710_v12 = vpop.f32.mrb[85].mxu1  ;;  %v3953_v62 = vadd.f32 (!%p4342_p13), %v7552_v14, %v3877_v10  ;;  %v3955_v33 = vadd.f32 (!%p4342_p13), %v7552_v14, %v3879_v21  ;;  %v3981_v10 = vadd.f32 (!%p4342_p13), %v7552_v14, %v3905_v7  ;;  %v3907_v21 = vld [vmem:[#allocation3 + $0x130] sm:$0xff] (!%p4342_p13)  ;;  %4043 = vst [vmem:[%s5727_s13 + $0x110] sm:$0xff] (!%p4342_p13), %v3979_v26 }
 0x6fe   : > { %v3790_v47 = vadd.f32 %v3710_v12, %v3309_v45  ;;  %v3712_v50 = vpop.f32.mrb[86].mxu1  ;;  %v3954_v45 = vadd.f32 (!%p4342_p13), %v7556_v13, %v3878_v38  ;;  %v3884_v12 = vld [vmem:[#allocation3 + $0x78] sm:$0xff] (!%p4342_p13)  ;;  %v3982_v38 = vadd.f32 (!%p4342_p13), %v7556_v13, %v3906_v36  ;;  %v3983_v29 = vadd.f32 (!%p4342_p13), %v7552_v14, %v3907_v21  ;;  %4044 = vst [vmem:[%s5727_s13 + $0x118] sm:$0xff] (!%p4342_p13), %v3980_v19 }
 0x6ff   : > { %3853 = vst [vmem:[#allocation3 + $0x1a0] sm:$0xff] %v3789_v32  ;;  %v3791_v25 = vadd.f32 %v3712_v50, %v3310_v28  ;;  %v3714_v17 = vpop.f32.mrb[87].mxu1  ;;  %v3956_v28 = vadd.f32 (!%p4342_p13), %v7556_v13, %v3880_v18  ;;  %v3883_v32 = vld [vmem:[#allocation3 + $0x70] sm:$0xff] (!%p4342_p13)  ;;  %v3958_v50 = vadd.f32 (!%p4342_p13), %v7556_v13, %v3882_v30  ;;  %4017 = vst [vmem:[%s5727_s13 + $0x40] sm:$0xff] (!%p4342_p13), %v3953_v62  ;;  %v3912_v62 = vld [vmem:[#allocation3 + $0x158] sm:$0xff] (!%p4342_p13) }
 0x700   : > { %3854 = vst [vmem:[#allocation3 + $0x1a8] sm:$0xff] %v3790_v47  ;;  %v3792_v1 = vadd.f32 %v3714_v17, %v3311_v3  ;;  %v3885_v3 = vld [vmem:[#allocation3 + $0x80] sm:$0xff] (!%p4342_p13)  ;;  %v3957_v47 = vadd.f32 (!%p4342_p13), %v7552_v14, %v3881_v0  ;;  %v3960_v17 = vadd.f32 (!%p4342_p13), %v7556_v13, %v3884_v12  ;;  %4018 = vst [vmem:[%s5727_s13 + $0x48] sm:$0xff] (!%p4342_p13), %v3954_v45  ;;  %v3910_v0 = vld [vmem:[#allocation3 + $0x148] sm:$0xff] (!%p4342_p13) }
 0x701   : > { %3855 = vst [vmem:[#allocation3 + $0x1b0] sm:$0xff] %v3791_v25  ;;  %v3959_v25 = vadd.f32 (!%p4342_p13), %v7552_v14, %v3883_v32  ;;  %4019 = vst [vmem:[%s5727_s13 + $0x50] sm:$0xff] (!%p4342_p13), %v3955_v33  ;;  %v3985_v18 = vadd.f32 (!%p4342_p13), %v7552_v14, %v3909_v52  ;;  %v3911_v30 = vld [vmem:[#allocation3 + $0x150] sm:$0xff] (!%p4342_p13)  ;;  %v3986_v45 = vadd.f32 (!%p4342_p13), %v7556_v13, %v3910_v0  ;;  %v3913_v32 = vld [vmem:[#allocation3 + $0x160] sm:$0xff] (!%p4342_p13) }
 0x702   : > { %3856 = vst [vmem:[#allocation3 + $0x1b8] sm:$0xff] %v3792_v1  ;;  %v3886_v1 = vld [vmem:[#allocation3 + $0x88] sm:$0xff] (!%p4342_p13)  ;;  %4020 = vst [vmem:[%s5727_s13 + $0x58] sm:$0xff] (!%p4342_p13), %v3956_v28  ;;  %v3987_v33 = vadd.f32 (!%p4342_p13), %v7552_v14, %v3911_v30  ;;  %v3988_v28 = vadd.f32 (!%p4342_p13), %v7556_v13, %v3912_v62 }
 0x703   : > { %4021 = vst [vmem:[%s5727_s13 + $0x60] sm:$0xff] (!%p4342_p13), %v3957_v47  ;;  %4022 = vst [vmem:[%s5727_s13 + $0x68] sm:$0xff] (!%p4342_p13), %v3958_v50  ;;  %v3914_v12 = vld [vmem:[#allocation3 + $0x168] sm:$0xff] (!%p4342_p13)  ;;  %v3989_v47 = vadd.f32 (!%p4342_p13), %v7552_v14, %v3913_v32 }
 0x704   : > { %v3718_v59 = vpop.f32.mrb[88].mxu1  ;;  %4023 = vst [vmem:[%s5727_s13 + $0x70] sm:$0xff] (!%p4342_p13), %v3959_v25  ;;  %4024 = vst [vmem:[%s5727_s13 + $0x78] sm:$0xff] (!%p4342_p13), %v3960_v17  ;;  %v3990_v50 = vadd.f32 (!%p4342_p13), %v7556_v13, %v3914_v12  ;;  %v3916_v17 = vld [vmem:[#allocation3 + $0x178] sm:$0xff] (!%p4342_p13) }
 0x705   : > { %v3793_v2 = vadd.f32 %v3718_v59, %v3312_v24  ;;  %v3720_v60 = vpop.f32.mrb[89].mxu1  ;;  %v3887_v24 = vld [vmem:[#allocation3 + $0x90] sm:$0xff] (!%p4342_p13)  ;;  %v3961_v59 = vadd.f32 (!%p4342_p13), %v7552_v14, %v3885_v3  ;;  %4045 = vst [vmem:[%s5727_s13 + $0x120] sm:$0xff] (!%p4342_p13), %v3981_v10  ;;  %4046 = vst [vmem:[%s5727_s13 + $0x128] sm:$0xff] (!%p4342_p13), %v3982_v38 }
 0x706   : > { %v3794_v39 = vadd.f32 %v3720_v60, %v3313_v6  ;;  %v3722_v4 = vpop.f32.mrb[90].mxu1  ;;  %v3888_v6 = vld [vmem:[#allocation3 + $0x98] sm:$0xff] (!%p4342_p13)  ;;  %v3915_v3 = vld [vmem:[#allocation3 + $0x170] sm:$0xff] (!%p4342_p13)  ;;  %4047 = vst [vmem:[%s5727_s13 + $0x130] sm:$0xff] (!%p4342_p13), %v3983_v29  ;;  %4048 = vst [vmem:[%s5727_s13 + $0x138] sm:$0xff] (!%p4342_p13), %v3984_v61 }
 0x707   : > { %3857 = vst [vmem:[#allocation3 + $0x1c0] sm:$0xff] %v3793_v2  ;;  %v3795_v46 = vadd.f32 %v3722_v4, %v3314_v23  ;;  %v3724_v53 = vpop.f32.mrb[91].mxu1  ;;  %v3962_v23 = vadd.f32 (!%p4342_p13), %v7556_v13, %v3886_v1  ;;  %v3963_v2 = vadd.f32 (!%p4342_p13), %v7552_v14, %v3887_v24  ;;  %v3964_v60 = vadd.f32 (!%p4342_p13), %v7556_v13, %v3888_v6  ;;  %v3891_v4 = vld [vmem:[#allocation3 + $0xb0] sm:$0xff] (!%p4342_p13)  ;;  %v3917_v1 = vld [vmem:[#allocation3 + $0x180] sm:$0xff] (!%p4342_p13)  ;;  %v3918_v24 = vld [vmem:[#allocation3 + $0x188] sm:$0xff] (!%p4342_p13) }
 0x708   : > { %3858 = vst [vmem:[#allocation3 + $0x1c8] sm:$0xff] %v3794_v39  ;;  %v3796_v48 = vadd.f32 %v3724_v53, %v3315_v41  ;;  %v3889_v41 = vld [vmem:[#allocation3 + $0xa0] sm:$0xff] (!%p4342_p13)  ;;  %v3890_v39 = vld [vmem:[#allocation3 + $0xa8] sm:$0xff] (!%p4342_p13)  ;;  %4025 = vst [vmem:[%s5727_s13 + $0x80] sm:$0xff] (!%p4342_p13), %v3961_v59  ;;  %v3991_v25 = vadd.f32 (!%p4342_p13), %v7552_v14, %v3915_v3  ;;  %v3992_v6 = vadd.f32 (!%p4342_p13), %v7556_v13, %v3916_v17 }
 0x709   : > { %3859 = vst [vmem:[#allocation3 + $0x1d0] sm:$0xff] %v3795_v46  ;;  %v3965_v46 = vadd.f32 (!%p4342_p13), %v7552_v14, %v3889_v41  ;;  %v3966_v53 = vadd.f32 (!%p4342_p13), %v7556_v13, %v3890_v39  ;;  %4026 = vst [vmem:[%s5727_s13 + $0x88] sm:$0xff] (!%p4342_p13), %v3962_v23  ;;  %v3993_v59 = vadd.f32 (!%p4342_p13), %v7552_v14, %v3917_v1  ;;  %v3921_v41 = vld [vmem:[#allocation3 + $0x1a0] sm:$0xff] (!%p4342_p13) }
 0x70a   : > { %3860 = vst [vmem:[#allocation3 + $0x1d8] sm:$0xff] %v3796_v48  ;;  %v3967_v48 = vadd.f32 (!%p4342_p13), %v7552_v14, %v3891_v4  ;;  %4027 = vst [vmem:[%s5727_s13 + $0x90] sm:$0xff] (!%p4342_p13), %v3963_v2  ;;  %v3994_v23 = vadd.f32 (!%p4342_p13), %v7556_v13, %v3918_v24  ;;  %v3919_v2 = vld [vmem:[#allocation3 + $0x190] sm:$0xff] (!%p4342_p13) }
 0x70b   : > { %4028 = vst [vmem:[%s5727_s13 + $0x98] sm:$0xff] (!%p4342_p13), %v3964_v60  ;;  %4029 = vst [vmem:[%s5727_s13 + $0xa0] sm:$0xff] (!%p4342_p13), %v3965_v46  ;;  %v3920_v60 = vld [vmem:[#allocation3 + $0x198] sm:$0xff] (!%p4342_p13)  ;;  %v3995_v39 = vadd.f32 (!%p4342_p13), %v7552_v14, %v3919_v2  ;;  %v3997_v46 = vadd.f32 (!%p4342_p13), %v7552_v14, %v3921_v41 }
 0x70c   : > { %v3728_v44 = vpop.f32.mrb[92].mxu1  ;;  %3868 = sbr.rel (%p4342_p13) target bundleno = 1822 (0x71e), region = 60  ;;  %4030 = vst [vmem:[%s5727_s13 + $0xa8] sm:$0xff] (!%p4342_p13), %v3966_v53  ;;  %4031 = vst [vmem:[%s5727_s13 + $0xb0] sm:$0xff] (!%p4342_p13), %v3967_v48  ;;  %v3996_v4 = vadd.f32 (!%p4342_p13), %v7556_v13, %v3920_v60  ;;  %v3922_v53 = vld [vmem:[#allocation3 + $0x1a8] sm:$0xff] (!%p4342_p13)  ;;  %v3923_v48 = vld [vmem:[#allocation3 + $0x1b0] sm:$0xff] (!%p4342_p13) }
 0x70d   : > { %v3797_v8 = vadd.f32 %v3728_v44, %v3316_v34  ;;  %v3730_v16 = vpop.f32.mrb[93].mxu1  ;;  %v3892_v34 = vld [vmem:[#allocation3 + $0xb8] sm:$0xff] (!%p4342_p13)  ;;  %v3894_v44 = vld [vmem:[#allocation3 + $0xc8] sm:$0xff] (!%p4342_p13)  ;;  %4049 = vst [vmem:[%s5727_s13 + $0x140] sm:$0xff] (!%p4342_p13), %v3985_v18  ;;  %4050 = vst [vmem:[%s5727_s13 + $0x148] sm:$0xff] (!%p4342_p13), %v3986_v45 }
 0x70e   : > { %v3798_v56 = vadd.f32 %v3730_v16, %v3317_v37  ;;  %v3732_v51 = vpop.f32.mrb[94].mxu1  ;;  %v3893_v37 = vld [vmem:[#allocation3 + $0xc0] sm:$0xff] (!%p4342_p13)  ;;  %v3970_v16 = vadd.f32 (!%p4342_p13), %v7556_v13, %v3894_v44  ;;  %4051 = vst [vmem:[%s5727_s13 + $0x150] sm:$0xff] (!%p4342_p13), %v3987_v33  ;;  %4052 = vst [vmem:[%s5727_s13 + $0x158] sm:$0xff] (!%p4342_p13), %v3988_v28  ;;  %v3999_v44 = vadd.f32 (!%p4342_p13), %v7552_v14, %v3923_v48 }
 0x70f   : > { %3861 = vst [vmem:[#allocation3 + $0x1e0] sm:$0xff] %v3797_v8  ;;  %v3799_v9 = vadd.f32 %v3732_v51, %v3318_v55  ;;  %v3734_v27 = vpop.f32.mrb[95].mxu1  ;;  %v3968_v55 = vadd.f32 (!%p4342_p13), %v7556_v13, %v3892_v34  ;;  %v3969_v8 = vadd.f32 (!%p4342_p13), %v7552_v14, %v3893_v37  ;;  %v3897_v51 = vld [vmem:[#allocation3 + $0xe0] sm:$0xff] (!%p4342_p13)  ;;  %4053 = vst [vmem:[%s5727_s13 + $0x160] sm:$0xff] (!%p4342_p13), %v3989_v47  ;;  %v3924_v34 = vld [vmem:[#allocation3 + $0x1b8] sm:$0xff] (!%p4342_p13) }
 0x710   : > { %3862 = vst [vmem:[#allocation3 + $0x1e8] sm:$0xff] %v3798_v56  ;;  %v3800_v49 = vadd.f32 %v3734_v27, %v3319_v63  ;;  %v3895_v63 = vld [vmem:[#allocation3 + $0xd0] sm:$0xff] (!%p4342_p13)  ;;  %v3896_v56 = vld [vmem:[#allocation3 + $0xd8] sm:$0xff] (!%p4342_p13)  ;;  %4034 = vst [vmem:[%s5727_s13 + $0xc8] sm:$0xff] (!%p4342_p13), %v3970_v16  ;;  %v3998_v37 = vadd.f32 (!%p4342_p13), %v7556_v13, %v3922_v53 }
 0x711   : > { %3863 = vst [vmem:[#allocation3 + $0x1f0] sm:$0xff] %v3799_v9  ;;  %v3971_v9 = vadd.f32 (!%p4342_p13), %v7552_v14, %v3895_v63  ;;  %v3972_v27 = vadd.f32 (!%p4342_p13), %v7556_v13, %v3896_v56  ;;  %4032 = vst [vmem:[%s5727_s13 + $0xb8] sm:$0xff] (!%p4342_p13), %v3968_v55  ;;  %v4000_v55 = vadd.f32 (!%p4342_p13), %v7556_v13, %v3924_v34  ;;  %v3926_v16 = vld [vmem:[#allocation3 + $0x1c8] sm:$0xff] (!%p4342_p13)  ;;  %v3927_v63 = vld [vmem:[#allocation3 + $0x1d0] sm:$0xff] (!%p4342_p13) }
 0x712   : > { %3864 = vst [vmem:[#allocation3 + $0x1f8] sm:$0xff] %v3800_v49  ;;  %v3973_v49 = vadd.f32 (!%p4342_p13), %v7552_v14, %v3897_v51  ;;  %4033 = vst [vmem:[%s5727_s13 + $0xc0] sm:$0xff] (!%p4342_p13), %v3969_v8  ;;  %v3925_v8 = vld [vmem:[#allocation3 + $0x1c0] sm:$0xff] (!%p4342_p13)  ;;  %v4002_v51 = vadd.f32 (!%p4342_p13), %v7556_v13, %v3926_v16 }
 0x713   : > { %4035 = vst [vmem:[%s5727_s13 + $0xd0] sm:$0xff] %v3971_v9  ;;  %4036 = vst [vmem:[%s5727_s13 + $0xd8] sm:$0xff] %v3972_v27  ;;  %v4001_v56 = vadd.f32 %v7552_v14, %v3925_v8  ;;  %v4003_v9 = vadd.f32 %v7552_v14, %v3927_v63  ;;  %v3928_v27 = vld [vmem:[#allocation3 + $0x1d8] sm:$0xff] }
 0x714   : > { %4037 = vst [vmem:[%s5727_s13 + $0xe0] sm:$0xff] %v3973_v49  ;;  %4054 = vst [vmem:[%s5727_s13 + $0x168] sm:$0xff] %v3990_v50  ;;  %v4004_v35 = vadd.f32 %v7556_v13, %v3928_v27 }
 0x715   : > { %4055 = vst [vmem:[%s5727_s13 + $0x170] sm:$0xff] %v3991_v25  ;;  %4056 = vst [vmem:[%s5727_s13 + $0x178] sm:$0xff] %v3992_v6 }
 0x716   : > { %4057 = vst [vmem:[%s5727_s13 + $0x180] sm:$0xff] %v3993_v59  ;;  %4058 = vst [vmem:[%s5727_s13 + $0x188] sm:$0xff] %v3994_v23  ;;  %v3929_v49 = vld [vmem:[#allocation3 + $0x1e0] sm:$0xff] }
 0x717   : > { %4059 = vst [vmem:[%s5727_s13 + $0x190] sm:$0xff] %v3995_v39  ;;  %4060 = vst [vmem:[%s5727_s13 + $0x198] sm:$0xff] %v3996_v4  ;;  %v3930_v5 = vld [vmem:[#allocation3 + $0x1e8] sm:$0xff]  ;;  %v4005_v43 = vadd.f32 %v7552_v14, %v3929_v49 }
 0x718   : > { %4061 = vst [vmem:[%s5727_s13 + $0x1a0] sm:$0xff] %v3997_v46  ;;  %4062 = vst [vmem:[%s5727_s13 + $0x1a8] sm:$0xff] %v3998_v37  ;;  %v4006_v31 = vadd.f32 %v7556_v13, %v3930_v5  ;;  %v3931_v22 = vld [vmem:[#allocation3 + $0x1f0] sm:$0xff] }
 0x719   : > { %4063 = vst [vmem:[%s5727_s13 + $0x1b0] sm:$0xff] %v3999_v44  ;;  %4064 = vst [vmem:[%s5727_s13 + $0x1b8] sm:$0xff] %v4000_v55  ;;  %v3932_v58 = vld [vmem:[#allocation3 + $0x1f8] sm:$0xff]  ;;  %v4007_v11 = vadd.f32 %v7552_v14, %v3931_v22 }
 0x71a   : > { %4065 = vst [vmem:[%s5727_s13 + $0x1c0] sm:$0xff] %v4001_v56  ;;  %4066 = vst [vmem:[%s5727_s13 + $0x1c8] sm:$0xff] %v4002_v51  ;;  %v4008_v20 = vadd.f32 %v7556_v13, %v3932_v58 }
 0x71b   : > { %4067 = vst [vmem:[%s5727_s13 + $0x1d0] sm:$0xff] %v4003_v9  ;;  %4068 = vst [vmem:[%s5727_s13 + $0x1d8] sm:$0xff] %v4004_v35 }
 0x71c   : > { %4069 = vst [vmem:[%s5727_s13 + $0x1e0] sm:$0xff] %v4005_v43  ;;  %4070 = vst [vmem:[%s5727_s13 + $0x1e8] sm:$0xff] %v4006_v31 }
 0x71d   : > { %4071 = vst [vmem:[%s5727_s13 + $0x1f0] sm:$0xff] %v4007_v11  ;;  %4072 = vst [vmem:[%s5727_s13 + $0x1f8] sm:$0xff] %v4008_v20 }
 0x71e PF: > { %s7956_s24 = sld [smem:[#allocation15_spill]]  ;;  %s7957_s8 = sld [smem:[#allocation45_spill]] }
 0x71f   : > { %s4088_s23 = sshll.u32 %s5727_s13, 4  ;;  %s4074_s25 = scalar_lea.sflag [#allocation6], %s5699_s27  ;;  %s7693_s23 = int_to_ptr.vmem [resolvable:$true] %s4088_s23 }
 0x720   : > { %s5254_s29 = scalar_lea.vmem %s7693_s23, 8192  ;;  %p7958_p6 = scmp.ne.s32.totalorder %s7845_s14, 0 }
 0x721   : > { %p5255_p11 = scmp.ne.s32.totalorder %s7693_s23, %s5254_s29  ;;  %s5391_s30 = smov [#allocation10]  }
 0x722   : > { %s5258_s11 = sshll.u32 %s5391_s30, 4  ;;  %s5259_s11 = int_to_ptr.vmem [resolvable:$false] %s5258_s11 }
 0x723   : > { %p5256_p10 = pnand %p5255_p11, %p7958_p6  ;;  %s5260_s4 = scalar_lea.vmem %s5259_s11, 16384 }
 0x724   : > { %s4355_s12 = sshll.u32 %s7956_s24, 13  ;;  %p5261_p1 = scmp.lt.s32.totalorder %s7693_s23, %s5259_s11 }
 0x725   : > { %s7690_s16 = scalar_lea.hbm %s7957_s8, %s4355_s12  ;;  %p5257_p5 = pneg %p5256_p10 }
 0x726   : > { %p5262_p0 = scmp.lt.s32.totalorder %s5260_s4, %s5254_s29 }
 0x728   : > { %p5263_p9 = por %p5262_p0, %p5261_p1 }
 0x72a   : > { %p5264_p2 = pnand %p5263_p9, %p5257_p5 }
 0x72c   : > { %5267 = shalt.err (!%p5264_p2)
}
 0x72d   : > { %s5268_s15 = scalar_lea.hbm %s7690_s16, 8192  ;;  %s5272_s17 = scalar_lea.hbm %s7957_s8, 16384 }
 0x72e   : > { %p5269_p3 = scmp.ne.s32.totalorder %s7690_s16, %s5268_s15  ;;  %p5273_p8 = scmp.lt.u32.totalorder %s7690_s16, %s7957_s8 }
 0x72f   : > { %p5274_p12 = scmp.lt.u32.totalorder %s5272_s17, %s5268_s15  ;;  %p5276_p11 = scmp.lt.u32.totalorder %s5268_s15, %s7690_s16 }
 0x730   : > { %p5270_p4 = pnand %p5269_p3, %p7958_p6 }
 0x731   : > { %p5275_p13 = por %p5274_p12, %p5273_p8 }
 0x732   : > { %p5271_p7 = pneg %p5270_p4 }
 0x733   : > { %p5277_p10 = por %p5276_p11, %p5275_p13 }
 0x735   : > { %p5278_p5 = pnand %p5277_p10, %p5271_p7 }
 0x737   : > { %5281 = shalt.err (!%p5278_p5)
}
 0x738   : > { %s5392_s9 = smov 256   ;;  %s5393_s1 = smov 16  }
 0x739   : > { %4522 = dma.vmem_to_hbm [thread:$0]  (%p7958_p6), %s7693_s23, 8192, %s7690_s16, %s4074_s25, %s5392_s9, %s5392_s9, %s5393_s1  }
 0x73a PF: > { %p4539_p1 = scmp.ge.s32.totalorder %s5380_s28, 2  ;;  %s4103_s24 = sand.u32 1, %s5352_s21  }
 0x73b   : > { %p7959_p0 = scmp.ne.s32.totalorder %s7847_s5, 0  ;;  %s4104_s12 = scalar_lea.sflag [#allocation6], %s4103_s24 }
 0x73d   : > { %p4535_p9 = pnand %p4539_p1, %p7959_p0 }
 0x73f   : > { %5335 = dma.done.wait (!%p4535_p9), %s4104_s12, 8192  }
 0x740   : > { %5337 = vsyncadd (!%p4535_p9), %s4104_s12, 4294959104  ;;  %s24_s28 = sadd.s32 1, %s5380_s28   ;;  %s7960_s7 = sld [smem:[#allocation18_spill]] }
 0x741   : > { %p21_p2 = scmp.ge.s32.totalorder %s24_s28, 6   ;;  %s7961_s14 = sld [smem:[#allocation14_spill]] }
 0x742   : > { %s7962_s23 = sld [smem:[#allocation20_spill]]  ;;  %s7963_s25 = sld [smem:[#allocation16_spill]] }
 0x743   : > { %s7964_s27 = sld [smem:[#allocation17_spill]]  ;;  %s7965_s6 = sld [smem:[#allocation19_spill]] }
 0x744   : > { %s7966_s18 = smov %s5344_s19  ;;  %s7967_s19 = smov %s5348_s20 }
 0x745   : > { %s7969_s21 = smov %s5356_s22  ;;  %s7971_s24 = smov %s5372_s26 }
 0x746   : > { %s7968_s20 = smov %s7960_s7  ;;  %23 = sbr.rel (!%p21_p2) target bundleno = 16 (0x10), region = 120 }
 0x747   : > { %s7970_s22 = smov %s7961_s14 }
 0x749   : > { %s7972_s26 = smov %s7964_s27  ;;  %s7973_s27 = smov %s7965_s6 }
 0x74d   :  { %4109 = vsyncpa [#allocation5], 1 }
 0x74e   :  { %4111 = vsyncpa [#allocation5 + $0x1], 1 }
 0x74f   :  { %4112 = vsyncpa [#allocation8], 1 }
 0x750   :  { %4114 = vsyncpa [#allocation8 + $0x1], 1 }
 0x751   :  { %4115 = vsyncpa [#allocation6], 1 }
 0x752   :  { %4117 = vsyncpa [#allocation6 + $0x1], 1 }

</bundles_post_ra>
